<compile_context>
chip_gen: v6e
topology: v6e:2x2x1
jax: 0.10.0
libtpu: 0.0.40
codegen_flags: <defaults>
</compile_context>

<pallas_src>
import functools

import numpy as np
import jax
import jax.numpy as jnp
from jax import lax
from jax.experimental import pallas as pl
from jax.experimental.pallas import tpu as pltpu

NUM_LATENT = 15
NEG_SLOPE = 0.01          # torch.nn.functional.leaky_relu default
LANE = 128                # TPU lane width; internal activations padded to this

# activation of each fused layer, in kernel-argument order:
#   enc1, enc2, enc3, z_mean, z_log_var, dec_linear, dec_deconv1, dec_deconv2,
#   dec_deconv3
ACTS = ("leaky", "leaky", "leaky", "none", "none", "none",
        "leaky", "leaky", "leaky_sigmoid")


def _round_up(n, m):
    return ((n + m - 1) // m) * m


# ----------------------------------------------------------------------------
# The fused forward kernel: the whole VAE in one pallas_call.
# Per grid step (= one sample) every layer is
#     out = act( sum_k  L_k @ X @ R_k + bias )
# with X = (rows = image row, cols = w*C + c, lane-padded); only 2-D matmuls.
# ----------------------------------------------------------------------------
def _vae_kernel(*refs, acts):
    n_layers = len(acts)
    x_ref, eps_ref = refs[0], refs[1]
    lrb = refs[2:2 + 3 * n_layers]
    zmean_ref, zlogvar_ref, enc_ref, dec_ref = refs[2 + 3 * n_layers:]

    def layer(h, idx):
        l_ref, r_ref, b_ref = lrb[3 * idx:3 * idx + 3]
        k = l_ref.shape[0]
        npad = r_ref.shape[1] // k             # per-tap block, multiple of 128
        # one lane-dense matmul covering all kernel rows at once ...
        y = jnp.dot(h, r_ref[...], preferred_element_type=jnp.float32)
        # ... then tiny 0/1 row-select / row-scatter matmuls combine the taps.
        acc = jnp.dot(l_ref[0], y[:, :npad], preferred_element_type=jnp.float32)
        for t in range(1, k):
            acc = acc + jnp.dot(l_ref[t], y[:, t * npad:(t + 1) * npad],
                                preferred_element_type=jnp.float32)
        acc = acc + b_ref[...]
        a = acts[idx]
        if a in ("leaky", "leaky_sigmoid"):
            acc = jnp.where(acc >= 0.0, acc, NEG_SLOPE * acc)
        if a == "leaky_sigmoid":
            acc = 1.0 / (1.0 + jnp.exp(-acc))       # exp -> EUP slot
        return acc

    # ---- encoder ----
    h = x_ref[0]                      # (28, 28) single sample (Cin = 1)
    h = layer(h, 0)                   # (12, 256)  enc_conv_1 + leaky_relu
    h = layer(h, 1)                   # (5, 256)   enc_conv_2 + leaky_relu
    h = layer(h, 2)                   # (2, 128)   enc_conv_3 + leaky_relu
    z_mu = layer(h, 3)                # (1, 128)   z_mean head (cols 15.. = 0)
    z_lv = layer(h, 4)                # (1, 128)   z_log_var head
    eps = eps_ref[0]                  # (1, 128)   zero padded beyond 15
    z = z_mu + eps * jnp.exp(0.5 * z_lv)            # reparameterize (fused)
    zmean_ref[0] = z_mu[:, :NUM_LATENT]
    zlogvar_ref[0] = z_lv[:, :NUM_LATENT]
    enc_ref[0] = z[:, :NUM_LATENT]
    # ---- decoder ----
    h = layer(z, 5)                   # (2, 128)   dec_linear_1 (+ NCHW reshape)
    h = layer(h, 6)                   # (4, 128)   dec_deconv_1 + leaky_relu
    h = layer(h, 7)                   # (11, 256)  dec_deconv_2 + leaky_relu
    h = layer(h, 8)                   # (28, 128)  dec_deconv_3 + leaky + sigmoid
    dec_ref[0] = h[:, :28]            # (28, 28)


def conv_vae_forward(kparams, x, eps):
    """x: (B, 1, 28, 28) f32 NCHW, eps: (B, NUM_LATENT) f32."""
    B = x.shape[0]
    H, W = x.shape[2], x.shape[3]
    x2 = x.reshape(B, H, W).astype(jnp.float32)
    eps_p = jnp.zeros((B, 1, LANE), jnp.float32).at[:, 0, :NUM_LATENT].set(eps)

    ins = [x2, eps_p]
    in_specs = [
        pl.BlockSpec((1, H, W), lambda b: (b, 0, 0)),
        pl.BlockSpec((1, 1, LANE), lambda b: (b, 0, 0)),
    ]
    for (lmat, rmat, bias) in kparams:
        for arr in (lmat, rmat, bias):
            ins.append(arr)
            # constant index map -> stays resident in VMEM across grid steps
            in_specs.append(
                pl.BlockSpec(arr.shape, lambda b, nd=arr.ndim: (0,) * nd))

    out_shape = (
        jax.ShapeDtypeStruct((B, 1, NUM_LATENT), jnp.float32),   # z_mean
        jax.ShapeDtypeStruct((B, 1, NUM_LATENT), jnp.float32),   # z_log_var
        jax.ShapeDtypeStruct((B, 1, NUM_LATENT), jnp.float32),   # encoded
        jax.ShapeDtypeStruct((B, H, W), jnp.float32),            # decoded
    )
    out_specs = (
        pl.BlockSpec((1, 1, NUM_LATENT), lambda b: (b, 0, 0)),
        pl.BlockSpec((1, 1, NUM_LATENT), lambda b: (b, 0, 0)),
        pl.BlockSpec((1, 1, NUM_LATENT), lambda b: (b, 0, 0)),
        pl.BlockSpec((1, H, W), lambda b: (b, 0, 0)),
    )

    # advisory cost estimate so XLA can schedule around the fused call
    flops = 0
    for (lmat, rmat, bias) in kparams:
        k, ho, hi = lmat.shape
        kk, kn = rmat.shape
        flops += 2 * B * (hi * kk * kn + k * ho * hi * (kn // k))
    bytes_accessed = sum(int(a.size) * 4 for trip in kparams for a in trip)
    bytes_accessed += 4 * int(x2.size + eps_p.size)
    bytes_accessed += 4 * B * (3 * NUM_LATENT + H * W)
    cost = pl.CostEstimate(flops=int(flops),
                           transcendentals=int(B * (LANE + H * LANE)),
                           bytes_accessed=int(bytes_accessed))

    grid_spec = pltpu.PrefetchScalarGridSpec(
        num_scalar_prefetch=0,
        grid=(B,),
        in_specs=in_specs,
        out_specs=out_specs,
    )
    z_mean, z_log_var, encoded, decoded = pl.pallas_call(
        functools.partial(_vae_kernel, acts=ACTS),
        grid_spec=grid_spec,
        out_shape=out_shape,
        compiler_params=pltpu.CompilerParams(
            dimension_semantics=("parallel",),        # batch across cores
            vmem_limit_bytes=32 * 1024 * 1024),
        cost_estimate=cost,
    )(*ins)

    return (z_mean.reshape(B, NUM_LATENT),
            z_log_var.reshape(B, NUM_LATENT),
            encoded.reshape(B, NUM_LATENT),
            decoded.reshape(B, 1, H, W))


# ----------------------------------------------------------------------------
# Init-time rewrite of the PyTorch-layout parameters into the (L, R, bias)
# matrices the fused kernel consumes.
# ----------------------------------------------------------------------------
def build_kernel_params(params):
    P = {k: np.asarray(v, np.float32) for k, v in params.items()}

    def conv_consts(w, b, hi, wi, s, in_w):
        co, ci, kh, kw = w.shape
        ho = (hi - kh) // s + 1
        wo_n = (wi - kw) // s + 1
        n = wo_n * co
        npad = _round_up(n, LANE)
        L = np.zeros((kh, ho, hi), np.float32)
        for ki in range(kh):
            for r in range(ho):
                L[ki, r, r * s + ki] = 1.0
        R = np.zeros((in_w, kh * npad), np.float32)
        for ki in range(kh):
            for wo in range(wo_n):
                for kj in range(kw):
                    wcol = wo * s + kj
                    R[wcol * ci:(wcol + 1) * ci,
                      ki * npad + wo * co: ki * npad + wo * co + co] = \
                        w[:, :, ki, kj].T
        bias = np.zeros((1, npad), np.float32)
        bias[0, :n] = np.tile(b, wo_n)
        return (L, R, bias), ho, wo_n, npad

    def convT_consts(w, b, hi, wi, s, p, in_w):
        ci, co, kh, kw = w.shape
        ho = (hi - 1) * s - 2 * p + kh
        wo_n = (wi - 1) * s - 2 * p + kw
        n = wo_n * co
        npad = _round_up(n, LANE)
        L = np.zeros((kh, ho, hi), np.float32)
        for r_in in range(hi):
            for ki in range(kh):
                r_out = r_in * s - p + ki
                if 0 <= r_out < ho:
                    L[ki, r_out, r_in] = 1.0
        R = np.zeros((in_w, kh * npad), np.float32)
        for ki in range(kh):
            for wcol in range(wi):
                for kj in range(kw):
                    wo = wcol * s - p + kj
                    if 0 <= wo < wo_n:
                        R[wcol * ci:(wcol + 1) * ci,
                          ki * npad + wo * co: ki * npad + wo * co + co] = \
                            w[:, :, ki, kj]
        bias = np.zeros((1, npad), np.float32)
        bias[0, :n] = np.tile(b, wo_n)
        return (L, R, bias), ho, wo_n, npad

    layers = []
    # encoder: 28x28x1 -> 12x12x16 -> 5x5x32 -> 2x2x64
    t, hi, wi, wpad = conv_consts(P["enc1_w"], P["enc1_b"], 28, 28, 2, 28)
    layers.append(t)
    t, hi, wi, wpad = conv_consts(P["enc2_w"], P["enc2_b"], hi, wi, 2, wpad)
    layers.append(t)
    t, hi, wi, wpad = conv_consts(P["enc3_w"], P["enc3_b"], hi, wi, 2, wpad)
    layers.append(t)
    assert (hi, wi, wpad) == (2, 2, 128)

    # z heads: PyTorch flattens NCHW, i.e. feature f = c*4 + h*2 + w, so the
    # Linear weight columns are permuted here to preserve .view() semantics.
    def head_consts(wlin, blin):
        npad = _round_up(NUM_LATENT, LANE)
        L = np.zeros((2, 1, 2), np.float32)
        L[0, 0, 0] = 1.0
        L[1, 0, 1] = 1.0
        R = np.zeros((wpad, 2 * npad), np.float32)
        for h_ in range(2):
            for w_ in range(2):
                for c_ in range(64):
                    R[w_ * 64 + c_, h_ * npad: h_ * npad + NUM_LATENT] = \
                        wlin[:, c_ * 4 + h_ * 2 + w_]
        bias = np.zeros((1, npad), np.float32)
        bias[0, :NUM_LATENT] = blin
        return (L, R, bias)

    layers.append(head_consts(P["zmean_w"], P["zmean_b"]))
    layers.append(head_consts(P["zlogvar_w"], P["zlogvar_b"]))

    # dec_linear_1: latent (1,15) -> (2, 128) laid out as the NHWC rows of the
    # NCHW .view(-1, 64, 2, 2) that dec_deconv_1 expects.
    def declin_consts(wlin, blin):
        npad = 2 * 64                 # = 128
        L = np.zeros((2, 2, 1), np.float32)
        L[0, 0, 0] = 1.0
        L[1, 1, 0] = 1.0
        R = np.zeros((LANE, 2 * npad), np.float32)
        bias = np.zeros((2, npad), np.float32)
        for h_ in range(2):
            for w_ in range(2):
                for c_ in range(64):
                    f = c_ * 4 + h_ * 2 + w_
                    R[:NUM_LATENT, h_ * npad + w_ * 64 + c_] = wlin[f, :]
                    bias[h_, w_ * 64 + c_] = blin[f]
        return (L, R, bias)

    layers.append(declin_consts(P["declin_w"], P["declin_b"]))

    # decoder: 2x2x64 -> 4x4x32 -> 11x11x16 -> 28x28x1
    t, hi, wi, wpad = convT_consts(P["dec1_w"], P["dec1_b"], 2, 2, 2, 0, 128)
    layers.append(t)
    t, hi, wi, wpad = convT_consts(P["dec2_w"], P["dec2_b"], hi, wi, 3, 1, wpad)
    layers.append(t)
    t, hi, wi, wpad = convT_consts(P["dec3_w"], P["dec3_b"], hi, wi, 3, 4, wpad)
    layers.append(t)
    assert (hi, wi) == (28, 28)

    return [tuple(jnp.asarray(a) for a in trip) for trip in layers]


# ----------------------------------------------------------------------------
# Synthetic parameters (PyTorch shapes, uniform(+-1/sqrt(fan_in)))
# ----------------------------------------------------------------------------
def _init_params(key):
    def uni(k, shape, fan_in):
        bound = 1.0 / np.sqrt(float(fan_in))
        return jax.random.uniform(k, shape, jnp.float32, -bound, bound)

    keys = jax.random.split(key, 18)
    p = {}
    p["enc1_w"] = uni(keys[0], (16, 1, 6, 6), 36)
    p["enc1_b"] = uni(keys[1], (16,), 36)
    p["enc2_w"] = uni(keys[2], (32, 16, 4, 4), 16 * 16)
    p["enc2_b"] = uni(keys[3], (32,), 16 * 16)
    p["enc3_w"] = uni(keys[4], (64, 32, 2, 2), 32 * 4)
    p["enc3_b"] = uni(keys[5], (64,), 32 * 4)
    p["zmean_w"] = uni(keys[6], (NUM_LATENT, 256), 256)    # torch Linear (out, in)
    p["zmean_b"] = uni(keys[7], (NUM_LATENT,), 256)
    p["zlogvar_w"] = uni(keys[8], (NUM_LATENT, 256), 256)
    p["zlogvar_b"] = uni(keys[9], (NUM_LATENT,), 256)
    p["declin_w"] = uni(keys[10], (256, NUM_LATENT), NUM_LATENT)
    p["declin_b"] = uni(keys[11], (256,), NUM_LATENT)
    p["dec1_w"] = uni(keys[12], (64, 32, 2, 2), 64 * 4)    # torch ConvT (in, out, kh, kw)
    p["dec1_b"] = uni(keys[13], (32,), 64 * 4)
    p["dec2_w"] = uni(keys[14], (32, 16, 4, 4), 32 * 16)
    p["dec2_b"] = uni(keys[15], (16,), 32 * 16)
    p["dec3_w"] = uni(keys[16], (16, 1, 6, 6), 16 * 36)
    p["dec3_b"] = uni(keys[17], (1,), 16 * 36)
    return p


# ----------------------------------------------------------------------------
# Plain-JAX (XLA conv) reference of the PyTorch module, for numerical parity.
# ----------------------------------------------------------------------------
def _ref_conv2d(x, w, b, stride):
    dn = lax.conv_dimension_numbers(x.shape, w.shape, ("NCHW", "OIHW", "NCHW"))
    y = lax.conv_general_dilated(x, w, (stride, stride), "VALID",
                                 dimension_numbers=dn)
    return y + b.reshape(1, -1, 1, 1)


def _ref_conv_transpose2d(x, w, b, stride, padding):
    kh, kw = w.shape[2], w.shape[3]
    w_eff = jnp.flip(w, (2, 3)).transpose(1, 0, 2, 3)   # (Cout, Cin, kh, kw)
    dn = lax.conv_dimension_numbers(x.shape, w_eff.shape, ("NCHW", "OIHW", "NCHW"))
    y = lax.conv_general_dilated(
        x, w_eff, window_strides=(1, 1),
        padding=[(kh - 1 - padding, kh - 1 - padding),
                 (kw - 1 - padding, kw - 1 - padding)],
        lhs_dilation=(stride, stride), dimension_numbers=dn)
    return y + b.reshape(1, -1, 1, 1)


def reference_forward(params, x, eps):
    lrelu = lambda t: jnp.where(t >= 0, t, NEG_SLOPE * t)
    h = lrelu(_ref_conv2d(x, params["enc1_w"], params["enc1_b"], 2))
    h = lrelu(_ref_conv2d(h, params["enc2_w"], params["enc2_b"], 2))
    h = lrelu(_ref_conv2d(h, params["enc3_w"], params["enc3_b"], 2))
    flat = h.reshape(h.shape[0], 64 * 2 * 2)
    z_mean = flat @ params["zmean_w"].T + params["zmean_b"]
    z_log_var = flat @ params["zlogvar_w"].T + params["zlogvar_b"]
    encoded = z_mean + eps * jnp.exp(0.5 * z_log_var)
    d = encoded @ params["declin_w"].T + params["declin_b"]
    d = d.reshape(-1, 64, 2, 2)
    d = lrelu(_ref_conv_transpose2d(d, params["dec1_w"], params["dec1_b"], 2, 0))
    d = lrelu(_ref_conv_transpose2d(d, params["dec2_w"], params["dec2_b"], 3, 1))
    d = lrelu(_ref_conv_transpose2d(d, params["dec3_w"], params["dec3_b"], 3, 4))
    decoded = 1.0 / (1.0 + jnp.exp(-d))
    return z_mean, z_log_var, encoded, decoded


if __name__ == "__main__":
    key = jax.random.PRNGKey(0)
    k_param, k_x, k_eps = jax.random.split(key, 3)

    params = _init_params(k_param)
    kparams = build_kernel_params(params)

    B = 2
    x = jax.random.normal(k_x, (B, 1, 28, 28), jnp.float32)    # NCHW, MNIST-sized
    eps = jax.random.normal(k_eps, (B, NUM_LATENT), jnp.float32)

    fwd = jax.jit(conv_vae_forward)
    z_mean, z_log_var, encoded, decoded = fwd(kparams, x, eps)
    jax.block_until_ready((z_mean, z_log_var, encoded, decoded))

    # shape / range sanity
    assert z_mean.shape == (B, NUM_LATENT)
    assert z_log_var.shape == (B, NUM_LATENT)
    assert encoded.shape == (B, NUM_LATENT)
    assert decoded.shape == (B, 1, 28, 28)
    assert bool(jnp.all(jnp.isfinite(decoded)))
    assert bool(jnp.all((decoded >= 0.0) & (decoded <= 1.0)))

    # numerical parity vs. plain-JAX (XLA conv) reference of the module
    ref = reference_forward(params, x, eps)
    for got, want in zip((z_mean, z_log_var, encoded, decoded), ref):
        assert got.shape == want.shape
        err = float(jnp.max(jnp.abs(got - want)))
        assert err < 2e-2, f"mismatch vs reference: max abs err {err}"

    print("KERNEL_OK")
</pallas_src>

<mosaic_0001>
module attributes {stable_mosaic.version = 11 : i64} {
  func.func @_vae_kernel(%arg0: i32, %arg1: memref<1x28x28xf32, #tpu.memory_space<vmem>>, %arg2: memref<1x1x128xf32, #tpu.memory_space<vmem>>, %arg3: memref<6x12x28xf32, #tpu.memory_space<vmem>>, %arg4: memref<28x1536xf32, #tpu.memory_space<vmem>>, %arg5: memref<1x256xf32, #tpu.memory_space<vmem>>, %arg6: memref<4x5x12xf32, #tpu.memory_space<vmem>>, %arg7: memref<256x1024xf32, #tpu.memory_space<vmem>>, %arg8: memref<1x256xf32, #tpu.memory_space<vmem>>, %arg9: memref<2x2x5xf32, #tpu.memory_space<vmem>>, %arg10: memref<256x256xf32, #tpu.memory_space<vmem>>, %arg11: memref<1x128xf32, #tpu.memory_space<vmem>>, %arg12: memref<2x1x2xf32, #tpu.memory_space<vmem>>, %arg13: memref<128x256xf32, #tpu.memory_space<vmem>>, %arg14: memref<1x128xf32, #tpu.memory_space<vmem>>, %arg15: memref<2x1x2xf32, #tpu.memory_space<vmem>>, %arg16: memref<128x256xf32, #tpu.memory_space<vmem>>, %arg17: memref<1x128xf32, #tpu.memory_space<vmem>>, %arg18: memref<2x2x1xf32, #tpu.memory_space<vmem>>, %arg19: memref<128x256xf32, #tpu.memory_space<vmem>>, %arg20: memref<2x128xf32, #tpu.memory_space<vmem>>, %arg21: memref<2x4x2xf32, #tpu.memory_space<vmem>>, %arg22: memref<128x256xf32, #tpu.memory_space<vmem>>, %arg23: memref<1x128xf32, #tpu.memory_space<vmem>>, %arg24: memref<4x11x4xf32, #tpu.memory_space<vmem>>, %arg25: memref<128x1024xf32, #tpu.memory_space<vmem>>, %arg26: memref<1x256xf32, #tpu.memory_space<vmem>>, %arg27: memref<6x28x11xf32, #tpu.memory_space<vmem>>, %arg28: memref<256x768xf32, #tpu.memory_space<vmem>>, %arg29: memref<1x128xf32, #tpu.memory_space<vmem>>, %arg30: memref<1x1x15xf32, #tpu.memory_space<vmem>>, %arg31: memref<1x1x15xf32, #tpu.memory_space<vmem>>, %arg32: memref<1x1x15xf32, #tpu.memory_space<vmem>>, %arg33: memref<1x28x28xf32, #tpu.memory_space<vmem>>) attributes {dimension_semantics = [#tpu.dimension_semantics<parallel>], iteration_bounds = array<i64: 2>, scalar_prefetch = 0 : i64, scratch_operands = 0 : i64, tpu.core_type = #tpu.core_type<tc>, window_params = [{transform_indices = @transform_0, window_bounds = array<i64: 1, 28, 28>}, {transform_indices = @transform_1, window_bounds = array<i64: 1, 1, 128>}, {pipeline_mode = #tpu.pipeline_mode<synchronous>, transform_indices = @transform_2, window_bounds = array<i64: 6, 12, 28>}, {pipeline_mode = #tpu.pipeline_mode<synchronous>, transform_indices = @transform_3, window_bounds = array<i64: 28, 1536>}, {pipeline_mode = #tpu.pipeline_mode<synchronous>, transform_indices = @transform_4, window_bounds = array<i64: 1, 256>}, {pipeline_mode = #tpu.pipeline_mode<synchronous>, transform_indices = @transform_5, window_bounds = array<i64: 4, 5, 12>}, {pipeline_mode = #tpu.pipeline_mode<synchronous>, transform_indices = @transform_6, window_bounds = array<i64: 256, 1024>}, {pipeline_mode = #tpu.pipeline_mode<synchronous>, transform_indices = @transform_7, window_bounds = array<i64: 1, 256>}, {pipeline_mode = #tpu.pipeline_mode<synchronous>, transform_indices = @transform_8, window_bounds = array<i64: 2, 2, 5>}, {pipeline_mode = #tpu.pipeline_mode<synchronous>, transform_indices = @transform_9, window_bounds = array<i64: 256, 256>}, {pipeline_mode = #tpu.pipeline_mode<synchronous>, transform_indices = @transform_10, window_bounds = array<i64: 1, 128>}, {pipeline_mode = #tpu.pipeline_mode<synchronous>, transform_indices = @transform_11, window_bounds = array<i64: 2, 1, 2>}, {pipeline_mode = #tpu.pipeline_mode<synchronous>, transform_indices = @transform_12, window_bounds = array<i64: 128, 256>}, {pipeline_mode = #tpu.pipeline_mode<synchronous>, transform_indices = @transform_13, window_bounds = array<i64: 1, 128>}, {pipeline_mode = #tpu.pipeline_mode<synchronous>, transform_indices = @transform_14, window_bounds = array<i64: 2, 1, 2>}, {pipeline_mode = #tpu.pipeline_mode<synchronous>, transform_indices = @transform_15, window_bounds = array<i64: 128, 256>}, {pipeline_mode = #tpu.pipeline_mode<synchronous>, transform_indices = @transform_16, window_bounds = array<i64: 1, 128>}, {pipeline_mode = #tpu.pipeline_mode<synchronous>, transform_indices = @transform_17, window_bounds = array<i64: 2, 2, 1>}, {pipeline_mode = #tpu.pipeline_mode<synchronous>, transform_indices = @transform_18, window_bounds = array<i64: 128, 256>}, {pipeline_mode = #tpu.pipeline_mode<synchronous>, transform_indices = @transform_19, window_bounds = array<i64: 2, 128>}, {pipeline_mode = #tpu.pipeline_mode<synchronous>, transform_indices = @transform_20, window_bounds = array<i64: 2, 4, 2>}, {pipeline_mode = #tpu.pipeline_mode<synchronous>, transform_indices = @transform_21, window_bounds = array<i64: 128, 256>}, {pipeline_mode = #tpu.pipeline_mode<synchronous>, transform_indices = @transform_22, window_bounds = array<i64: 1, 128>}, {pipeline_mode = #tpu.pipeline_mode<synchronous>, transform_indices = @transform_23, window_bounds = array<i64: 4, 11, 4>}, {pipeline_mode = #tpu.pipeline_mode<synchronous>, transform_indices = @transform_24, window_bounds = array<i64: 128, 1024>}, {pipeline_mode = #tpu.pipeline_mode<synchronous>, transform_indices = @transform_25, window_bounds = array<i64: 1, 256>}, {pipeline_mode = #tpu.pipeline_mode<synchronous>, transform_indices = @transform_26, window_bounds = array<i64: 6, 28, 11>}, {pipeline_mode = #tpu.pipeline_mode<synchronous>, transform_indices = @transform_27, window_bounds = array<i64: 256, 768>}, {pipeline_mode = #tpu.pipeline_mode<synchronous>, transform_indices = @transform_28, window_bounds = array<i64: 1, 128>}, {transform_indices = @transform_29, window_bounds = array<i64: 1, 1, 15>}, {transform_indices = @transform_30, window_bounds = array<i64: 1, 1, 15>}, {transform_indices = @transform_31, window_bounds = array<i64: 1, 1, 15>}, {transform_indices = @transform_32, window_bounds = array<i64: 1, 28, 28>}]} {
    %c0 = arith.constant 0 : index
    %c0_0 = arith.constant 0 : index
    %c0_1 = arith.constant 0 : index
    %0 = vector.load %arg1[%c0, %c0_0, %c0_1] : memref<1x28x28xf32, #tpu.memory_space<vmem>>, vector<1x28x28xf32>
    %1 = vector.shape_cast %0 : vector<1x28x28xf32> to vector<28x28xf32>
    %c0_2 = arith.constant 0 : index
    %c0_3 = arith.constant 0 : index
    %2 = vector.load %arg4[%c0_2, %c0_3] : memref<28x1536xf32, #tpu.memory_space<vmem>>, vector<28x1536xf32>
    %cst = arith.constant dense<0.000000e+00> : vector<28x1536xf32>
    %3 = tpu.matmul %1, %2, %cst {dimension_numbers = #tpu.dot_dimension_numbers<[1], [0], [0], [1], [0, 0, 1, 1], [], []>} : vector<28x28xf32>, vector<28x1536xf32>, vector<28x1536xf32> -> vector<28x1536xf32>
    %c0_4 = arith.constant 0 : index
    %c0_5 = arith.constant 0 : index
    %c0_6 = arith.constant 0 : index
    %4 = vector.load %arg3[%c0_4, %c0_5, %c0_6] : memref<6x12x28xf32, #tpu.memory_space<vmem>>, vector<1x12x28xf32>
    %5 = vector.shape_cast %4 : vector<1x12x28xf32> to vector<12x28xf32>
    %6 = vector.extract_strided_slice %3 {offsets = [0, 0], sizes = [28, 256], strides = [1, 1]} : vector<28x1536xf32> to vector<28x256xf32>
    %cst_7 = arith.constant dense<0.000000e+00> : vector<12x256xf32>
    %7 = tpu.matmul %5, %6, %cst_7 {dimension_numbers = #tpu.dot_dimension_numbers<[1], [0], [0], [1], [0, 0, 1, 1], [], []>} : vector<12x28xf32>, vector<28x256xf32>, vector<12x256xf32> -> vector<12x256xf32>
    %c1 = arith.constant 1 : index
    %c0_8 = arith.constant 0 : index
    %c0_9 = arith.constant 0 : index
    %8 = vector.load %arg3[%c1, %c0_8, %c0_9] : memref<6x12x28xf32, #tpu.memory_space<vmem>>, vector<1x12x28xf32>
    %9 = vector.shape_cast %8 : vector<1x12x28xf32> to vector<12x28xf32>
    %10 = vector.extract_strided_slice %3 {offsets = [0, 256], sizes = [28, 256], strides = [1, 1]} : vector<28x1536xf32> to vector<28x256xf32>
    %cst_10 = arith.constant dense<0.000000e+00> : vector<12x256xf32>
    %11 = tpu.matmul %9, %10, %cst_10 {dimension_numbers = #tpu.dot_dimension_numbers<[1], [0], [0], [1], [0, 0, 1, 1], [], []>} : vector<12x28xf32>, vector<28x256xf32>, vector<12x256xf32> -> vector<12x256xf32>
    %12 = arith.addf %7, %11 : vector<12x256xf32>
    %c2 = arith.constant 2 : index
    %c0_11 = arith.constant 0 : index
    %c0_12 = arith.constant 0 : index
    %13 = vector.load %arg3[%c2, %c0_11, %c0_12] : memref<6x12x28xf32, #tpu.memory_space<vmem>>, vector<1x12x28xf32>
    %14 = vector.shape_cast %13 : vector<1x12x28xf32> to vector<12x28xf32>
    %15 = vector.extract_strided_slice %3 {offsets = [0, 512], sizes = [28, 256], strides = [1, 1]} : vector<28x1536xf32> to vector<28x256xf32>
    %cst_13 = arith.constant dense<0.000000e+00> : vector<12x256xf32>
    %16 = tpu.matmul %14, %15, %cst_13 {dimension_numbers = #tpu.dot_dimension_numbers<[1], [0], [0], [1], [0, 0, 1, 1], [], []>} : vector<12x28xf32>, vector<28x256xf32>, vector<12x256xf32> -> vector<12x256xf32>
    %17 = arith.addf %12, %16 : vector<12x256xf32>
    %c3 = arith.constant 3 : index
    %c0_14 = arith.constant 0 : index
    %c0_15 = arith.constant 0 : index
    %18 = vector.load %arg3[%c3, %c0_14, %c0_15] : memref<6x12x28xf32, #tpu.memory_space<vmem>>, vector<1x12x28xf32>
    %19 = vector.shape_cast %18 : vector<1x12x28xf32> to vector<12x28xf32>
    %20 = vector.extract_strided_slice %3 {offsets = [0, 768], sizes = [28, 256], strides = [1, 1]} : vector<28x1536xf32> to vector<28x256xf32>
    %cst_16 = arith.constant dense<0.000000e+00> : vector<12x256xf32>
    %21 = tpu.matmul %19, %20, %cst_16 {dimension_numbers = #tpu.dot_dimension_numbers<[1], [0], [0], [1], [0, 0, 1, 1], [], []>} : vector<12x28xf32>, vector<28x256xf32>, vector<12x256xf32> -> vector<12x256xf32>
    %22 = arith.addf %17, %21 : vector<12x256xf32>
    %c4 = arith.constant 4 : index
    %c0_17 = arith.constant 0 : index
    %c0_18 = arith.constant 0 : index
    %23 = vector.load %arg3[%c4, %c0_17, %c0_18] : memref<6x12x28xf32, #tpu.memory_space<vmem>>, vector<1x12x28xf32>
    %24 = vector.shape_cast %23 : vector<1x12x28xf32> to vector<12x28xf32>
    %25 = vector.extract_strided_slice %3 {offsets = [0, 1024], sizes = [28, 256], strides = [1, 1]} : vector<28x1536xf32> to vector<28x256xf32>
    %cst_19 = arith.constant dense<0.000000e+00> : vector<12x256xf32>
    %26 = tpu.matmul %24, %25, %cst_19 {dimension_numbers = #tpu.dot_dimension_numbers<[1], [0], [0], [1], [0, 0, 1, 1], [], []>} : vector<12x28xf32>, vector<28x256xf32>, vector<12x256xf32> -> vector<12x256xf32>
    %27 = arith.addf %22, %26 : vector<12x256xf32>
    %c5 = arith.constant 5 : index
    %c0_20 = arith.constant 0 : index
    %c0_21 = arith.constant 0 : index
    %28 = vector.load %arg3[%c5, %c0_20, %c0_21] : memref<6x12x28xf32, #tpu.memory_space<vmem>>, vector<1x12x28xf32>
    %29 = vector.shape_cast %28 : vector<1x12x28xf32> to vector<12x28xf32>
    %30 = vector.extract_strided_slice %3 {offsets = [0, 1280], sizes = [28, 256], strides = [1, 1]} : vector<28x1536xf32> to vector<28x256xf32>
    %cst_22 = arith.constant dense<0.000000e+00> : vector<12x256xf32>
    %31 = tpu.matmul %29, %30, %cst_22 {dimension_numbers = #tpu.dot_dimension_numbers<[1], [0], [0], [1], [0, 0, 1, 1], [], []>} : vector<12x28xf32>, vector<28x256xf32>, vector<12x256xf32> -> vector<12x256xf32>
    %32 = arith.addf %27, %31 : vector<12x256xf32>
    %c0_23 = arith.constant 0 : index
    %c0_24 = arith.constant 0 : index
    %33 = vector.load %arg5[%c0_23, %c0_24] : memref<1x256xf32, #tpu.memory_space<vmem>>, vector<1x256xf32>
    %34 = vector.broadcast %33 : vector<1x256xf32> to vector<12x256xf32>
    %35 = arith.addf %32, %34 : vector<12x256xf32>
    %cst_25 = arith.constant 0.000000e+00 : f32
    %36 = vector.broadcast %cst_25 : f32 to vector<12x256xf32>
    %37 = arith.cmpf oge, %35, %36 : vector<12x256xf32>
    %cst_26 = arith.constant 0.00999999977 : f32
    %38 = vector.broadcast %cst_26 : f32 to vector<12x256xf32>
    %39 = arith.mulf %38, %35 : vector<12x256xf32>
    %40 = arith.select %37, %35, %39 : vector<12x256xi1>, vector<12x256xf32>
    %c0_27 = arith.constant 0 : index
    %c0_28 = arith.constant 0 : index
    %41 = vector.load %arg7[%c0_27, %c0_28] : memref<256x1024xf32, #tpu.memory_space<vmem>>, vector<256x1024xf32>
    %cst_29 = arith.constant dense<0.000000e+00> : vector<12x1024xf32>
    %42 = tpu.matmul %40, %41, %cst_29 {dimension_numbers = #tpu.dot_dimension_numbers<[1], [0], [0], [1], [0, 0, 1, 1], [], []>} : vector<12x256xf32>, vector<256x1024xf32>, vector<12x1024xf32> -> vector<12x1024xf32>
    %c0_30 = arith.constant 0 : index
    %c0_31 = arith.constant 0 : index
    %c0_32 = arith.constant 0 : index
    %43 = vector.load %arg6[%c0_30, %c0_31, %c0_32] : memref<4x5x12xf32, #tpu.memory_space<vmem>>, vector<1x5x12xf32>
    %44 = vector.shape_cast %43 : vector<1x5x12xf32> to vector<5x12xf32>
    %45 = vector.extract_strided_slice %42 {offsets = [0, 0], sizes = [12, 256], strides = [1, 1]} : vector<12x1024xf32> to vector<12x256xf32>
    %cst_33 = arith.constant dense<0.000000e+00> : vector<5x256xf32>
    %46 = tpu.matmul %44, %45, %cst_33 {dimension_numbers = #tpu.dot_dimension_numbers<[1], [0], [0], [1], [0, 0, 1, 1], [], []>} : vector<5x12xf32>, vector<12x256xf32>, vector<5x256xf32> -> vector<5x256xf32>
    %c1_34 = arith.constant 1 : index
    %c0_35 = arith.constant 0 : index
    %c0_36 = arith.constant 0 : index
    %47 = vector.load %arg6[%c1_34, %c0_35, %c0_36] : memref<4x5x12xf32, #tpu.memory_space<vmem>>, vector<1x5x12xf32>
    %48 = vector.shape_cast %47 : vector<1x5x12xf32> to vector<5x12xf32>
    %49 = vector.extract_strided_slice %42 {offsets = [0, 256], sizes = [12, 256], strides = [1, 1]} : vector<12x1024xf32> to vector<12x256xf32>
    %cst_37 = arith.constant dense<0.000000e+00> : vector<5x256xf32>
    %50 = tpu.matmul %48, %49, %cst_37 {dimension_numbers = #tpu.dot_dimension_numbers<[1], [0], [0], [1], [0, 0, 1, 1], [], []>} : vector<5x12xf32>, vector<12x256xf32>, vector<5x256xf32> -> vector<5x256xf32>
    %51 = arith.addf %46, %50 : vector<5x256xf32>
    %c2_38 = arith.constant 2 : index
    %c0_39 = arith.constant 0 : index
    %c0_40 = arith.constant 0 : index
    %52 = vector.load %arg6[%c2_38, %c0_39, %c0_40] : memref<4x5x12xf32, #tpu.memory_space<vmem>>, vector<1x5x12xf32>
    %53 = vector.shape_cast %52 : vector<1x5x12xf32> to vector<5x12xf32>
    %54 = vector.extract_strided_slice %42 {offsets = [0, 512], sizes = [12, 256], strides = [1, 1]} : vector<12x1024xf32> to vector<12x256xf32>
    %cst_41 = arith.constant dense<0.000000e+00> : vector<5x256xf32>
    %55 = tpu.matmul %53, %54, %cst_41 {dimension_numbers = #tpu.dot_dimension_numbers<[1], [0], [0], [1], [0, 0, 1, 1], [], []>} : vector<5x12xf32>, vector<12x256xf32>, vector<5x256xf32> -> vector<5x256xf32>
    %56 = arith.addf %51, %55 : vector<5x256xf32>
    %c3_42 = arith.constant 3 : index
    %c0_43 = arith.constant 0 : index
    %c0_44 = arith.constant 0 : index
    %57 = vector.load %arg6[%c3_42, %c0_43, %c0_44] : memref<4x5x12xf32, #tpu.memory_space<vmem>>, vector<1x5x12xf32>
    %58 = vector.shape_cast %57 : vector<1x5x12xf32> to vector<5x12xf32>
    %59 = vector.extract_strided_slice %42 {offsets = [0, 768], sizes = [12, 256], strides = [1, 1]} : vector<12x1024xf32> to vector<12x256xf32>
    %cst_45 = arith.constant dense<0.000000e+00> : vector<5x256xf32>
    %60 = tpu.matmul %58, %59, %cst_45 {dimension_numbers = #tpu.dot_dimension_numbers<[1], [0], [0], [1], [0, 0, 1, 1], [], []>} : vector<5x12xf32>, vector<12x256xf32>, vector<5x256xf32> -> vector<5x256xf32>
    %61 = arith.addf %56, %60 : vector<5x256xf32>
    %c0_46 = arith.constant 0 : index
    %c0_47 = arith.constant 0 : index
    %62 = vector.load %arg8[%c0_46, %c0_47] : memref<1x256xf32, #tpu.memory_space<vmem>>, vector<1x256xf32>
    %63 = vector.broadcast %62 : vector<1x256xf32> to vector<5x256xf32>
    %64 = arith.addf %61, %63 : vector<5x256xf32>
    %cst_48 = arith.constant 0.000000e+00 : f32
    %65 = vector.broadcast %cst_48 : f32 to vector<5x256xf32>
    %66 = arith.cmpf oge, %64, %65 : vector<5x256xf32>
    %cst_49 = arith.constant 0.00999999977 : f32
    %67 = vector.broadcast %cst_49 : f32 to vector<5x256xf32>
    %68 = arith.mulf %67, %64 : vector<5x256xf32>
    %69 = arith.select %66, %64, %68 : vector<5x256xi1>, vector<5x256xf32>
    %c0_50 = arith.constant 0 : index
    %c0_51 = arith.constant 0 : index
    %70 = vector.load %arg10[%c0_50, %c0_51] : memref<256x256xf32, #tpu.memory_space<vmem>>, vector<256x256xf32>
    %cst_52 = arith.constant dense<0.000000e+00> : vector<5x256xf32>
    %71 = tpu.matmul %69, %70, %cst_52 {dimension_numbers = #tpu.dot_dimension_numbers<[1], [0], [0], [1], [0, 0, 1, 1], [], []>} : vector<5x256xf32>, vector<256x256xf32>, vector<5x256xf32> -> vector<5x256xf32>
    %c0_53 = arith.constant 0 : index
    %c0_54 = arith.constant 0 : index
    %c0_55 = arith.constant 0 : index
    %72 = vector.load %arg9[%c0_53, %c0_54, %c0_55] : memref<2x2x5xf32, #tpu.memory_space<vmem>>, vector<1x2x5xf32>
    %73 = vector.shape_cast %72 : vector<1x2x5xf32> to vector<2x5xf32>
    %74 = vector.extract_strided_slice %71 {offsets = [0, 0], sizes = [5, 128], strides = [1, 1]} : vector<5x256xf32> to vector<5x128xf32>
    %cst_56 = arith.constant dense<0.000000e+00> : vector<2x128xf32>
    %75 = tpu.matmul %73, %74, %cst_56 {dimension_numbers = #tpu.dot_dimension_numbers<[1], [0], [0], [1], [0, 0, 1, 1], [], []>} : vector<2x5xf32>, vector<5x128xf32>, vector<2x128xf32> -> vector<2x128xf32>
    %c1_57 = arith.constant 1 : index
    %c0_58 = arith.constant 0 : index
    %c0_59 = arith.constant 0 : index
    %76 = vector.load %arg9[%c1_57, %c0_58, %c0_59] : memref<2x2x5xf32, #tpu.memory_space<vmem>>, vector<1x2x5xf32>
    %77 = vector.shape_cast %76 : vector<1x2x5xf32> to vector<2x5xf32>
    %78 = vector.extract_strided_slice %71 {offsets = [0, 128], sizes = [5, 128], strides = [1, 1]} : vector<5x256xf32> to vector<5x128xf32>
    %cst_60 = arith.constant dense<0.000000e+00> : vector<2x128xf32>
    %79 = tpu.matmul %77, %78, %cst_60 {dimension_numbers = #tpu.dot_dimension_numbers<[1], [0], [0], [1], [0, 0, 1, 1], [], []>} : vector<2x5xf32>, vector<5x128xf32>, vector<2x128xf32> -> vector<2x128xf32>
    %80 = arith.addf %75, %79 : vector<2x128xf32>
    %c0_61 = arith.constant 0 : index
    %c0_62 = arith.constant 0 : index
    %81 = vector.load %arg11[%c0_61, %c0_62] : memref<1x128xf32, #tpu.memory_space<vmem>>, vector<1x128xf32>
    %82 = vector.broadcast %81 : vector<1x128xf32> to vector<2x128xf32>
    %83 = arith.addf %80, %82 : vector<2x128xf32>
    %cst_63 = arith.constant 0.000000e+00 : f32
    %84 = vector.broadcast %cst_63 : f32 to vector<2x128xf32>
    %85 = arith.cmpf oge, %83, %84 : vector<2x128xf32>
    %cst_64 = arith.constant 0.00999999977 : f32
    %86 = vector.broadcast %cst_64 : f32 to vector<2x128xf32>
    %87 = arith.mulf %86, %83 : vector<2x128xf32>
    %88 = arith.select %85, %83, %87 : vector<2x128xi1>, vector<2x128xf32>
    %c0_65 = arith.constant 0 : index
    %c0_66 = arith.constant 0 : index
    %89 = vector.load %arg13[%c0_65, %c0_66] : memref<128x256xf32, #tpu.memory_space<vmem>>, vector<128x256xf32>
    %cst_67 = arith.constant dense<0.000000e+00> : vector<2x256xf32>
    %90 = tpu.matmul %88, %89, %cst_67 {dimension_numbers = #tpu.dot_dimension_numbers<[1], [0], [0], [1], [0, 0, 1, 1], [], []>} : vector<2x128xf32>, vector<128x256xf32>, vector<2x256xf32> -> vector<2x256xf32>
    %c0_68 = arith.constant 0 : index
    %c0_69 = arith.constant 0 : index
    %c0_70 = arith.constant 0 : index
    %91 = vector.load %arg12[%c0_68, %c0_69, %c0_70] : memref<2x1x2xf32, #tpu.memory_space<vmem>>, vector<1x1x2xf32>
    %92 = vector.shape_cast %91 : vector<1x1x2xf32> to vector<1x2xf32>
    %93 = vector.extract_strided_slice %90 {offsets = [0, 0], sizes = [2, 128], strides = [1, 1]} : vector<2x256xf32> to vector<2x128xf32>
    %cst_71 = arith.constant dense<0.000000e+00> : vector<1x128xf32>
    %94 = tpu.matmul %92, %93, %cst_71 {dimension_numbers = #tpu.dot_dimension_numbers<[1], [0], [0], [1], [0, 0, 1, 1], [], []>} : vector<1x2xf32>, vector<2x128xf32>, vector<1x128xf32> -> vector<1x128xf32>
    %c1_72 = arith.constant 1 : index
    %c0_73 = arith.constant 0 : index
    %c0_74 = arith.constant 0 : index
    %95 = vector.load %arg12[%c1_72, %c0_73, %c0_74] : memref<2x1x2xf32, #tpu.memory_space<vmem>>, vector<1x1x2xf32>
    %96 = vector.shape_cast %95 : vector<1x1x2xf32> to vector<1x2xf32>
    %97 = vector.extract_strided_slice %90 {offsets = [0, 128], sizes = [2, 128], strides = [1, 1]} : vector<2x256xf32> to vector<2x128xf32>
    %cst_75 = arith.constant dense<0.000000e+00> : vector<1x128xf32>
    %98 = tpu.matmul %96, %97, %cst_75 {dimension_numbers = #tpu.dot_dimension_numbers<[1], [0], [0], [1], [0, 0, 1, 1], [], []>} : vector<1x2xf32>, vector<2x128xf32>, vector<1x128xf32> -> vector<1x128xf32>
    %99 = arith.addf %94, %98 : vector<1x128xf32>
    %c0_76 = arith.constant 0 : index
    %c0_77 = arith.constant 0 : index
    %100 = vector.load %arg14[%c0_76, %c0_77] : memref<1x128xf32, #tpu.memory_space<vmem>>, vector<1x128xf32>
    %101 = arith.addf %99, %100 : vector<1x128xf32>
    %c0_78 = arith.constant 0 : index
    %c0_79 = arith.constant 0 : index
    %102 = vector.load %arg16[%c0_78, %c0_79] : memref<128x256xf32, #tpu.memory_space<vmem>>, vector<128x256xf32>
    %cst_80 = arith.constant dense<0.000000e+00> : vector<2x256xf32>
    %103 = tpu.matmul %88, %102, %cst_80 {dimension_numbers = #tpu.dot_dimension_numbers<[1], [0], [0], [1], [0, 0, 1, 1], [], []>} : vector<2x128xf32>, vector<128x256xf32>, vector<2x256xf32> -> vector<2x256xf32>
    %c0_81 = arith.constant 0 : index
    %c0_82 = arith.constant 0 : index
    %c0_83 = arith.constant 0 : index
    %104 = vector.load %arg15[%c0_81, %c0_82, %c0_83] : memref<2x1x2xf32, #tpu.memory_space<vmem>>, vector<1x1x2xf32>
    %105 = vector.shape_cast %104 : vector<1x1x2xf32> to vector<1x2xf32>
    %106 = vector.extract_strided_slice %103 {offsets = [0, 0], sizes = [2, 128], strides = [1, 1]} : vector<2x256xf32> to vector<2x128xf32>
    %cst_84 = arith.constant dense<0.000000e+00> : vector<1x128xf32>
    %107 = tpu.matmul %105, %106, %cst_84 {dimension_numbers = #tpu.dot_dimension_numbers<[1], [0], [0], [1], [0, 0, 1, 1], [], []>} : vector<1x2xf32>, vector<2x128xf32>, vector<1x128xf32> -> vector<1x128xf32>
    %c1_85 = arith.constant 1 : index
    %c0_86 = arith.constant 0 : index
    %c0_87 = arith.constant 0 : index
    %108 = vector.load %arg15[%c1_85, %c0_86, %c0_87] : memref<2x1x2xf32, #tpu.memory_space<vmem>>, vector<1x1x2xf32>
    %109 = vector.shape_cast %108 : vector<1x1x2xf32> to vector<1x2xf32>
    %110 = vector.extract_strided_slice %103 {offsets = [0, 128], sizes = [2, 128], strides = [1, 1]} : vector<2x256xf32> to vector<2x128xf32>
    %cst_88 = arith.constant dense<0.000000e+00> : vector<1x128xf32>
    %111 = tpu.matmul %109, %110, %cst_88 {dimension_numbers = #tpu.dot_dimension_numbers<[1], [0], [0], [1], [0, 0, 1, 1], [], []>} : vector<1x2xf32>, vector<2x128xf32>, vector<1x128xf32> -> vector<1x128xf32>
    %112 = arith.addf %107, %111 : vector<1x128xf32>
    %c0_89 = arith.constant 0 : index
    %c0_90 = arith.constant 0 : index
    %113 = vector.load %arg17[%c0_89, %c0_90] : memref<1x128xf32, #tpu.memory_space<vmem>>, vector<1x128xf32>
    %114 = arith.addf %112, %113 : vector<1x128xf32>
    %c0_91 = arith.constant 0 : index
    %c0_92 = arith.constant 0 : index
    %c0_93 = arith.constant 0 : index
    %115 = vector.load %arg2[%c0_91, %c0_92, %c0_93] : memref<1x1x128xf32, #tpu.memory_space<vmem>>, vector<1x1x128xf32>
    %116 = vector.shape_cast %115 : vector<1x1x128xf32> to vector<1x128xf32>
    %cst_94 = arith.constant 5.000000e-01 : f32
    %117 = vector.broadcast %cst_94 : f32 to vector<1x128xf32>
    %118 = arith.mulf %117, %114 : vector<1x128xf32>
    %119 = math.exp %118 : vector<1x128xf32>
    %120 = arith.mulf %116, %119 : vector<1x128xf32>
    %121 = arith.addf %101, %120 : vector<1x128xf32>
    %122 = vector.extract_strided_slice %101 {offsets = [0, 0], sizes = [1, 15], strides = [1, 1]} : vector<1x128xf32> to vector<1x15xf32>
    %c0_95 = arith.constant 0 : index
    %c0_96 = arith.constant 0 : index
    %c0_97 = arith.constant 0 : index
    %123 = vector.load %arg30[%c0_95, %c0_96, %c0_97] : memref<1x1x15xf32, #tpu.memory_space<vmem>>, vector<1x1x15xf32>
    %124 = vector.shape_cast %123 : vector<1x1x15xf32> to vector<1x15xf32>
    %125 = vector.shape_cast %122 : vector<1x15xf32> to vector<1x1x15xf32>
    tpu.vector_store %arg30[%c0_95, %c0_96, %c0_97], %125 {strides = array<i32>} : memref<1x1x15xf32, #tpu.memory_space<vmem>>, vector<1x1x15xf32>,
    %126 = vector.extract_strided_slice %114 {offsets = [0, 0], sizes = [1, 15], strides = [1, 1]} : vector<1x128xf32> to vector<1x15xf32>
    %c0_98 = arith.constant 0 : index
    %c0_99 = arith.constant 0 : index
    %c0_100 = arith.constant 0 : index
    %127 = vector.load %arg31[%c0_98, %c0_99, %c0_100] : memref<1x1x15xf32, #tpu.memory_space<vmem>>, vector<1x1x15xf32>
    %128 = vector.shape_cast %127 : vector<1x1x15xf32> to vector<1x15xf32>
    %129 = vector.shape_cast %126 : vector<1x15xf32> to vector<1x1x15xf32>
    tpu.vector_store %arg31[%c0_98, %c0_99, %c0_100], %129 {strides = array<i32>} : memref<1x1x15xf32, #tpu.memory_space<vmem>>, vector<1x1x15xf32>,
    %130 = vector.extract_strided_slice %121 {offsets = [0, 0], sizes = [1, 15], strides = [1, 1]} : vector<1x128xf32> to vector<1x15xf32>
    %c0_101 = arith.constant 0 : index
    %c0_102 = arith.constant 0 : index
    %c0_103 = arith.constant 0 : index
    %131 = vector.load %arg32[%c0_101, %c0_102, %c0_103] : memref<1x1x15xf32, #tpu.memory_space<vmem>>, vector<1x1x15xf32>
    %132 = vector.shape_cast %131 : vector<1x1x15xf32> to vector<1x15xf32>
    %133 = vector.shape_cast %130 : vector<1x15xf32> to vector<1x1x15xf32>
    tpu.vector_store %arg32[%c0_101, %c0_102, %c0_103], %133 {strides = array<i32>} : memref<1x1x15xf32, #tpu.memory_space<vmem>>, vector<1x1x15xf32>,
    %c0_104 = arith.constant 0 : index
    %c0_105 = arith.constant 0 : index
    %134 = vector.load %arg19[%c0_104, %c0_105] : memref<128x256xf32, #tpu.memory_space<vmem>>, vector<128x256xf32>
    %cst_106 = arith.constant dense<0.000000e+00> : vector<1x256xf32>
    %135 = tpu.matmul %121, %134, %cst_106 {dimension_numbers = #tpu.dot_dimension_numbers<[1], [0], [0], [1], [0, 0, 1, 1], [], []>} : vector<1x128xf32>, vector<128x256xf32>, vector<1x256xf32> -> vector<1x256xf32>
    %c0_107 = arith.constant 0 : index
    %c0_108 = arith.constant 0 : index
    %c0_109 = arith.constant 0 : index
    %136 = vector.load %arg18[%c0_107, %c0_108, %c0_109] : memref<2x2x1xf32, #tpu.memory_space<vmem>>, vector<1x2x1xf32>
    %137 = vector.shape_cast %136 : vector<1x2x1xf32> to vector<2x1xf32>
    %138 = vector.extract_strided_slice %135 {offsets = [0, 0], sizes = [1, 128], strides = [1, 1]} : vector<1x256xf32> to vector<1x128xf32>
    %cst_110 = arith.constant dense<0.000000e+00> : vector<2x128xf32>
    %139 = tpu.matmul %137, %138, %cst_110 {dimension_numbers = #tpu.dot_dimension_numbers<[1], [0], [0], [1], [0, 0, 1, 1], [], []>} : vector<2x1xf32>, vector<1x128xf32>, vector<2x128xf32> -> vector<2x128xf32>
    %c1_111 = arith.constant 1 : index
    %c0_112 = arith.constant 0 : index
    %c0_113 = arith.constant 0 : index
    %140 = vector.load %arg18[%c1_111, %c0_112, %c0_113] : memref<2x2x1xf32, #tpu.memory_space<vmem>>, vector<1x2x1xf32>
    %141 = vector.shape_cast %140 : vector<1x2x1xf32> to vector<2x1xf32>
    %142 = vector.extract_strided_slice %135 {offsets = [0, 128], sizes = [1, 128], strides = [1, 1]} : vector<1x256xf32> to vector<1x128xf32>
    %cst_114 = arith.constant dense<0.000000e+00> : vector<2x128xf32>
    %143 = tpu.matmul %141, %142, %cst_114 {dimension_numbers = #tpu.dot_dimension_numbers<[1], [0], [0], [1], [0, 0, 1, 1], [], []>} : vector<2x1xf32>, vector<1x128xf32>, vector<2x128xf32> -> vector<2x128xf32>
    %144 = arith.addf %139, %143 : vector<2x128xf32>
    %c0_115 = arith.constant 0 : index
    %c0_116 = arith.constant 0 : index
    %145 = vector.load %arg20[%c0_115, %c0_116] : memref<2x128xf32, #tpu.memory_space<vmem>>, vector<2x128xf32>
    %146 = arith.addf %144, %145 : vector<2x128xf32>
    %c0_117 = arith.constant 0 : index
    %c0_118 = arith.constant 0 : index
    %147 = vector.load %arg22[%c0_117, %c0_118] : memref<128x256xf32, #tpu.memory_space<vmem>>, vector<128x256xf32>
    %cst_119 = arith.constant dense<0.000000e+00> : vector<2x256xf32>
    %148 = tpu.matmul %146, %147, %cst_119 {dimension_numbers = #tpu.dot_dimension_numbers<[1], [0], [0], [1], [0, 0, 1, 1], [], []>} : vector<2x128xf32>, vector<128x256xf32>, vector<2x256xf32> -> vector<2x256xf32>
    %c0_120 = arith.constant 0 : index
    %c0_121 = arith.constant 0 : index
    %c0_122 = arith.constant 0 : index
    %149 = vector.load %arg21[%c0_120, %c0_121, %c0_122] : memref<2x4x2xf32, #tpu.memory_space<vmem>>, vector<1x4x2xf32>
    %150 = vector.shape_cast %149 : vector<1x4x2xf32> to vector<4x2xf32>
    %151 = vector.extract_strided_slice %148 {offsets = [0, 0], sizes = [2, 128], strides = [1, 1]} : vector<2x256xf32> to vector<2x128xf32>
    %cst_123 = arith.constant dense<0.000000e+00> : vector<4x128xf32>
    %152 = tpu.matmul %150, %151, %cst_123 {dimension_numbers = #tpu.dot_dimension_numbers<[1], [0], [0], [1], [0, 0, 1, 1], [], []>} : vector<4x2xf32>, vector<2x128xf32>, vector<4x128xf32> -> vector<4x128xf32>
    %c1_124 = arith.constant 1 : index
    %c0_125 = arith.constant 0 : index
    %c0_126 = arith.constant 0 : index
    %153 = vector.load %arg21[%c1_124, %c0_125, %c0_126] : memref<2x4x2xf32, #tpu.memory_space<vmem>>, vector<1x4x2xf32>
    %154 = vector.shape_cast %153 : vector<1x4x2xf32> to vector<4x2xf32>
    %155 = vector.extract_strided_slice %148 {offsets = [0, 128], sizes = [2, 128], strides = [1, 1]} : vector<2x256xf32> to vector<2x128xf32>
    %cst_127 = arith.constant dense<0.000000e+00> : vector<4x128xf32>
    %156 = tpu.matmul %154, %155, %cst_127 {dimension_numbers = #tpu.dot_dimension_numbers<[1], [0], [0], [1], [0, 0, 1, 1], [], []>} : vector<4x2xf32>, vector<2x128xf32>, vector<4x128xf32> -> vector<4x128xf32>
    %157 = arith.addf %152, %156 : vector<4x128xf32>
    %c0_128 = arith.constant 0 : index
    %c0_129 = arith.constant 0 : index
    %158 = vector.load %arg23[%c0_128, %c0_129] : memref<1x128xf32, #tpu.memory_space<vmem>>, vector<1x128xf32>
    %159 = vector.broadcast %158 : vector<1x128xf32> to vector<4x128xf32>
    %160 = arith.addf %157, %159 : vector<4x128xf32>
    %cst_130 = arith.constant 0.000000e+00 : f32
    %161 = vector.broadcast %cst_130 : f32 to vector<4x128xf32>
    %162 = arith.cmpf oge, %160, %161 : vector<4x128xf32>
    %cst_131 = arith.constant 0.00999999977 : f32
    %163 = vector.broadcast %cst_131 : f32 to vector<4x128xf32>
    %164 = arith.mulf %163, %160 : vector<4x128xf32>
    %165 = arith.select %162, %160, %164 : vector<4x128xi1>, vector<4x128xf32>
    %c0_132 = arith.constant 0 : index
    %c0_133 = arith.constant 0 : index
    %166 = vector.load %arg25[%c0_132, %c0_133] : memref<128x1024xf32, #tpu.memory_space<vmem>>, vector<128x1024xf32>
    %cst_134 = arith.constant dense<0.000000e+00> : vector<4x1024xf32>
    %167 = tpu.matmul %165, %166, %cst_134 {dimension_numbers = #tpu.dot_dimension_numbers<[1], [0], [0], [1], [0, 0, 1, 1], [], []>} : vector<4x128xf32>, vector<128x1024xf32>, vector<4x1024xf32> -> vector<4x1024xf32>
    %c0_135 = arith.constant 0 : index
    %c0_136 = arith.constant 0 : index
    %c0_137 = arith.constant 0 : index
    %168 = vector.load %arg24[%c0_135, %c0_136, %c0_137] : memref<4x11x4xf32, #tpu.memory_space<vmem>>, vector<1x11x4xf32>
    %169 = vector.shape_cast %168 : vector<1x11x4xf32> to vector<11x4xf32>
    %170 = vector.extract_strided_slice %167 {offsets = [0, 0], sizes = [4, 256], strides = [1, 1]} : vector<4x1024xf32> to vector<4x256xf32>
    %cst_138 = arith.constant dense<0.000000e+00> : vector<11x256xf32>
    %171 = tpu.matmul %169, %170, %cst_138 {dimension_numbers = #tpu.dot_dimension_numbers<[1], [0], [0], [1], [0, 0, 1, 1], [], []>} : vector<11x4xf32>, vector<4x256xf32>, vector<11x256xf32> -> vector<11x256xf32>
    %c1_139 = arith.constant 1 : index
    %c0_140 = arith.constant 0 : index
    %c0_141 = arith.constant 0 : index
    %172 = vector.load %arg24[%c1_139, %c0_140, %c0_141] : memref<4x11x4xf32, #tpu.memory_space<vmem>>, vector<1x11x4xf32>
    %173 = vector.shape_cast %172 : vector<1x11x4xf32> to vector<11x4xf32>
    %174 = vector.extract_strided_slice %167 {offsets = [0, 256], sizes = [4, 256], strides = [1, 1]} : vector<4x1024xf32> to vector<4x256xf32>
    %cst_142 = arith.constant dense<0.000000e+00> : vector<11x256xf32>
    %175 = tpu.matmul %173, %174, %cst_142 {dimension_numbers = #tpu.dot_dimension_numbers<[1], [0], [0], [1], [0, 0, 1, 1], [], []>} : vector<11x4xf32>, vector<4x256xf32>, vector<11x256xf32> -> vector<11x256xf32>
    %176 = arith.addf %171, %175 : vector<11x256xf32>
    %c2_143 = arith.constant 2 : index
    %c0_144 = arith.constant 0 : index
    %c0_145 = arith.constant 0 : index
    %177 = vector.load %arg24[%c2_143, %c0_144, %c0_145] : memref<4x11x4xf32, #tpu.memory_space<vmem>>, vector<1x11x4xf32>
    %178 = vector.shape_cast %177 : vector<1x11x4xf32> to vector<11x4xf32>
    %179 = vector.extract_strided_slice %167 {offsets = [0, 512], sizes = [4, 256], strides = [1, 1]} : vector<4x1024xf32> to vector<4x256xf32>
    %cst_146 = arith.constant dense<0.000000e+00> : vector<11x256xf32>
    %180 = tpu.matmul %178, %179, %cst_146 {dimension_numbers = #tpu.dot_dimension_numbers<[1], [0], [0], [1], [0, 0, 1, 1], [], []>} : vector<11x4xf32>, vector<4x256xf32>, vector<11x256xf32> -> vector<11x256xf32>
    %181 = arith.addf %176, %180 : vector<11x256xf32>
    %c3_147 = arith.constant 3 : index
    %c0_148 = arith.constant 0 : index
    %c0_149 = arith.constant 0 : index
    %182 = vector.load %arg24[%c3_147, %c0_148, %c0_149] : memref<4x11x4xf32, #tpu.memory_space<vmem>>, vector<1x11x4xf32>
    %183 = vector.shape_cast %182 : vector<1x11x4xf32> to vector<11x4xf32>
    %184 = vector.extract_strided_slice %167 {offsets = [0, 768], sizes = [4, 256], strides = [1, 1]} : vector<4x1024xf32> to vector<4x256xf32>
    %cst_150 = arith.constant dense<0.000000e+00> : vector<11x256xf32>
    %185 = tpu.matmul %183, %184, %cst_150 {dimension_numbers = #tpu.dot_dimension_numbers<[1], [0], [0], [1], [0, 0, 1, 1], [], []>} : vector<11x4xf32>, vector<4x256xf32>, vector<11x256xf32> -> vector<11x256xf32>
    %186 = arith.addf %181, %185 : vector<11x256xf32>
    %c0_151 = arith.constant 0 : index
    %c0_152 = arith.constant 0 : index
    %187 = vector.load %arg26[%c0_151, %c0_152] : memref<1x256xf32, #tpu.memory_space<vmem>>, vector<1x256xf32>
    %188 = vector.broadcast %187 : vector<1x256xf32> to vector<11x256xf32>
    %189 = arith.addf %186, %188 : vector<11x256xf32>
    %cst_153 = arith.constant 0.000000e+00 : f32
    %190 = vector.broadcast %cst_153 : f32 to vector<11x256xf32>
    %191 = arith.cmpf oge, %189, %190 : vector<11x256xf32>
    %cst_154 = arith.constant 0.00999999977 : f32
    %192 = vector.broadcast %cst_154 : f32 to vector<11x256xf32>
    %193 = arith.mulf %192, %189 : vector<11x256xf32>
    %194 = arith.select %191, %189, %193 : vector<11x256xi1>, vector<11x256xf32>
    %c0_155 = arith.constant 0 : index
    %c0_156 = arith.constant 0 : index
    %195 = vector.load %arg28[%c0_155, %c0_156] : memref<256x768xf32, #tpu.memory_space<vmem>>, vector<256x768xf32>
    %cst_157 = arith.constant dense<0.000000e+00> : vector<11x768xf32>
    %196 = tpu.matmul %194, %195, %cst_157 {dimension_numbers = #tpu.dot_dimension_numbers<[1], [0], [0], [1], [0, 0, 1, 1], [], []>} : vector<11x256xf32>, vector<256x768xf32>, vector<11x768xf32> -> vector<11x768xf32>
    %c0_158 = arith.constant 0 : index
    %c0_159 = arith.constant 0 : index
    %c0_160 = arith.constant 0 : index
    %197 = vector.load %arg27[%c0_158, %c0_159, %c0_160] : memref<6x28x11xf32, #tpu.memory_space<vmem>>, vector<1x28x11xf32>
    %198 = vector.shape_cast %197 : vector<1x28x11xf32> to vector<28x11xf32>
    %199 = vector.extract_strided_slice %196 {offsets = [0, 0], sizes = [11, 128], strides = [1, 1]} : vector<11x768xf32> to vector<11x128xf32>
    %cst_161 = arith.constant dense<0.000000e+00> : vector<28x128xf32>
    %200 = tpu.matmul %198, %199, %cst_161 {dimension_numbers = #tpu.dot_dimension_numbers<[1], [0], [0], [1], [0, 0, 1, 1], [], []>} : vector<28x11xf32>, vector<11x128xf32>, vector<28x128xf32> -> vector<28x128xf32>
    %c1_162 = arith.constant 1 : index
    %c0_163 = arith.constant 0 : index
    %c0_164 = arith.constant 0 : index
    %201 = vector.load %arg27[%c1_162, %c0_163, %c0_164] : memref<6x28x11xf32, #tpu.memory_space<vmem>>, vector<1x28x11xf32>
    %202 = vector.shape_cast %201 : vector<1x28x11xf32> to vector<28x11xf32>
    %203 = vector.extract_strided_slice %196 {offsets = [0, 128], sizes = [11, 128], strides = [1, 1]} : vector<11x768xf32> to vector<11x128xf32>
    %cst_165 = arith.constant dense<0.000000e+00> : vector<28x128xf32>
    %204 = tpu.matmul %202, %203, %cst_165 {dimension_numbers = #tpu.dot_dimension_numbers<[1], [0], [0], [1], [0, 0, 1, 1], [], []>} : vector<28x11xf32>, vector<11x128xf32>, vector<28x128xf32> -> vector<28x128xf32>
    %205 = arith.addf %200, %204 : vector<28x128xf32>
    %c2_166 = arith.constant 2 : index
    %c0_167 = arith.constant 0 : index
    %c0_168 = arith.constant 0 : index
    %206 = vector.load %arg27[%c2_166, %c0_167, %c0_168] : memref<6x28x11xf32, #tpu.memory_space<vmem>>, vector<1x28x11xf32>
    %207 = vector.shape_cast %206 : vector<1x28x11xf32> to vector<28x11xf32>
    %208 = vector.extract_strided_slice %196 {offsets = [0, 256], sizes = [11, 128], strides = [1, 1]} : vector<11x768xf32> to vector<11x128xf32>
    %cst_169 = arith.constant dense<0.000000e+00> : vector<28x128xf32>
    %209 = tpu.matmul %207, %208, %cst_169 {dimension_numbers = #tpu.dot_dimension_numbers<[1], [0], [0], [1], [0, 0, 1, 1], [], []>} : vector<28x11xf32>, vector<11x128xf32>, vector<28x128xf32> -> vector<28x128xf32>
    %210 = arith.addf %205, %209 : vector<28x128xf32>
    %c3_170 = arith.constant 3 : index
    %c0_171 = arith.constant 0 : index
    %c0_172 = arith.constant 0 : index
    %211 = vector.load %arg27[%c3_170, %c0_171, %c0_172] : memref<6x28x11xf32, #tpu.memory_space<vmem>>, vector<1x28x11xf32>
    %212 = vector.shape_cast %211 : vector<1x28x11xf32> to vector<28x11xf32>
    %213 = vector.extract_strided_slice %196 {offsets = [0, 384], sizes = [11, 128], strides = [1, 1]} : vector<11x768xf32> to vector<11x128xf32>
    %cst_173 = arith.constant dense<0.000000e+00> : vector<28x128xf32>
    %214 = tpu.matmul %212, %213, %cst_173 {dimension_numbers = #tpu.dot_dimension_numbers<[1], [0], [0], [1], [0, 0, 1, 1], [], []>} : vector<28x11xf32>, vector<11x128xf32>, vector<28x128xf32> -> vector<28x128xf32>
    %215 = arith.addf %210, %214 : vector<28x128xf32>
    %c4_174 = arith.constant 4 : index
    %c0_175 = arith.constant 0 : index
    %c0_176 = arith.constant 0 : index
    %216 = vector.load %arg27[%c4_174, %c0_175, %c0_176] : memref<6x28x11xf32, #tpu.memory_space<vmem>>, vector<1x28x11xf32>
    %217 = vector.shape_cast %216 : vector<1x28x11xf32> to vector<28x11xf32>
    %218 = vector.extract_strided_slice %196 {offsets = [0, 512], sizes = [11, 128], strides = [1, 1]} : vector<11x768xf32> to vector<11x128xf32>
    %cst_177 = arith.constant dense<0.000000e+00> : vector<28x128xf32>
    %219 = tpu.matmul %217, %218, %cst_177 {dimension_numbers = #tpu.dot_dimension_numbers<[1], [0], [0], [1], [0, 0, 1, 1], [], []>} : vector<28x11xf32>, vector<11x128xf32>, vector<28x128xf32> -> vector<28x128xf32>
    %220 = arith.addf %215, %219 : vector<28x128xf32>
    %c5_178 = arith.constant 5 : index
    %c0_179 = arith.constant 0 : index
    %c0_180 = arith.constant 0 : index
    %221 = vector.load %arg27[%c5_178, %c0_179, %c0_180] : memref<6x28x11xf32, #tpu.memory_space<vmem>>, vector<1x28x11xf32>
    %222 = vector.shape_cast %221 : vector<1x28x11xf32> to vector<28x11xf32>
    %223 = vector.extract_strided_slice %196 {offsets = [0, 640], sizes = [11, 128], strides = [1, 1]} : vector<11x768xf32> to vector<11x128xf32>
    %cst_181 = arith.constant dense<0.000000e+00> : vector<28x128xf32>
    %224 = tpu.matmul %222, %223, %cst_181 {dimension_numbers = #tpu.dot_dimension_numbers<[1], [0], [0], [1], [0, 0, 1, 1], [], []>} : vector<28x11xf32>, vector<11x128xf32>, vector<28x128xf32> -> vector<28x128xf32>
    %225 = arith.addf %220, %224 : vector<28x128xf32>
    %c0_182 = arith.constant 0 : index
    %c0_183 = arith.constant 0 : index
    %226 = vector.load %arg29[%c0_182, %c0_183] : memref<1x128xf32, #tpu.memory_space<vmem>>, vector<1x128xf32>
    %227 = vector.broadcast %226 : vector<1x128xf32> to vector<28x128xf32>
    %228 = arith.addf %225, %227 : vector<28x128xf32>
    %cst_184 = arith.constant 0.000000e+00 : f32
    %229 = vector.broadcast %cst_184 : f32 to vector<28x128xf32>
    %230 = arith.cmpf oge, %228, %229 : vector<28x128xf32>
    %cst_185 = arith.constant 0.00999999977 : f32
    %231 = vector.broadcast %cst_185 : f32 to vector<28x128xf32>
    %232 = arith.mulf %231, %228 : vector<28x128xf32>
    %233 = arith.select %230, %228, %232 : vector<28x128xi1>, vector<28x128xf32>
    %cst_186 = arith.constant 0.000000e+00 : f32
    %234 = vector.broadcast %cst_186 : f32 to vector<28x128xf32>
    %235 = arith.subf %234, %233 : vector<28x128xf32>
    %236 = math.exp %235 : vector<28x128xf32>
    %cst_187 = arith.constant 1.000000e+00 : f32
    %237 = vector.broadcast %cst_187 : f32 to vector<28x128xf32>
    %238 = arith.addf %237, %236 : vector<28x128xf32>
    %cst_188 = arith.constant 1.000000e+00 : f32
    %239 = vector.broadcast %cst_188 : f32 to vector<28x128xf32>
    %240 = arith.divf %239, %238 : vector<28x128xf32>
    %241 = vector.extract_strided_slice %240 {offsets = [0, 0], sizes = [28, 28], strides = [1, 1]} : vector<28x128xf32> to vector<28x28xf32>
    %c0_189 = arith.constant 0 : index
    %c0_190 = arith.constant 0 : index
    %c0_191 = arith.constant 0 : index
    %242 = vector.load %arg33[%c0_189, %c0_190, %c0_191] : memref<1x28x28xf32, #tpu.memory_space<vmem>>, vector<1x28x28xf32>
    %243 = vector.shape_cast %242 : vector<1x28x28xf32> to vector<28x28xf32>
    %244 = vector.shape_cast %241 : vector<28x28xf32> to vector<1x28x28xf32>
    tpu.vector_store %arg33[%c0_189, %c0_190, %c0_191], %244 {strides = array<i32>} : memref<1x28x28xf32, #tpu.memory_space<vmem>>, vector<1x28x28xf32>,
    return
  }
  func.func @transform_0(%arg0: i32) -> (i32, i32, i32) {
    %c0_i32 = arith.constant 0 : i32
    %c0_i32_0 = arith.constant 0 : i32
    %c0_i32_1 = arith.constant 0 : i32
    return %arg0, %c0_i32, %c0_i32_0 : i32, i32, i32
  }
  func.func @transform_1(%arg0: i32) -> (i32, i32, i32) {
    %c0_i32 = arith.constant 0 : i32
    %c0_i32_0 = arith.constant 0 : i32
    %c0_i32_1 = arith.constant 0 : i32
    return %arg0, %c0_i32, %c0_i32_0 : i32, i32, i32
  }
  func.func @transform_2(%arg0: i32) -> (i32, i32, i32) {
    %c0_i32 = arith.constant 0 : i32
    %c0_i32_0 = arith.constant 0 : i32
    %c0_i32_1 = arith.constant 0 : i32
    %c0_i32_2 = arith.constant 0 : i32
    return %c0_i32, %c0_i32_0, %c0_i32_1 : i32, i32, i32
  }
  func.func @transform_3(%arg0: i32) -> (i32, i32) {
    %c0_i32 = arith.constant 0 : i32
    %c0_i32_0 = arith.constant 0 : i32
    %c0_i32_1 = arith.constant 0 : i32
    return %c0_i32, %c0_i32_0 : i32, i32
  }
  func.func @transform_4(%arg0: i32) -> (i32, i32) {
    %c0_i32 = arith.constant 0 : i32
    %c0_i32_0 = arith.constant 0 : i32
    %c0_i32_1 = arith.constant 0 : i32
    return %c0_i32, %c0_i32_0 : i32, i32
  }
  func.func @transform_5(%arg0: i32) -> (i32, i32, i32) {
    %c0_i32 = arith.constant 0 : i32
    %c0_i32_0 = arith.constant 0 : i32
    %c0_i32_1 = arith.constant 0 : i32
    %c0_i32_2 = arith.constant 0 : i32
    return %c0_i32, %c0_i32_0, %c0_i32_1 : i32, i32, i32
  }
  func.func @transform_6(%arg0: i32) -> (i32, i32) {
    %c0_i32 = arith.constant 0 : i32
    %c0_i32_0 = arith.constant 0 : i32
    %c0_i32_1 = arith.constant 0 : i32
    return %c0_i32, %c0_i32_0 : i32, i32
  }
  func.func @transform_7(%arg0: i32) -> (i32, i32) {
    %c0_i32 = arith.constant 0 : i32
    %c0_i32_0 = arith.constant 0 : i32
    %c0_i32_1 = arith.constant 0 : i32
    return %c0_i32, %c0_i32_0 : i32, i32
  }
  func.func @transform_8(%arg0: i32) -> (i32, i32, i32) {
    %c0_i32 = arith.constant 0 : i32
    %c0_i32_0 = arith.constant 0 : i32
    %c0_i32_1 = arith.constant 0 : i32
    %c0_i32_2 = arith.constant 0 : i32
    return %c0_i32, %c0_i32_0, %c0_i32_1 : i32, i32, i32
  }
  func.func @transform_9(%arg0: i32) -> (i32, i32) {
    %c0_i32 = arith.constant 0 : i32
    %c0_i32_0 = arith.constant 0 : i32
    %c0_i32_1 = arith.constant 0 : i32
    return %c0_i32, %c0_i32_0 : i32, i32
  }
  func.func @transform_10(%arg0: i32) -> (i32, i32) {
    %c0_i32 = arith.constant 0 : i32
    %c0_i32_0 = arith.constant 0 : i32
    %c0_i32_1 = arith.constant 0 : i32
    return %c0_i32, %c0_i32_0 : i32, i32
  }
  func.func @transform_11(%arg0: i32) -> (i32, i32, i32) {
    %c0_i32 = arith.constant 0 : i32
    %c0_i32_0 = arith.constant 0 : i32
    %c0_i32_1 = arith.constant 0 : i32
    %c0_i32_2 = arith.constant 0 : i32
    return %c0_i32, %c0_i32_0, %c0_i32_1 : i32, i32, i32
  }
  func.func @transform_12(%arg0: i32) -> (i32, i32) {
    %c0_i32 = arith.constant 0 : i32
    %c0_i32_0 = arith.constant 0 : i32
    %c0_i32_1 = arith.constant 0 : i32
    return %c0_i32, %c0_i32_0 : i32, i32
  }
  func.func @transform_13(%arg0: i32) -> (i32, i32) {
    %c0_i32 = arith.constant 0 : i32
    %c0_i32_0 = arith.constant 0 : i32
    %c0_i32_1 = arith.constant 0 : i32
    return %c0_i32, %c0_i32_0 : i32, i32
  }
  func.func @transform_14(%arg0: i32) -> (i32, i32, i32) {
    %c0_i32 = arith.constant 0 : i32
    %c0_i32_0 = arith.constant 0 : i32
    %c0_i32_1 = arith.constant 0 : i32
    %c0_i32_2 = arith.constant 0 : i32
    return %c0_i32, %c0_i32_0, %c0_i32_1 : i32, i32, i32
  }
  func.func @transform_15(%arg0: i32) -> (i32, i32) {
    %c0_i32 = arith.constant 0 : i32
    %c0_i32_0 = arith.constant 0 : i32
    %c0_i32_1 = arith.constant 0 : i32
    return %c0_i32, %c0_i32_0 : i32, i32
  }
  func.func @transform_16(%arg0: i32) -> (i32, i32) {
    %c0_i32 = arith.constant 0 : i32
    %c0_i32_0 = arith.constant 0 : i32
    %c0_i32_1 = arith.constant 0 : i32
    return %c0_i32, %c0_i32_0 : i32, i32
  }
  func.func @transform_17(%arg0: i32) -> (i32, i32, i32) {
    %c0_i32 = arith.constant 0 : i32
    %c0_i32_0 = arith.constant 0 : i32
    %c0_i32_1 = arith.constant 0 : i32
    %c0_i32_2 = arith.constant 0 : i32
    return %c0_i32, %c0_i32_0, %c0_i32_1 : i32, i32, i32
  }
  func.func @transform_18(%arg0: i32) -> (i32, i32) {
    %c0_i32 = arith.constant 0 : i32
    %c0_i32_0 = arith.constant 0 : i32
    %c0_i32_1 = arith.constant 0 : i32
    return %c0_i32, %c0_i32_0 : i32, i32
  }
  func.func @transform_19(%arg0: i32) -> (i32, i32) {
    %c0_i32 = arith.constant 0 : i32
    %c0_i32_0 = arith.constant 0 : i32
    %c0_i32_1 = arith.constant 0 : i32
    return %c0_i32, %c0_i32_0 : i32, i32
  }
  func.func @transform_20(%arg0: i32) -> (i32, i32, i32) {
    %c0_i32 = arith.constant 0 : i32
    %c0_i32_0 = arith.constant 0 : i32
    %c0_i32_1 = arith.constant 0 : i32
    %c0_i32_2 = arith.constant 0 : i32
    return %c0_i32, %c0_i32_0, %c0_i32_1 : i32, i32, i32
  }
  func.func @transform_21(%arg0: i32) -> (i32, i32) {
    %c0_i32 = arith.constant 0 : i32
    %c0_i32_0 = arith.constant 0 : i32
    %c0_i32_1 = arith.constant 0 : i32
    return %c0_i32, %c0_i32_0 : i32, i32
  }
  func.func @transform_22(%arg0: i32) -> (i32, i32) {
    %c0_i32 = arith.constant 0 : i32
    %c0_i32_0 = arith.constant 0 : i32
    %c0_i32_1 = arith.constant 0 : i32
    return %c0_i32, %c0_i32_0 : i32, i32
  }
  func.func @transform_23(%arg0: i32) -> (i32, i32, i32) {
    %c0_i32 = arith.constant 0 : i32
    %c0_i32_0 = arith.constant 0 : i32
    %c0_i32_1 = arith.constant 0 : i32
    %c0_i32_2 = arith.constant 0 : i32
    return %c0_i32, %c0_i32_0, %c0_i32_1 : i32, i32, i32
  }
  func.func @transform_24(%arg0: i32) -> (i32, i32) {
    %c0_i32 = arith.constant 0 : i32
    %c0_i32_0 = arith.constant 0 : i32
    %c0_i32_1 = arith.constant 0 : i32
    return %c0_i32, %c0_i32_0 : i32, i32
  }
  func.func @transform_25(%arg0: i32) -> (i32, i32) {
    %c0_i32 = arith.constant 0 : i32
    %c0_i32_0 = arith.constant 0 : i32
    %c0_i32_1 = arith.constant 0 : i32
    return %c0_i32, %c0_i32_0 : i32, i32
  }
  func.func @transform_26(%arg0: i32) -> (i32, i32, i32) {
    %c0_i32 = arith.constant 0 : i32
    %c0_i32_0 = arith.constant 0 : i32
    %c0_i32_1 = arith.constant 0 : i32
    %c0_i32_2 = arith.constant 0 : i32
    return %c0_i32, %c0_i32_0, %c0_i32_1 : i32, i32, i32
  }
  func.func @transform_27(%arg0: i32) -> (i32, i32) {
    %c0_i32 = arith.constant 0 : i32
    %c0_i32_0 = arith.constant 0 : i32
    %c0_i32_1 = arith.constant 0 : i32
    return %c0_i32, %c0_i32_0 : i32, i32
  }
  func.func @transform_28(%arg0: i32) -> (i32, i32) {
    %c0_i32 = arith.constant 0 : i32
    %c0_i32_0 = arith.constant 0 : i32
    %c0_i32_1 = arith.constant 0 : i32
    return %c0_i32, %c0_i32_0 : i32, i32
  }
  func.func @transform_29(%arg0: i32) -> (i32, i32, i32) {
    %c0_i32 = arith.constant 0 : i32
    %c0_i32_0 = arith.constant 0 : i32
    %c0_i32_1 = arith.constant 0 : i32
    return %arg0, %c0_i32, %c0_i32_0 : i32, i32, i32
  }
  func.func @transform_30(%arg0: i32) -> (i32, i32, i32) {
    %c0_i32 = arith.constant 0 : i32
    %c0_i32_0 = arith.constant 0 : i32
    %c0_i32_1 = arith.constant 0 : i32
    return %arg0, %c0_i32, %c0_i32_0 : i32, i32, i32
  }
  func.func @transform_31(%arg0: i32) -> (i32, i32, i32) {
    %c0_i32 = arith.constant 0 : i32
    %c0_i32_0 = arith.constant 0 : i32
    %c0_i32_1 = arith.constant 0 : i32
    return %arg0, %c0_i32, %c0_i32_0 : i32, i32, i32
  }
  func.func @transform_32(%arg0: i32) -> (i32, i32, i32) {
    %c0_i32 = arith.constant 0 : i32
    %c0_i32_0 = arith.constant 0 : i32
    %c0_i32_1 = arith.constant 0 : i32
    return %arg0, %c0_i32, %c0_i32_0 : i32, i32, i32
  }
}

</mosaic_0001>

<bundles_post_ra>
// kernel: conv_vae_forward.1
= control target key start
LH: loop header
LB: loop body
LE: loop exit
PB: predicated region body
PF: predicated region fallthrough
CT: control target
= control target key end

     0   :  { %s8381_s6 = smov 1   ;;  %s8382_s10 = smov 2   ;;  %s9394_s0 = inlined_call_operand.smem [shape: u32[33], index: -1, kind: input, shape index: {}] }
   0x1   :  { %s8454_s5 = sld [smem:[%s9394_s0]]   ;;  %s8383_s14 = smov 3  }
   0x2   :  { %s8459_s9 = sld [smem:[%s9394_s0 + %s8381_s6]]   ;;  %s8384_s18 = smov 4  }
   0x3   :  { %s8464_s13 = sld [smem:[%s9394_s0 + %s8382_s10]]   ;;  %s8385_s22 = smov 5  }
   0x4   :  { %s8469_s17 = sld [smem:[%s9394_s0 + %s8383_s14]]   ;;  %s8386_s26 = smov 6  }
   0x5   :  { %s8474_s21 = sld [smem:[%s9394_s0 + %s8384_s18]]   ;;  %s8387_s30 = smov 7  }
   0x6   :  { %s8479_s25 = sld [smem:[%s9394_s0 + %s8385_s22]]   ;;  %s8388_s4 = smov 8  }
   0x7   :  { %9425 = sst [smem:[#allocation44_spill]] %s8454_s5  ;;  %s8389_s10 = smov 9  }
   0x8   :  { %9426 = sst [smem:[#allocation45_spill]] %s8459_s9  ;;  %s8390_s15 = smov 10  }
   0x9   :  { %9427 = sst [smem:[#allocation46_spill]] %s8464_s13  ;;  %s8391_s20 = smov 11  }
   0xa   :  { %9428 = sst [smem:[#allocation47_spill]] %s8469_s17  ;;  %s8393_s1 = smov 13  }
   0xb   :  { %9429 = sst [smem:[#allocation48_spill]] %s8474_s21  ;;  %s8394_s7 = smov 14  }
   0xc   :  { %9430 = sst [smem:[#allocation49_spill]] %s8479_s25  ;;  %s8396_s22 = smov 16  }
   0xd   :  { %s8484_s29 = sld [smem:[%s9394_s0 + %s8386_s26]]   ;;  %s8392_s26 = smov 12  }
   0xe   :  { %s8489_s3 = sld [smem:[%s9394_s0 + %s8387_s30]]   ;;  %s8397_s28 = smov 17  }
   0xf   :  { %s8494_s8 = sld [smem:[%s9394_s0 + %s8388_s4]]  }
  0x10   :  { %s8499_s14 = sld [smem:[%s9394_s0 + %s8389_s10]]  }
  0x11   :  { %s8504_s19 = sld [smem:[%s9394_s0 + %s8390_s15]]   ;;  %s8395_s15 = smov 15  }
  0x12   :  { %s8509_s24 = sld [smem:[%s9394_s0 + %s8391_s20]]  }
  0x13   :  { %s8514_s30 = sld [smem:[%s9394_s0 + %s8392_s26]]  }
  0x14   :  { %9431 = sst [smem:[#allocation50_spill]] %s8489_s3 }
  0x15   :  { %9432 = sst [smem:[#allocation51_spill]] %s8494_s8 }
  0x16   :  { %9433 = sst [smem:[#allocation52_spill]] %s8499_s14 }
  0x17   :  { %9434 = sst [smem:[#allocation53_spill]] %s8504_s19 }
  0x18   :  { %s8519_s6 = sld [smem:[%s9394_s0 + %s8393_s1]]  }
  0x19   :  { %s8524_s12 = sld [smem:[%s9394_s0 + %s8394_s7]]   ;;  %s8398_s7 = smov 18  }
  0x1a   :  { %s8529_s20 = sld [smem:[%s9394_s0 + %s8395_s15]]   ;;  %s8399_s15 = smov 19  }
  0x1b   :  { %s8534_s27 = sld [smem:[%s9394_s0 + %s8396_s22]]   ;;  %s8400_s22 = smov 20  }
  0x1c   :  { %s8539_s4 = sld [smem:[%s9394_s0 + %s8397_s28]]   ;;  %s8401_s28 = smov 21  }
  0x1d   :  { %s8544_s9 = sld [smem:[%s9394_s0 + %s8398_s7]]   ;;  %s8402_s7 = smov 22  }
  0x1e   :  { %9435 = sst [smem:[#allocation54_spill]] %s8519_s6 }
  0x1f   :  { %9436 = sst [smem:[#allocation55_spill]] %s8524_s12 }
  0x20   :  { %s8549_s19 = sld [smem:[%s9394_s0 + %s8399_s15]]   ;;  %s8403_s15 = smov 23  }
  0x21   :  { %s8554_s14 = sld [smem:[%s9394_s0 + %s8400_s22]]   ;;  %s8404_s22 = smov 24  }
  0x22   :  { %9437 = sst [smem:[#allocation56_spill]] %s8539_s4 }
  0x23   :  { %9438 = sst [smem:[#allocation57_spill]] %s8544_s9 }
  0x24   :  { %s8559_s4 = sld [smem:[%s9394_s0 + %s8401_s28]]   ;;  %s8405_s28 = smov 25  }
  0x25   :  { %s8564_s25 = sld [smem:[%s9394_s0 + %s8402_s7]]   ;;  %s8406_s7 = smov 26  }
  0x26   :  { %9439 = sst [smem:[#allocation58_spill]] %s8549_s19 }
  0x27   :  { %9440 = sst [smem:[#allocation59_spill]] %s8554_s14 }
  0x28   :  { %s8569_s13 = sld [smem:[%s9394_s0 + %s8403_s15]]   ;;  %s8407_s15 = smov 27  }
  0x29   :  { %s8574_s14 = sld [smem:[%s9394_s0 + %s8404_s22]]   ;;  %s8408_s22 = smov 28  }
  0x2a   :  { %9441 = sst [smem:[#allocation60_spill]] %s8559_s4 }
  0x2b   :  { %9442 = sst [smem:[#allocation61_spill]] %s8564_s25 }
  0x2c   :  { %s8579_s5 = sld [smem:[%s9394_s0 + %s8405_s28]]   ;;  %s8409_s28 = smov 29  }
  0x2d   :  { %s8584_s25 = sld [smem:[%s9394_s0 + %s8406_s7]]   ;;  %s8410_s7 = smov 30  }
  0x2e   :  { %9443 = sst [smem:[#allocation62_spill]] %s8569_s13 }
  0x2f   :  { %9444 = sst [smem:[#allocation63_spill]] %s8574_s14 }
  0x30   :  { %s8589_s13 = sld [smem:[%s9394_s0 + %s8407_s15]]   ;;  %s8411_s15 = smov 31  }
  0x31   :  { %s8594_s19 = sld [smem:[%s9394_s0 + %s8408_s22]]   ;;  %s8412_s22 = smov 32  }
  0x32   :  { %9445 = sst [smem:[#allocation64_spill]] %s8579_s5 }
  0x33   :  { %9446 = sst [smem:[#allocation65_spill]] %s8584_s25 }
  0x34   :  { %s8599_s5 = sld [smem:[%s9394_s0 + %s8409_s28]]  }
  0x35   :  { %s8604_s25 = sld [smem:[%s9394_s0 + %s8410_s7]]  }
  0x36   :  { %9447 = sst [smem:[#allocation66_spill]] %s8589_s13 }
  0x37   :  { %9448 = sst [smem:[#allocation67_spill]] %s8594_s19 }
  0x38   :  { %s8609_s13 = sld [smem:[%s9394_s0 + %s8411_s15]]  }
  0x39   :  { %s8614_s19 = sld [smem:[%s9394_s0 + %s8412_s22]]  }
  0x3a   :  { %71 = vsyncpa [#allocation3], 0 }
  0x3b   :  { %72 = vsyncpa [#allocation6], 0 }
  0x3c   :  { %73 = vsyncpa [#allocation9], 0 }
  0x3d   :  { %74 = vsyncpa [#allocation12], 0 }
  0x3e   :  { %75 = vsyncpa [#allocation15], 0 }
  0x3f   :  { %76 = vsyncpa [#allocation18], 0 }
  0x40   :  { %77 = vsyncpa [#allocation21], 0 }
  0x41   :  { %78 = vsyncpa [#allocation24], 0 }
  0x42   :  { %79 = vsyncpa [#allocation27], 0 }
  0x43   :  { %80 = vsyncpa [#allocation4], 0 }
  0x44   :  { %82 = vsyncpa [#allocation4 + $0x1], 0 }
  0x45   :  { %83 = vsyncpa [#allocation31], 0 }
  0x46   :  { %85 = vsyncpa [#allocation31 + $0x1], 0  ;;  %s8616_s28 = smov 0   ;;  %s8618_s1 = smov 0  }
  0x47   :  { %s8620_s2 = smov 0   ;;  %s8622_s0 = smov 0  }
  0x48 LB: > { %9449 = sst [smem:[#allocation68_spill]] %s8367_s28  ;;  %s8637_s7 = sadd.s32 4294967295, %s8379_s0   ;;  %s8379_s0 = sphi %s8622_s0, %s9514_s0   ;;  %s8375_s2 = sphi %s8620_s2, %s9516_s2   ;;  %s8371_s1 = sphi %s8618_s1, %s9518_s1   ;;  %s8367_s28 = sphi %s8616_s28, %s9517_s28  }
  0x49   : > { %9450 = sst [smem:[#allocation69_spill]] %s8375_s2  ;;  %s9402_s10 = sadd.s32 4294967294, %s8379_s0  }
  0x4a   : > { %s8641_s11 = sadd.s32 1, %s8379_s0   ;;  %s717_s15 = sadd.s32 1, %s8375_s2 }
  0x4b   : > { %9451 = sst [smem:[#allocation70_spill]] %s8641_s11  ;;  %s714_s16 = ssub.s32 %s8379_s0, %s8641_s11 }
  0x4c   : > { %p727_p0 = scmp.ne.s32.totalorder %s8375_s2, %s8371_s1  ;;  %p715_p1 = scmp.eq.s32.totalorder %s714_s16, 0 }
  0x4d   : > { %p728_p2 = scmp.eq.s32.totalorder %s8637_s7, 1  ;;  %p733_p3 = scmp.ne.s32.totalorder %s8371_s1, %s8367_s28 }
  0x4e   : > { %p734_p4 = scmp.eq.s32.totalorder %s9402_s10, 1  ;;  %p7106_p7 = scmp.ge.s32.totalorder %s8379_s0, 1 }
  0x4f   : > { %s8654_s18 = scalar_select %p715_p1, %s8375_s2, %s717_s15  }
  0x50   : > { %p8656_p5 = por %p728_p2, %p727_p0  ;;  %p8660_p6 = por %p734_p4, %p733_p3 }
  0x51   : > { %9452 = sst [smem:[#allocation71_spill]] %s8654_s18  ;;  %p819_p8 = scmp.lt.s32.totalorder %s8379_s0, 3 }
  0x52   : > { %s9453_s22 = scalar_select %p8656_p5, 1, 0 }
  0x53   : > { %s9454_s23 = scalar_select %p8660_p6, 1, 0 }
  0x54   : > { %p9408_p9 = scmp.eq.s32.totalorder %s8637_s7, 0  ;;  %p8667_p10 = pnand %p7106_p7, %p819_p8 }
  0x55   : > { %9455 = sst [smem:[#allocation72_spill]] %s9454_s23  ;;  %s8413_s16 = smov [#allocation5]  }
  0x56   : > { %s9456_s26 = scalar_select %p8667_p10, 1, 0 }
  0x57   : > { %s848_s10 = sshll.u32 %s8413_s16, 4  ;;  %p7576_p11 = pneg %p8667_p10  ;;  %s849_s10 = int_to_ptr.vmem [resolvable:$true] %s848_s10 }
  0x58   : > { %s8414_s15 = smov [#allocation8]   ;;  %s8415_s11 = smov [#allocation11]  }
  0x59   : > { %s875_s18 = sshll.u32 %s8414_s15, 4  ;;  %p8675_p12 = pnand %p9408_p9, %p7576_p11  ;;  %s876_s18 = int_to_ptr.vmem [resolvable:$true] %s875_s18 }
  0x5a   : > { %s904_s23 = sshll.u32 %s8415_s11, 4  ;;  %s7796_s16 = scalar_lea.vmem %s849_s10, 32  ;;  %s8679_s23 = int_to_ptr.vmem [resolvable:$true] %s904_s23 }
  0x5b   : > { %p8683_p13 = pneg %p8675_p12  ;;  %p7797_p0 = scmp.ne.s32.totalorder %s849_s10, %s7796_s16 }
  0x5c   : > { %p7804_p3 = scmp.lt.s32.totalorder %s849_s10, %s849_s10  ;;  %p7805_p4 = scmp.lt.s32.totalorder %s7796_s16, %s7796_s16 }
  0x5d   : > { %p7799_p1 = pnand %p7797_p0, %p8683_p13 }
  0x5e   : > { %p7806_p7 = por %p7805_p4, %p7804_p3 }
  0x5f   : > { %p7800_p2 = pneg %p7799_p1 }
  0x61   : > { %p7807_p8 = pnand %p7806_p7, %p7800_p2 }
  0x63   : > { %7810 = shalt.err (!%p7807_p8)
}
  0x64   : > { %s9459_s21 = sld [smem:[#allocation48_spill]]  ;;  %s7822_s11 = scalar_lea.vmem %s876_s18, 32 }
  0x65   : > { %p7823_p11 = scmp.ne.s32.totalorder %s876_s18, %s7822_s11  ;;  %p7830_p5 = scmp.lt.s32.totalorder %s876_s18, %s876_s18 }
  0x66   : > { %p7831_p10 = scmp.lt.s32.totalorder %s7822_s11, %s7822_s11 }
  0x67   : > { %p7825_p9 = pnand %p7823_p11, %p8683_p13 }
  0x68   : > { %p7832_p0 = por %p7831_p10, %p7830_p5 }
  0x69   : > { %p7826_p6 = pneg %p7825_p9 }
  0x6a   : > { %7582 = dma.hbm_to_vmem [thread:$0]  (!%p8675_p12), %s9459_s21, 32, %s849_s10, [#allocation6]  }
  0x6b   : > { %p7833_p1 = pnand %p7832_p0, %p7826_p6 }
  0x6d   : > { %7836 = shalt.err (!%p7833_p1)
}
  0x6e   : > { %s9460_s3 = sld [smem:[#allocation50_spill]]  ;;  %s7848_s15 = scalar_lea.vmem %s8679_s23, 32 }
  0x6f   : > { %p7849_p2 = scmp.ne.s32.totalorder %s8679_s23, %s7848_s15  ;;  %p7856_p9 = scmp.lt.s32.totalorder %s8679_s23, %s8679_s23 }
  0x70   : > { %p7857_p7 = scmp.lt.s32.totalorder %s7848_s15, %s7848_s15 }
  0x71   : > { %p7851_p3 = pnand %p7849_p2, %p8683_p13 }
  0x72   : > { %p7858_p8 = por %p7857_p7, %p7856_p9 }
  0x73   : > { %p7852_p4 = pneg %p7851_p3 }
  0x74   : > { %7588 = dma.hbm_to_vmem [thread:$0]  (!%p8675_p12), %s9460_s3, 32, %s876_s18, [#allocation9]  }
  0x75   : > { %p7859_p5 = pnand %p7858_p8, %p7852_p4 }
  0x77   : > { %7862 = shalt.err (!%p7859_p5)
}
  0x78   : > { %s9412_s10 = smov 16   ;;  %s9411_s16 = smov 1  }
  0x79   : > { %7594 = dma.hbm_to_vmem [thread:$0]  (!%p8675_p12), %s8509_s24, 32, %s8679_s23, [#allocation12], %s9412_s10, %s9412_s10, %s9411_s16  }
  0x7a   : > { %s8418_s18 = smov [#allocation14]  }
  0x7b   : > { %s931_s11 = sshll.u32 %s8418_s18, 4  ;;  %s932_s11 = int_to_ptr.vmem [resolvable:$true] %s931_s11 }
  0x7c   : > { %s7874_s3 = scalar_lea.vmem %s932_s11, 16  ;;  %s7881_s15 = scalar_lea.vmem %s932_s11, 32 }
  0x7d   : > { %p7875_p6 = scmp.ne.s32.totalorder %s932_s11, %s7874_s3  ;;  %p7882_p0 = scmp.lt.s32.totalorder %s932_s11, %s932_s11 }
  0x7e   : > { %p7883_p1 = scmp.lt.s32.totalorder %s7881_s15, %s7874_s3 }
  0x7f   : > { %p7877_p10 = pnand %p7875_p6, %p8683_p13 }
  0x80   : > { %p7884_p2 = por %p7883_p1, %p7882_p0 }
  0x81   : > { %p7878_p11 = pneg %p7877_p10 }
  0x83   : > { %p7885_p3 = pnand %p7884_p2, %p7878_p11 }
  0x85   : > { %7888 = shalt.err (!%p7885_p3)
}
  0x86   : > { %s9461_s6 = sld [smem:[#allocation54_spill]]  ;;  %s8419_s23 = smov [#allocation17]  }
  0x87   : > { %s954_s16 = sshll.u32 %s8419_s23, 4  ;;  %s8420_s18 = smov [#allocation20]   ;;  %s955_s16 = int_to_ptr.vmem [resolvable:$true] %s954_s16 }
  0x88   : > { %s981_s10 = sshll.u32 %s8420_s18, 4  ;;  %s7900_s21 = scalar_lea.vmem %s955_s16, 4096  ;;  %s982_s10 = int_to_ptr.vmem [resolvable:$true] %s981_s10 }
  0x89   : > { %p7901_p4 = scmp.ne.s32.totalorder %s955_s16, %s7900_s21  ;;  %p7908_p8 = scmp.lt.s32.totalorder %s955_s16, %s955_s16 }
  0x8a   : > { %p7909_p5 = scmp.lt.s32.totalorder %s7900_s21, %s7900_s21 }
  0x8b   : > { %p7903_p9 = pnand %p7901_p4, %p8683_p13 }
  0x8c   : > { %7600 = dma.hbm_to_vmem [thread:$0]  (!%p8675_p12), %s9461_s6, 16, %s932_s11, [#allocation15]  }
  0x8d   : > { %p7904_p7 = pneg %p7903_p9  ;;  %p7910_p6 = por %p7909_p5, %p7908_p8 }
  0x8f   : > { %p7911_p10 = pnand %p7910_p6, %p7904_p7 }
  0x91   : > { %7914 = shalt.err (!%p7911_p10)
}
  0x92   : > { %s9414_s3 = smov 256   ;;  %s9462_s15 = smov 16  }
  0x93   : > { %7606 = dma.hbm_to_vmem [thread:$0]  (!%p8675_p12), %s8529_s20, 4096, %s955_s16, [#allocation18], %s9414_s3, %s9414_s3, %s9462_s15  }
  0x94   : > { %s7926_s11 = scalar_lea.vmem %s982_s10, 4096  ;;  %p7934_p2 = scmp.lt.s32.totalorder %s982_s10, %s982_s10 }
  0x95   : > { %p7927_p11 = scmp.ne.s32.totalorder %s982_s10, %s7926_s11  ;;  %p7935_p3 = scmp.lt.s32.totalorder %s7926_s11, %s7926_s11 }
  0x97   : > { %p7929_p0 = pnand %p7927_p11, %p8683_p13  ;;  %p7936_p4 = por %p7935_p3, %p7934_p2 }
  0x99   : > { %p7930_p1 = pneg %p7929_p0 }
  0x9b   : > { %p7937_p9 = pnand %p7936_p4, %p7930_p1 }
  0x9d   : > { %7940 = shalt.err (!%p7937_p9)
}
  0x9e   : > { %s9463_s9 = sld [smem:[#allocation57_spill]]  ;;  %s8422_s21 = smov [#allocation23]  }
  0x9f   : > { %s1008_s16 = sshll.u32 %s8422_s21, 4  ;;  %s1009_s16 = int_to_ptr.vmem [resolvable:$true] %s1008_s16 }
  0xa0   : > { %s7952_s23 = scalar_lea.vmem %s1009_s16, 4096  ;;  %p7960_p6 = scmp.lt.s32.totalorder %s1009_s16, %s1009_s16 }
  0xa1   : > { %p7953_p7 = scmp.ne.s32.totalorder %s1009_s16, %s7952_s23  ;;  %p7961_p10 = scmp.lt.s32.totalorder %s7952_s23, %s7952_s23 }
  0xa3   : > { %p7955_p8 = pnand %p7953_p7, %p8683_p13  ;;  %p7962_p11 = por %p7961_p10, %p7960_p6 }
  0xa4   : > { %7612 = dma.hbm_to_vmem [thread:$0]  (!%p8675_p12), %s9463_s9, 4096, %s982_s10, [#allocation21], %s9414_s3, %s9414_s3, %s9462_s15  }
  0xa5   : > { %p7956_p5 = pneg %p7955_p8 }
  0xa7   : > { %p7963_p0 = pnand %p7962_p11, %p7956_p5 }
  0xa9   : > { %7966 = shalt.err (!%p7963_p0)
}
  0xaa   : > { %s9464_s4 = sld [smem:[#allocation60_spill]]  ;;  %s8423_s10 = smov [#allocation26]  }
  0xab   : > { %s1035_s18 = sshll.u32 %s8423_s10, 4  ;;  %s8424_s11 = smov [#allocation2]   ;;  %s1036_s18 = int_to_ptr.vmem [resolvable:$true] %s1035_s18 }
  0xac   : > { %s834_s21 = sshll.u32 %s8424_s11, 4  ;;  %s7978_s6 = scalar_lea.vmem %s1036_s18, 16384  ;;  %s835_s21 = int_to_ptr.vmem [resolvable:$true] %s834_s21 }
  0xad   : > { %p7979_p1 = scmp.ne.s32.totalorder %s1036_s18, %s7978_s6  ;;  %p7986_p4 = scmp.lt.s32.totalorder %s1036_s18, %s1036_s18 }
  0xae   : > { %p7987_p9 = scmp.lt.s32.totalorder %s7978_s6, %s7978_s6 }
  0xaf   : > { %p7981_p2 = pnand %p7979_p1, %p8683_p13 }
  0xb0   : > { %7618 = dma.hbm_to_vmem [thread:$0]  (!%p8675_p12), %s9464_s4, 4096, %s1009_s16, [#allocation24], %s9414_s3, %s9414_s3, %s9462_s15  }
  0xb1   : > { %p7982_p3 = pneg %p7981_p2  ;;  %p7988_p7 = por %p7987_p9, %p7986_p4 }
  0xb3   : > { %p7989_p8 = pnand %p7988_p7, %p7982_p3 }
  0xb5   : > { %7992 = shalt.err (!%p7989_p8)
}
  0xb6   : > { %s9415_s23 = smov 1024   ;;  %s9465_s14 = sld [smem:[#allocation63_spill]] }
  0xb7   : > { %s9416_s16 = smov 64   ;;  %s8004_s10 = scalar_lea.vmem %s835_s21, 6144 }
  0xb8   : > { %p8005_p5 = scmp.ne.s32.totalorder %s835_s21, %s8004_s10  ;;  %p8012_p11 = scmp.lt.s32.totalorder %s835_s21, %s835_s21 }
  0xb9   : > { %p8013_p0 = scmp.lt.s32.totalorder %s8004_s10, %s8004_s10 }
  0xba   : > { %p8007_p6 = pnand %p8005_p5, %p8683_p13 }
  0xbb   : > { %p8014_p1 = por %p8013_p0, %p8012_p11 }
  0xbc   : > { %7624 = dma.hbm_to_vmem [thread:$0]  (!%p8675_p12), %s9465_s14, 16384, %s1036_s18, [#allocation27], %s9415_s23, %s9415_s23, %s9416_s16  }
  0xbd   : > { %p8008_p10 = pneg %p8007_p6 }
  0xbf   : > { %p8015_p2 = pnand %p8014_p1, %p8008_p10 }
  0xc1   : > { %8018 = shalt.err (!%p8015_p2)
}
  0xc2   : > { %s8427_s6 = smov 1536   ;;  %s9466_s17 = sld [smem:[#allocation47_spill]] }
  0xc3   : > { %s8428_s11 = smov 96   ;;  %s8429_s3 = smov [#allocation7]  }
  0xc4   : > { %s861_s4 = sshll.u32 %s8429_s3, 4  ;;  %s8430_s18 = smov [#allocation10]   ;;  %s862_s4 = int_to_ptr.vmem [resolvable:$true] %s861_s4 }
  0xc5   : > { %s885_s23 = sshll.u32 %s8430_s18, 4  ;;  %s8030_s16 = scalar_lea.vmem %s862_s4, 32768  ;;  %s886_s23 = int_to_ptr.vmem [resolvable:$true] %s885_s23 }
  0xc6   : > { %p8031_p3 = scmp.ne.s32.totalorder %s862_s4, %s8030_s16  ;;  %p8038_p7 = scmp.lt.s32.totalorder %s862_s4, %s862_s4 }
  0xc7   : > { %p8039_p8 = scmp.lt.s32.totalorder %s8030_s16, %s8030_s16 }
  0xc8   : > { %7579 = dma.hbm_to_vmem [thread:$0]  (!%p8675_p12), %s9466_s17, 6144, %s835_s21, [#allocation3], %s8427_s6, %s8427_s6, %s8428_s11  }
  0xc9   : > { %p8033_p4 = pnand %p8031_p3, %p8683_p13  ;;  %p8040_p5 = por %p8039_p8, %p8038_p7 }
  0xcb   : > { %p8034_p9 = pneg %p8033_p4 }
  0xcd   : > { %p8041_p6 = pnand %p8040_p5, %p8034_p9 }
  0xcf   : > { %8044 = shalt.err (!%p8041_p6)
}
  0xd0   : > { %s9467_s10 = smov 64   ;;  %s9468_s21 = smov 1024  }
  0xd1   : > { %7585 = dma.hbm_to_vmem [thread:$0]  (!%p8675_p12), %s8484_s29, 32768, %s862_s4, [#allocation6], %s9468_s21, %s9468_s21, %s9467_s10  }
  0xd2   : > { %s8056_s3 = scalar_lea.vmem %s886_s23, 64  ;;  %p8064_p1 = scmp.lt.s32.totalorder %s886_s23, %s886_s23 }
  0xd3   : > { %p8057_p10 = scmp.ne.s32.totalorder %s886_s23, %s8056_s3  ;;  %p8065_p2 = scmp.lt.s32.totalorder %s8056_s3, %s8056_s3 }
  0xd5   : > { %p8059_p11 = pnand %p8057_p10, %p8683_p13  ;;  %p8066_p3 = por %p8065_p2, %p8064_p1 }
  0xd7   : > { %p8060_p0 = pneg %p8059_p11 }
  0xd9   : > { %p8067_p4 = pnand %p8066_p3, %p8060_p0 }
  0xdb   : > { %8070 = shalt.err (!%p8067_p4)
}
  0xdc   : > { %s8431_s16 = smov 32   ;;  %s9469_s8 = sld [smem:[#allocation51_spill]] }
  0xdd   : > { %s8432_s6 = smov 2   ;;  %s8433_s11 = smov [#allocation13]  }
  0xde   : > { %s917_s18 = sshll.u32 %s8433_s11, 4  ;;  %s8434_s4 = smov [#allocation16]   ;;  %s918_s18 = int_to_ptr.vmem [resolvable:$true] %s917_s18 }
  0xdf   : > { %s941_s10 = sshll.u32 %s8434_s4, 4  ;;  %s8082_s21 = scalar_lea.vmem %s918_s18, 4096  ;;  %s942_s10 = int_to_ptr.vmem [resolvable:$true] %s941_s10 }
  0xe0   : > { %p8083_p9 = scmp.ne.s32.totalorder %s918_s18, %s8082_s21  ;;  %p8090_p5 = scmp.lt.s32.totalorder %s918_s18, %s918_s18 }
  0xe1   : > { %p8091_p6 = scmp.lt.s32.totalorder %s8082_s21, %s8082_s21 }
  0xe2   : > { %7591 = dma.hbm_to_vmem [thread:$0]  (!%p8675_p12), %s9469_s8, 64, %s886_s23, [#allocation9], %s8431_s16, %s8431_s16, %s8432_s6  }
  0xe3   : > { %p8085_p7 = pnand %p8083_p9, %p8683_p13  ;;  %p8092_p10 = por %p8091_p6, %p8090_p5 }
  0xe5   : > { %p8086_p8 = pneg %p8085_p7 }
  0xe7   : > { %p8093_p11 = pnand %p8092_p10, %p8086_p8 }
  0xe9   : > { %8096 = shalt.err (!%p8093_p11)
}
  0xea   : > { %s9470_s23 = smov 256   ;;  %s8108_s3 = scalar_lea.vmem %s942_s10, 32 }
  0xeb   : > { %7597 = dma.hbm_to_vmem [thread:$0]  (!%p8675_p12), %s8514_s30, 4096, %s918_s18, [#allocation12], %s9470_s23, %s9470_s23, %s9462_s15  }
  0xec   : > { %p8109_p0 = scmp.ne.s32.totalorder %s942_s10, %s8108_s3  ;;  %p8116_p3 = scmp.lt.s32.totalorder %s942_s10, %s942_s10 }
  0xed   : > { %p8117_p4 = scmp.lt.s32.totalorder %s8108_s3, %s8108_s3 }
  0xee   : > { %p8111_p1 = pnand %p8109_p0, %p8683_p13 }
  0xef   : > { %p8118_p9 = por %p8117_p4, %p8116_p3 }
  0xf0   : > { %p8112_p2 = pneg %p8111_p1 }
  0xf2   : > { %p8119_p7 = pnand %p8118_p9, %p8112_p2 }
  0xf4   : > { %8122 = shalt.err (!%p8119_p7)
}
  0xf5   : > { %s9471_s16 = smov 1   ;;  %s9472_s12 = sld [smem:[#allocation55_spill]] }
  0xf6   : > { %s8435_s6 = smov [#allocation19]   ;;  %s8436_s18 = smov [#allocation22]  }
  0xf7   : > { %s968_s11 = sshll.u32 %s8435_s6, 4  ;;  %s995_s4 = sshll.u32 %s8436_s18, 4  ;;  %s969_s11 = int_to_ptr.vmem [resolvable:$true] %s968_s11  ;;  %s996_s4 = int_to_ptr.vmem [resolvable:$true] %s995_s4 }
  0xf8   : > { %s8134_s21 = scalar_lea.vmem %s969_s11, 16  ;;  %s8141_s23 = scalar_lea.vmem %s969_s11, 32 }
  0xf9   : > { %p8135_p8 = scmp.ne.s32.totalorder %s969_s11, %s8134_s21  ;;  %p8142_p10 = scmp.lt.s32.totalorder %s969_s11, %s969_s11 }
  0xfa   : > { %p8143_p11 = scmp.lt.s32.totalorder %s8141_s23, %s8134_s21 }
  0xfb   : > { %7603 = dma.hbm_to_vmem [thread:$0]  (!%p8675_p12), %s9472_s12, 32, %s942_s10, [#allocation15], %s9462_s15, %s9462_s15, %s9471_s16  }
  0xfc   : > { %p8137_p5 = pnand %p8135_p8, %p8683_p13  ;;  %p8144_p0 = por %p8143_p11, %p8142_p10 }
  0xfe   : > { %p8138_p6 = pneg %p8137_p5 }
 0x100   : > { %p8145_p1 = pnand %p8144_p0, %p8138_p6 }
 0x102   : > { %8148 = shalt.err (!%p8145_p1)
}
 0x103   : > { %7609 = dma.hbm_to_vmem [thread:$0]  (!%p8675_p12), %s8534_s27, 16, %s969_s11, [#allocation18]  }
 0x104   : > { %s8160_s15 = scalar_lea.vmem %s996_s4, 32  ;;  %p8168_p9 = scmp.lt.s32.totalorder %s996_s4, %s996_s4 }
 0x105   : > { %p8161_p2 = scmp.ne.s32.totalorder %s996_s4, %s8160_s15  ;;  %p8169_p7 = scmp.lt.s32.totalorder %s8160_s15, %s8160_s15 }
 0x107   : > { %p8163_p3 = pnand %p8161_p2, %p8683_p13  ;;  %p8170_p8 = por %p8169_p7, %p8168_p9 }
 0x109   : > { %p8164_p4 = pneg %p8163_p3 }
 0x10b   : > { %p8171_p5 = pnand %p8170_p8, %p8164_p4 }
 0x10d   : > { %8174 = shalt.err (!%p8171_p5)
}
 0x10e   : > { %s9473_s10 = sld [smem:[#allocation58_spill]]  ;;  %s8437_s3 = smov [#allocation25]  }
 0x10f   : > { %s1022_s16 = sshll.u32 %s8437_s3, 4  ;;  %s8438_s6 = smov [#allocation28]   ;;  %s1023_s16 = int_to_ptr.vmem [resolvable:$true] %s1022_s16 }
 0x110   : > { %s1054_s18 = sshll.u32 %s8438_s6, 4  ;;  %s8186_s11 = scalar_lea.vmem %s1023_s16, 16  ;;  %s1055_s18 = int_to_ptr.vmem [resolvable:$true] %s1054_s18 }
 0x111   : > { %p8187_p6 = scmp.ne.s32.totalorder %s1023_s16, %s8186_s11  ;;  %s8193_s21 = scalar_lea.vmem %s1023_s16, 32 }
 0x112   : > { %p8194_p0 = scmp.lt.s32.totalorder %s1023_s16, %s1023_s16  ;;  %p8195_p1 = scmp.lt.s32.totalorder %s8193_s21, %s8186_s11 }
 0x113   : > { %p8189_p10 = pnand %p8187_p6, %p8683_p13 }
 0x114   : > { %7615 = dma.hbm_to_vmem [thread:$0]  (!%p8675_p12), %s9473_s10, 32, %s996_s4, [#allocation21]  }
 0x115   : > { %p8190_p11 = pneg %p8189_p10  ;;  %p8196_p2 = por %p8195_p1, %p8194_p0 }
 0x117   : > { %p8197_p3 = pnand %p8196_p2, %p8190_p11 }
 0x119   : > { %8200 = shalt.err (!%p8197_p3)
}
 0x11a   : > { %s9474_s4 = sld [smem:[#allocation61_spill]]  ;;  %s8212_s23 = scalar_lea.vmem %s1055_s18, 24576 }
 0x11b   : > { %p8213_p4 = scmp.ne.s32.totalorder %s1055_s18, %s8212_s23  ;;  %p8220_p8 = scmp.lt.s32.totalorder %s1055_s18, %s1055_s18 }
 0x11c   : > { %p8221_p5 = scmp.lt.s32.totalorder %s8212_s23, %s8212_s23 }
 0x11d   : > { %p8215_p9 = pnand %p8213_p4, %p8683_p13 }
 0x11e   : > { %p8222_p6 = por %p8221_p5, %p8220_p8 }
 0x11f   : > { %p8216_p7 = pneg %p8215_p9 }
 0x120   : > { %7621 = dma.hbm_to_vmem [thread:$0]  (!%p8675_p12), %s9474_s4, 16, %s1023_s16, [#allocation24]  }
 0x121   : > { %p8223_p10 = pnand %p8222_p6, %p8216_p7 }
 0x123   : > { %8226 = shalt.err (!%p8223_p10)
}
 0x124   : > { %s8439_s15 = smov 768   ;;  %s9475_s10 = sld [smem:[#allocation66_spill]] }
 0x125   : > { %s8440_s3 = smov 48   ;;  %p9476_p11 = scmp.ne.s32.totalorder %s9456_s26, 0 }
 0x126   : > { %p9477_p0 = scmp.eq.s32.totalorder (!%p9476_p11), %s8637_s7, 0 }
 0x127   : > { %1087 = sbr.rel (%p9476_p11) target bundleno = 4062 (0xfde), region = 136 }
 0x12a   : > { %7627 = dma.hbm_to_vmem [thread:$0]  (!%p8675_p12), %s9475_s10, 24576, %s1055_s18, [#allocation27], %s8439_s15, %s8439_s15, %s8440_s3  }
 0x12c   : > { %8322 = dma.done.wait (%p9477_p0), [#allocation3], 6144   ;;  %p9478_p13 = pmov %p9477_p0 }
 0x12d   : > { %p9479_p1 = pmov %p9477_p0 }
 0x12e   : > { %8324 = vsyncadd (%p9478_p13), [#allocation3], 4294961152 }
 0x12f   : > { %8326 = dma.done.wait (%p9479_p1), [#allocation6], 32800   ;;  %p9480_p2 = pmov %p9477_p0 }
 0x130   : > { %p9481_p3 = pmov %p9477_p0 }
 0x131   : > { %8328 = vsyncadd (%p9480_p2), [#allocation6], 4294934496 }
 0x132   : > { %8330 = dma.done.wait (%p9481_p3), [#allocation9], 96   ;;  %p9482_p12 = pmov %p9477_p0 }
 0x133   : > { %p9483_p4 = pmov %p9477_p0 }
 0x134   : > { %8332 = vsyncadd (%p9482_p12), [#allocation9], 4294967200 }
 0x135   : > { %8334 = dma.done.wait (%p9483_p4), [#allocation12], 4128   ;;  %p9484_p9 = pmov %p9477_p0 }
 0x136   : > { %p9485_p7 = pmov %p9477_p0 }
 0x137   : > { %8336 = vsyncadd (%p9484_p9), [#allocation12], 4294963168 }
 0x138   : > { %8338 = dma.done.wait (%p9485_p7), [#allocation15], 48   ;;  %p9486_p8 = pmov %p9477_p0 }
 0x139   : > { %p9487_p5 = pmov %p9477_p0 }
 0x13a   : > { %8340 = vsyncadd (%p9486_p8), [#allocation15], 4294967248 }
 0x13b   : > { %8342 = dma.done.wait (%p9487_p5), [#allocation18], 4112   ;;  %p9488_p6 = pmov %p9477_p0 }
 0x13c   : > { %p9489_p10 = pmov %p9477_p0 }
 0x13d   : > { %8344 = vsyncadd (%p9488_p6), [#allocation18], 4294963184 }
 0x13e   : > { %8346 = dma.done.wait (%p9489_p10), [#allocation21], 4128   ;;  %p9490_p11 = pmov %p9477_p0 }
 0x140   : > { %8348 = vsyncadd (%p9490_p11), [#allocation21], 4294963168 }
 0x141   : > { %8350 = dma.done.wait (%p9477_p0), [#allocation24], 4112   ;;  %p9491_p13 = pmov %p9477_p0 }
 0x142   : > { %p9492_p1 = pmov %p9477_p0 }
 0x143   : > { %8352 = vsyncadd (%p9491_p13), [#allocation24], 4294963184 }
 0x144   : > { %8354 = dma.done.wait (%p9492_p1), [#allocation27], 40960   ;;  %p9493_p2 = pmov %p9477_p0 }
 0x145   : > { %p1248_p3 = scmp.lt.s32.totalorder %s8637_s7, 1  ;;  %v8441_v0 = vmov 0.0   ;;  %vm1326_vm0 = vcmask 1043456   ;;  %v1302_v1 = vld [vmem:[#allocation2 + $0x128] sm:$0xf]  ;;  %s9494_s26 = sld [smem:[#allocation44_spill]] }
 0x146   : > { %8356 = vsyncadd (%p9493_p2), [#allocation27], 4294926336  ;;  %1427 = vmatprep.mubr.f32.mxu0 %v8441_v0  ;;  %1516 = vmatprep.mubr.f32.mxu1 %v8441_v0  ;;  %v1304_v2 = vld [vmem:[#allocation2 + $0x138] sm:$0xf]  ;;  %v1301_v3 = vld [vmem:[#allocation2 + $0x120] sm:$0xf] }
 0x147   : > { %s8843_s28 = scalar_select %p1248_p3, %s8637_s7, 1  ;;  %7147 = vmatprep.subr.msk.mxu0 %vm1326_vm0, %v1302_v1  ;;  %7153 = vmatprep.subr.msk.mxu1 %vm1326_vm0, %v1304_v2  ;;  %v1303_v4 = vld [vmem:[#allocation2 + $0x130] sm:$0xf]  ;;  %v1290_v5 = vld [vmem:[#allocation2 + $0xc8] sm:$0xff]  ;;  %v1292_v6 = vld [vmem:[#allocation2 + $0xd8] sm:$0xff]  ;;  %vm1313_vm1 = vcmask 228352  }
 0x148   : > { %7148 = vmatpush1.msk.msra.mxu0 %vm1326_vm0, %v1301_v3  ;;  %7154 = vmatpush1.msk.msra.mxu1 %vm1326_vm0, %v1303_v4  ;;  %v1289_v7 = vld [vmem:[#allocation2 + $0xc0] sm:$0xff]  ;;  %v1291_v8 = vld [vmem:[#allocation2 + $0xd0] sm:$0xff]  ;;  %v1278_v9 = vld [vmem:[#allocation2 + $0x68] sm:$0xff]  ;;  %s9495_s6 = sld [smem:[#allocation46_spill]]  ;;  %vm3059_vm6 = vcmask 97280   ;;  %vm8442_vm9 = vmmov 0  }
 0x149   : > { %s9417_s2 = sshll.u32 %s8843_s28, 5  ;;  %1389 = vmatprep.subr.mxu0 %v1290_v5  ;;  %1478 = vmatprep.subr.mxu1 %v1292_v6  ;;  %v1280_v10 = vld [vmem:[#allocation2 + $0x78] sm:$0xff]  ;;  %v1277_v11 = vld [vmem:[#allocation2 + $0x60] sm:$0xff]  ;;  %v1279_v12 = vld [vmem:[#allocation2 + $0x70] sm:$0xff]  ;;  %s9496_s18 = sld [smem:[#allocation49_spill]]  ;;  %vm3550_vm10 = vcmask 1044480  }
 0x14a   : > { %1390 = vmatpush1.msra.mxu0 %v1289_v7  ;;  %1479 = vmatpush1.msra.mxu1 %v1291_v8  ;;  %v1266_v13 = vld [vmem:[#allocation2 + $0x8] sm:$0xff]  ;;  %v1268_v14 = vld [vmem:[#allocation2 + $0x18] sm:$0xff]  ;;  %v1265_v15 = vld [vmem:[#allocation2] sm:$0xff]  ;;  %s9497_s11 = sld [smem:[#allocation52_spill]]  ;;  %vm3546_vm11 = vcmask 39936   ;;  %vm3821_vm13 = vcmask 1041408  }
 0x14b   : > { %s8853_s16 = scalar_lea.vmem %s9494_s26, %s9417_s2  ;;  %1391 = vmatprep.subr.mxu0 %v1278_v9  ;;  %1480 = vmatprep.subr.mxu1 %v1280_v10  ;;  %v1267_v16 = vld [vmem:[#allocation2 + $0x10] sm:$0xff]  ;;  %v1306_v18 = vld [vmem:[#allocation2 + $0x148] sm:$0xf]  ;;  %v1308_v19 = vld [vmem:[#allocation2 + $0x158] sm:$0xf]  ;;  %s9498_s21 = sld [smem:[#allocation53_spill]] }
 0x14c   : > { %1392 = vmatpush1.msra.mxu0 %v1277_v11  ;;  %1481 = vmatpush1.msra.mxu1 %v1279_v12  ;;  %v8856_v17 = vld [vmem:[%s8853_s16] sm:$0xff]  ;;  %v1307_v21 = vld [vmem:[#allocation2 + $0x150] sm:$0xf]  ;;  %v8865_v22 = vld [vmem:[%s8853_s16 + $0x8] sm:$0xff]  ;;  %vm3817_vm14 = vcmask 15360   ;;  %s9139_s4 = sand.u32 1, %s8371_s1  }
 0x14d   : > { %1393 = vmatprep.subr.mxu0 %v1266_v13  ;;  %1482 = vmatprep.subr.mxu1 %v1268_v14  ;;  %v1305_v20 = vld [vmem:[#allocation2 + $0x140] sm:$0xf]  ;;  %v1294_v23 = vld [vmem:[#allocation2 + $0xe8] sm:$0xff]  ;;  %v1296_v24 = vld [vmem:[#allocation2 + $0xf8] sm:$0xff]  ;;  %vm4239_vm15 = vcmask 114688   ;;  %s9419_s23 = scalar_lea.vmem [#allocation29], %s9139_s4 }
 0x14e   : > { %1394 = vmatpush1.msra.mxu0 %v1265_v15  ;;  %1483 = vmatpush1.msra.mxu1 %v1267_v16  ;;  %v1293_v25 = vld [vmem:[#allocation2 + $0xe0] sm:$0xff]  ;;  %v1295_v26 = vld [vmem:[#allocation2 + $0xf0] sm:$0xff]  ;;  %v1282_v28 = vld [vmem:[#allocation2 + $0x88] sm:$0xff]  ;;  %s9499_s15 = sld [smem:[#allocation45_spill]]  ;;  %s1234_s3 = scalar_lea.vmem [#allocation30], %s9139_s4 }
 0x14f   : > { %7149 = vmatmul.mubr.msk.f32.vlgmr.msra.gmra.mxu0 %vm1313_vm1, %v8856_v17  ;;  %7155 = vmatmul.mubr.msk.f32.vlgmr.msra.gmra.mxu1 %vm1313_vm1, %v8856_v17  ;;  %v8878_v27 = vld [vmem:[%s8853_s16 + $0x10] sm:$0xff]  ;;  %v1284_v29 = vld [vmem:[#allocation2 + $0x98] sm:$0xff]  ;;  %v1281_v30 = vld [vmem:[#allocation2 + $0x80] sm:$0xff]  ;;  %s9500_s10 = sld [smem:[#allocation56_spill]]  ;;  %s6716_s2 = sand.u32 1, %s8637_s7  }
 0x150   : > { %1433 = vmatprep.mubr.f32.mxu0 %v8441_v0  ;;  %1522 = vmatprep.mubr.f32.mxu1 %v8441_v0  ;;  %v1283_v31 = vld [vmem:[#allocation2 + $0x90] sm:$0xff]  ;;  %v8887_v32 = vld [vmem:[%s8853_s16 + $0x18] sm:$0xf]  ;;  %v1270_v33 = vld [vmem:[#allocation2 + $0x28] sm:$0xff]  ;;  %s9418_s16 = scalar_lea.vmem [#allocation32], %s9139_s4  ;;  %s9319_s9 = scalar_lea.sflag [#allocation31], %s6716_s2 }
 0x151   : > { %7159 = vmatprep.subr.msk.mxu0 %vm1326_vm0, %v1306_v18  ;;  %7165 = vmatprep.subr.msk.mxu1 %vm1326_vm0, %v1308_v19  ;;  %v1272_v34 = vld [vmem:[#allocation2 + $0x38] sm:$0xff]  ;;  %v1269_v35 = vld [vmem:[#allocation2 + $0x20] sm:$0xff]  ;;  %v1271_v36 = vld [vmem:[#allocation2 + $0x30] sm:$0xff]  ;;  %p9505_p4 = scmp.ne.s32.totalorder %s9453_s22, 0 }
 0x152   : > { %7160 = vmatpush1.msk.msra.mxu0 %vm1326_vm0, %v1305_v20  ;;  %7166 = vmatpush1.msk.msra.mxu1 %vm1326_vm0, %v1307_v21  ;;  %v1310_v37 = vld [vmem:[#allocation2 + $0x168] sm:$0xf]  ;;  %v1312_v38 = vld [vmem:[#allocation2 + $0x178] sm:$0xf]  ;;  %v1309_v39 = vld [vmem:[#allocation2 + $0x160] sm:$0xf] }
 0x153   : > { %7150 = vmatmul.mubr.msk.f32.gmra.mxu0 %vm1313_vm1, %v8865_v22  ;;  %7156 = vmatmul.mubr.msk.f32.gmra.mxu1 %vm1313_vm1, %v8865_v22  ;;  %v1311_v40 = vld [vmem:[#allocation2 + $0x170] sm:$0xf]  ;;  %v1298_v41 = vld [vmem:[#allocation2 + $0x108] sm:$0xff]  ;;  %v1300_v42 = vld [vmem:[#allocation2 + $0x118] sm:$0xff] }
 0x154   : > { %1439 = vmatprep.mubr.f32.mxu0 %v8441_v0  ;;  %1528 = vmatprep.mubr.f32.mxu1 %v8441_v0  ;;  %v1297_v43 = vld [vmem:[#allocation2 + $0x100] sm:$0xff]  ;;  %v1299_v44 = vld [vmem:[#allocation2 + $0x110] sm:$0xff]  ;;  %v1286_v45 = vld [vmem:[#allocation2 + $0xa8] sm:$0xff]  ;;  %s1255_s26 = scalar_lea.vmem %s9499_s15, %s8843_s28  ;;  %s9502_s15 = sld [smem:[#allocation62_spill]] }
 0x155   : > { %1567 = vmatprep.subr.mxu0 %v1294_v23  ;;  %1656 = vmatprep.subr.mxu1 %v1296_v24  ;;  %v1288_v46 = vld [vmem:[#allocation2 + $0xb8] sm:$0xff]  ;;  %v1285_v47 = vld [vmem:[#allocation2 + $0xa0] sm:$0xff]  ;;  %v1287_v48 = vld [vmem:[#allocation2 + $0xb0] sm:$0xff] }
 0x156   : > { %1568 = vmatpush1.msra.mxu0 %v1293_v25  ;;  %1657 = vmatpush1.msra.mxu1 %v1295_v26  ;;  %v1274_v49 = vld [vmem:[#allocation2 + $0x48] sm:$0xff]  ;;  %v1276_v50 = vld [vmem:[#allocation2 + $0x58] sm:$0xff]  ;;  %v1273_v51 = vld [vmem:[#allocation2 + $0x40] sm:$0xff] }
 0x157   : > { %7151 = vmatmul.mubr.msk.f32.gmra.mxu0 %vm1313_vm1, %v8878_v27  ;;  %7157 = vmatmul.mubr.msk.f32.gmra.mxu1 %vm1313_vm1, %v8878_v27  ;;  %v1275_v52 = vld [vmem:[#allocation2 + $0x50] sm:$0xff]  ;;  %v1897_v13 = vld [vmem:[%s9495_s6] sm:$0xff]  ;;  %v7184_v18 = vld [vmem:[%s9495_s6 + $0x18] sm:$0xf] }
 0x158   : > { %1445 = vmatprep.mubr.f32.mxu0 %v8441_v0  ;;  %1534 = vmatprep.mubr.f32.mxu1 %v8441_v0  ;;  %v7183_v12 = vld [vmem:[%s9495_s6 + $0x10] sm:$0xff]  ;;  %v1898_v19 = vld [vmem:[%s9495_s6 + $0x8] sm:$0xf] }
 0x159   : > { %1569 = vmatprep.subr.mxu0 %v1282_v28  ;;  %1658 = vmatprep.subr.mxu1 %v1284_v29 }
 0x15a   : > { %1570 = vmatpush1.msra.mxu0 %v1281_v30  ;;  %1659 = vmatpush1.msra.mxu1 %v1283_v31 }
 0x15b   : > { %7152 = vmatmul.mubr.msk.f32.gmra.mxu0 %vm1313_vm1, %v8887_v32  ;;  %7158 = vmatmul.mubr.msk.f32.gmra.mxu1 %vm1313_vm1, %v8887_v32 }
 0x15c   : > { %1571 = vmatprep.subr.mxu0 %v1270_v33  ;;  %1660 = vmatprep.subr.mxu1 %v1272_v34  ;;  %v7199_v33 = vld [vmem:[%s9495_s6 + $0x30] sm:$0xff] }
 0x15d   : > { %1572 = vmatpush1.msra.mxu0 %v1269_v35  ;;  %1605 = vmatprep.mubr.f32.mxu0 %v8441_v0 }
 0x15e   : > { %1661 = vmatpush1.msra.mxu1 %v1271_v36  ;;  %1694 = vmatprep.mubr.f32.mxu1 %v8441_v0 }
 0x15f   : > { %7161 = vmatmul.mubr.msk.f32.vlgmr.msra.gmra.mxu0 %vm1313_vm1, %v8856_v17  ;;  %7167 = vmatmul.mubr.msk.f32.vlgmr.msra.gmra.mxu1 %vm1313_vm1, %v8856_v17 }
 0x160   : > { %1611 = vmatprep.mubr.f32.mxu0 %v8441_v0  ;;  %1700 = vmatprep.mubr.f32.mxu1 %v8441_v0 }
 0x161   : > { %7171 = vmatprep.subr.msk.mxu0 %vm1326_vm0, %v1310_v37  ;;  %7177 = vmatprep.subr.msk.mxu1 %vm1326_vm0, %v1312_v38  ;;  %v7194_v38 = vld [vmem:[%s9495_s6 + $0x28] sm:$0xf] }
 0x162   : > { %7172 = vmatpush1.msk.msra.mxu0 %vm1326_vm0, %v1309_v39  ;;  %7178 = vmatpush1.msk.msra.mxu1 %vm1326_vm0, %v1311_v40  ;;  %v7200_v39 = vld [vmem:[%s9495_s6 + $0x38] sm:$0xf] }
 0x163   : > { %7162 = vmatmul.mubr.msk.f32.gmra.mxu0 %vm1313_vm1, %v8865_v22  ;;  %7168 = vmatmul.mubr.msk.f32.gmra.mxu1 %vm1313_vm1, %v8865_v22 }
 0x164   : > { %1617 = vmatprep.mubr.f32.mxu0 %v8441_v0  ;;  %1706 = vmatprep.mubr.f32.mxu1 %v8441_v0 }
 0x165   : > { %1745 = vmatprep.subr.mxu0 %v1298_v41  ;;  %1834 = vmatprep.subr.mxu1 %v1300_v42 }
 0x166   : > { %1746 = vmatpush1.msra.mxu0 %v1297_v43  ;;  %1835 = vmatpush1.msra.mxu1 %v1299_v44 }
 0x167   : > { %7163 = vmatmul.mubr.msk.f32.gmra.mxu0 %vm1313_vm1, %v8878_v27  ;;  %7169 = vmatmul.mubr.msk.f32.gmra.mxu1 %vm1313_vm1, %v8878_v27 }
 0x168   : > { %1623 = vmatprep.mubr.f32.mxu0 %v8441_v0  ;;  %1712 = vmatprep.mubr.f32.mxu1 %v8441_v0 }
 0x169   : > { %1747 = vmatprep.subr.mxu0 %v1286_v45  ;;  %1836 = vmatprep.subr.mxu1 %v1288_v46  ;;  %v7205_v46 = vld [vmem:[%s9495_s6 + $0x40] sm:$0xff] }
 0x16a   : > { %1748 = vmatpush1.msra.mxu0 %v1285_v47  ;;  %1837 = vmatpush1.msra.mxu1 %v1287_v48  ;;  %v7211_v47 = vld [vmem:[%s9495_s6 + $0x50] sm:$0xff] }
 0x16b   : > { %7164 = vmatmul.mubr.msk.f32.gmra.mxu0 %vm1313_vm1, %v8887_v32  ;;  %7170 = vmatmul.mubr.msk.f32.gmra.mxu1 %vm1313_vm1, %v8887_v32  ;;  %v2613_v48 = vld [vmem:[#allocation7 + $0x3c8] sm:$0xff] }
 0x16c   : > { %1749 = vmatprep.subr.mxu0 %v1274_v49  ;;  %1838 = vmatprep.subr.mxu1 %v1276_v50  ;;  %v2615_v49 = vld [vmem:[#allocation7 + $0x3d8] sm:$0xff]  ;;  %v2612_v50 = vld [vmem:[#allocation7 + $0x3c0] sm:$0xff] }
 0x16d   : > { %1750 = vmatpush1.msra.mxu0 %v1273_v51  ;;  %1783 = vmatprep.mubr.f32.mxu0 %v8441_v0  ;;  %v2614_v51 = vld [vmem:[#allocation7 + $0x3d0] sm:$0xff] }
 0x16e   : > { %1839 = vmatpush1.msra.mxu1 %v1275_v52  ;;  %1872 = vmatprep.mubr.f32.mxu1 %v8441_v0  ;;  %v7206_v52 = vld [vmem:[%s9495_s6 + $0x48] sm:$0xf] }
 0x16f   : > { %7173 = vmatmul.mubr.msk.f32.vlgmr.msra.gmra.mxu0 %vm1313_vm1, %v8856_v17  ;;  %7179 = vmatmul.mubr.msk.f32.vlgmr.msra.gmra.mxu1 %vm1313_vm1, %v8856_v17 }
 0x170   : > { %1789 = vmatprep.mubr.f32.mxu0 %v8441_v0  ;;  %1878 = vmatprep.mubr.f32.mxu1 %v8441_v0 }
 0x173   : > { %7174 = vmatmul.mubr.msk.f32.gmra.mxu0 %vm1313_vm1, %v8865_v22  ;;  %7180 = vmatmul.mubr.msk.f32.gmra.mxu1 %vm1313_vm1, %v8865_v22 }
 0x174   : > { %1795 = vmatprep.mubr.f32.mxu0 %v8441_v0  ;;  %1884 = vmatprep.mubr.f32.mxu1 %v8441_v0 }
 0x177   : > { %7175 = vmatmul.mubr.msk.f32.gmra.mxu0 %vm1313_vm1, %v8878_v27  ;;  %7181 = vmatmul.mubr.msk.f32.gmra.mxu1 %vm1313_vm1, %v8878_v27 }
 0x178   : > { %1801 = vmatprep.mubr.f32.mxu0 %v8441_v0  ;;  %1890 = vmatprep.mubr.f32.mxu1 %v8441_v0 }
 0x17b   : > { %7176 = vmatmul.mubr.msk.f32.gmra.mxu0 %vm1313_vm1, %v8887_v32  ;;  %7182 = vmatmul.mubr.msk.f32.gmra.mxu1 %vm1313_vm1, %v8887_v32  ;;  %v7193_v32 = vld [vmem:[%s9495_s6 + $0x20] sm:$0xff] }
 0x17c   : > { %1978 = vmatprep.mubr.f32.mxu0 %v8441_v0  ;;  %2067 = vmatprep.mubr.f32.mxu1 %v8441_v0 }
 0x20f   : > { %v1429_v53 = vpop.f32.mrf.mxu0  ;;  %v1518_v54 = vpop.f32.mrf.mxu1 }
 0x211   : > { %v1431_v55 = vpop.f32.mrf.mxu0  ;;  %v1520_v56 = vpop.f32.mrf.mxu1 }
 0x213   : > { %v1435_v57 = vpop.f32.mrf.mxu0  ;;  %v1524_v58 = vpop.f32.mrf.mxu1 }
 0x215   : > { %v1437_v59 = vpop.f32.mrf.mxu0  ;;  %v1526_v60 = vpop.f32.mrf.mxu1 }
 0x217   : > { %v1441_v61 = vpop.f32.mrf.mxu0  ;;  %v1530_v62 = vpop.f32.mrf.mxu1 }
 0x219   : > { %v1443_v63 = vpop.f32.mrf.mxu0  ;;  %v1532_v1 = vpop.f32.mrf.mxu1 }
 0x21b   : > { %v1447_v2 = vpop.f32.mrf.mxu0  ;;  %v1536_v3 = vpop.f32.mrf.mxu1 }
 0x21d   : > { %v1449_v4 = vpop.f32.mrf.mxu0  ;;  %v1538_v5 = vpop.f32.mrf.mxu1 }
 0x21e   : > { %7185 = vmatprep.subr.msk.mxu0 %vm1326_vm0, %v1538_v5  ;;  %7189 = vmatprep.subr.msk.mxu1 %vm1326_vm0, %v1449_v4  ;;  %v2583_v4 = vld [vmem:[#allocation7 + $0x2d8] sm:$0xff]  ;;  %v2580_v5 = vld [vmem:[#allocation7 + $0x2c0] sm:$0xff] }
 0x21f   : > { %v8949_v6 = vpop.f32.mrf.mxu0  ;;  %v8951_v7 = vpop.f32.mrf.mxu1  ;;  %7186 = vmatpush1.msk.msra.mxu0 %vm1326_vm0, %v1536_v3  ;;  %7190 = vmatpush1.msk.msra.mxu1 %vm1326_vm0, %v1447_v2  ;;  %v2590_v2 = vld [vmem:[#allocation7 + $0x310] sm:$0xff]  ;;  %v2581_v3 = vld [vmem:[#allocation7 + $0x2c8] sm:$0xff] }
 0x220   : > { %1940 = vmatprep.subr.mxu0 %v1532_v1  ;;  %2029 = vmatprep.subr.mxu1 %v1443_v63  ;;  %v2591_v63 = vld [vmem:[#allocation7 + $0x318] sm:$0xff]  ;;  %v2588_v1 = vld [vmem:[#allocation7 + $0x300] sm:$0xff] }
 0x221   : > { %v1609_v8 = vpop.f32.mrf.mxu0  ;;  %v1698_v9 = vpop.f32.mrf.mxu1  ;;  %1941 = vmatpush1.msra.mxu0 %v1530_v62  ;;  %2030 = vmatpush1.msra.mxu1 %v1441_v61  ;;  %v2598_v61 = vld [vmem:[#allocation7 + $0x350] sm:$0xff]  ;;  %v2589_v62 = vld [vmem:[#allocation7 + $0x308] sm:$0xff] }
 0x222   : > { %1942 = vmatprep.subr.mxu0 %v1526_v60  ;;  %2031 = vmatprep.subr.mxu1 %v1437_v59  ;;  %v2599_v59 = vld [vmem:[#allocation7 + $0x358] sm:$0xff]  ;;  %v2596_v60 = vld [vmem:[#allocation7 + $0x340] sm:$0xff] }
 0x223   : > { %v1613_v10 = vpop.f32.mrf.mxu0  ;;  %v1702_v11 = vpop.f32.mrf.mxu1  ;;  %1943 = vmatpush1.msra.mxu0 %v1524_v58  ;;  %2032 = vmatpush1.msra.mxu1 %v1435_v57  ;;  %v2606_v57 = vld [vmem:[#allocation7 + $0x390] sm:$0xff]  ;;  %v2597_v58 = vld [vmem:[#allocation7 + $0x348] sm:$0xff] }
 0x224   : > { %1944 = vmatprep.subr.mxu0 %v1520_v56  ;;  %2033 = vmatprep.subr.mxu1 %v1431_v55  ;;  %v2607_v55 = vld [vmem:[#allocation7 + $0x398] sm:$0xff]  ;;  %v2604_v56 = vld [vmem:[#allocation7 + $0x380] sm:$0xff] }
 0x225   : > { %v1615_v14 = vpop.f32.mrf.mxu0  ;;  %v1704_v15 = vpop.f32.mrf.mxu1  ;;  %1945 = vmatpush1.msra.mxu0 %v1518_v54  ;;  %2034 = vmatpush1.msra.mxu1 %v1429_v53  ;;  %v7212_v53 = vld [vmem:[%s9495_s6 + $0x58] sm:$0xf]  ;;  %v2605_v54 = vld [vmem:[#allocation7 + $0x388] sm:$0xff]  ;;  %s6751_s6 = sshll.u32 %s1234_s3, 4  ;;  %s6752_s6 = int_to_ptr.vmem [resolvable:$true] %s6751_s6 }
 0x226   : > { %7187 = vmatmul.mubr.msk.f32.vlgmr.msra.gmra.mxu0 %vm1313_vm1, %v7183_v12  ;;  %7191 = vmatmul.mubr.msk.f32.vlgmr.msra.gmra.mxu1 %vm1313_vm1, %v1897_v13  ;;  %v2567_v12 = vld [vmem:[#allocation7 + $0x258] sm:$0xff]  ;;  %v2564_v13 = vld [vmem:[#allocation7 + $0x240] sm:$0xff] }
 0x227   : > { %v1619_v16 = vpop.f32.mrf.mxu0  ;;  %v1708_v17 = vpop.f32.mrf.mxu1  ;;  %1984 = vmatprep.mubr.f32.mxu0 %v8441_v0  ;;  %2073 = vmatprep.mubr.f32.mxu1 %v8441_v0 }
 0x229   : > { %v1621_v20 = vpop.f32.mrf.mxu0  ;;  %v1710_v21 = vpop.f32.mrf.mxu1 }
 0x22a   : > { %7188 = vmatmul.mubr.msk.f32.gmra.mxu0 %vm1313_vm1, %v7184_v18  ;;  %7192 = vmatmul.mubr.msk.f32.gmra.mxu1 %vm1313_vm1, %v1898_v19  ;;  %v2558_v18 = vld [vmem:[#allocation7 + $0x210] sm:$0xff]  ;;  %v2549_v19 = vld [vmem:[#allocation7 + $0x1c8] sm:$0xff] }
 0x22b   : > { %v1625_v22 = vpop.f32.mrf.mxu0  ;;  %v1714_v23 = vpop.f32.mrf.mxu1  ;;  %2159 = vmatprep.mubr.f32.mxu0 %v8441_v0  ;;  %2255 = vmatprep.mubr.f32.mxu1 %v8441_v0 }
 0x22d   : > { %v1627_v24 = vpop.f32.mrf.mxu0  ;;  %v1716_v25 = vpop.f32.mrf.mxu1 }
 0x22e   : > { %7195 = vmatprep.subr.msk.mxu0 %vm1326_vm0, %v1627_v24  ;;  %7201 = vmatprep.subr.msk.mxu1 %vm1326_vm0, %v1716_v25  ;;  %v2543_v24 = vld [vmem:[#allocation7 + $0x198] sm:$0xff]  ;;  %v2540_v25 = vld [vmem:[#allocation7 + $0x180] sm:$0xff] }
 0x22f   : > { %v1785_v26 = vpop.f32.mrf.mxu0  ;;  %v1874_v27 = vpop.f32.mrf.mxu1  ;;  %7196 = vmatpush1.msk.msra.mxu0 %vm1326_vm0, %v1625_v22  ;;  %7202 = vmatpush1.msk.msra.mxu1 %vm1326_vm0, %v1714_v23  ;;  %v2550_v22 = vld [vmem:[#allocation7 + $0x1d0] sm:$0xff]  ;;  %v2541_v23 = vld [vmem:[#allocation7 + $0x188] sm:$0xff] }
 0x230   : > { %2121 = vmatprep.subr.mxu0 %v1621_v20  ;;  %2217 = vmatprep.subr.mxu1 %v1710_v21  ;;  %v2551_v20 = vld [vmem:[#allocation7 + $0x1d8] sm:$0xff]  ;;  %v2548_v21 = vld [vmem:[#allocation7 + $0x1c0] sm:$0xff] }
 0x231   : > { %v1787_v28 = vpop.f32.mrf.mxu0  ;;  %v1876_v29 = vpop.f32.mrf.mxu1  ;;  %2122 = vmatpush1.msra.mxu0 %v1619_v16  ;;  %2218 = vmatpush1.msra.mxu1 %v1708_v17  ;;  %v2559_v16 = vld [vmem:[#allocation7 + $0x218] sm:$0xff]  ;;  %v2556_v17 = vld [vmem:[#allocation7 + $0x200] sm:$0xff] }
 0x232   : > { %2123 = vmatprep.subr.mxu0 %v1615_v14  ;;  %2219 = vmatprep.subr.mxu1 %v1704_v15  ;;  %v2566_v14 = vld [vmem:[#allocation7 + $0x250] sm:$0xff]  ;;  %v2557_v15 = vld [vmem:[#allocation7 + $0x208] sm:$0xff] }
 0x233   : > { %v1791_v30 = vpop.f32.mrf.mxu0  ;;  %v1880_v31 = vpop.f32.mrf.mxu1  ;;  %2124 = vmatpush1.msra.mxu0 %v1613_v10  ;;  %2220 = vmatpush1.msra.mxu1 %v1702_v11  ;;  %v2574_v10 = vld [vmem:[#allocation7 + $0x290] sm:$0xff]  ;;  %v2565_v11 = vld [vmem:[#allocation7 + $0x248] sm:$0xff] }
 0x234   : > { %2125 = vmatprep.subr.mxu0 %v1609_v8  ;;  %2221 = vmatprep.subr.mxu1 %v1698_v9  ;;  %v2575_v8 = vld [vmem:[#allocation7 + $0x298] sm:$0xff]  ;;  %v2572_v9 = vld [vmem:[#allocation7 + $0x280] sm:$0xff] }
 0x235   : > { %v1793_v34 = vpop.f32.mrf.mxu0  ;;  %v1882_v35 = vpop.f32.mrf.mxu1  ;;  %2126 = vmatpush1.msra.mxu0 %v8949_v6  ;;  %2222 = vmatpush1.msra.mxu1 %v8951_v7  ;;  %v2582_v6 = vld [vmem:[#allocation7 + $0x2d0] sm:$0xff]  ;;  %v2573_v7 = vld [vmem:[#allocation7 + $0x288] sm:$0xff] }
 0x236   : > { %7197 = vmatmul.mubr.msk.f32.vlgmr.msra.gmra.mxu0 %vm1313_vm1, %v7193_v32  ;;  %7203 = vmatmul.mubr.msk.f32.vlgmr.msra.gmra.mxu1 %vm1313_vm1, %v7199_v33  ;;  %v2527_v32 = vld [vmem:[#allocation7 + $0x118] sm:$0xff]  ;;  %v2524_v33 = vld [vmem:[#allocation7 + $0x100] sm:$0xff] }
 0x237   : > { %v1797_v36 = vpop.f32.mrf.mxu0  ;;  %v1886_v37 = vpop.f32.mrf.mxu1  ;;  %2165 = vmatprep.mubr.f32.mxu0 %v8441_v0  ;;  %2261 = vmatprep.mubr.f32.mxu1 %v8441_v0 }
 0x239   : > { %v1799_v40 = vpop.f32.mrf.mxu0  ;;  %v1888_v41 = vpop.f32.mrf.mxu1 }
 0x23a   : > { %7198 = vmatmul.mubr.msk.f32.gmra.mxu0 %vm1313_vm1, %v7194_v38  ;;  %7204 = vmatmul.mubr.msk.f32.gmra.mxu1 %vm1313_vm1, %v7200_v39  ;;  %v2518_v38 = vld [vmem:[#allocation7 + $0xd0] sm:$0xff]  ;;  %v2509_v39 = vld [vmem:[#allocation7 + $0x88] sm:$0xff] }
 0x23b   : > { %v1803_v42 = vpop.f32.mrf.mxu0  ;;  %v1892_v43 = vpop.f32.mrf.mxu1  ;;  %2351 = vmatprep.mubr.f32.mxu0 %v8441_v0  ;;  %2447 = vmatprep.mubr.f32.mxu1 %v8441_v0 }
 0x23d   : > { %v1805_v44 = vpop.f32.mrf.mxu0  ;;  %v1894_v45 = vpop.f32.mrf.mxu1 }
 0x23e   : > { %7207 = vmatprep.subr.msk.mxu0 %vm1326_vm0, %v1805_v44  ;;  %7213 = vmatprep.subr.msk.mxu1 %vm1326_vm0, %v1894_v45  ;;  %v2503_v44 = vld [vmem:[#allocation7 + $0x58] sm:$0xff]  ;;  %v2500_v45 = vld [vmem:[#allocation7 + $0x40] sm:$0xff] }
 0x23f   : > { %7208 = vmatpush1.msk.msra.mxu0 %vm1326_vm0, %v1803_v42  ;;  %7214 = vmatpush1.msk.msra.mxu1 %vm1326_vm0, %v1892_v43  ;;  %v2510_v42 = vld [vmem:[#allocation7 + $0x90] sm:$0xff]  ;;  %v2501_v43 = vld [vmem:[#allocation7 + $0x48] sm:$0xff] }
 0x240   : > { %2313 = vmatprep.subr.mxu0 %v1799_v40  ;;  %2409 = vmatprep.subr.mxu1 %v1888_v41  ;;  %v2511_v40 = vld [vmem:[#allocation7 + $0x98] sm:$0xff]  ;;  %v2508_v41 = vld [vmem:[#allocation7 + $0x80] sm:$0xff] }
 0x241   : > { %2314 = vmatpush1.msra.mxu0 %v1797_v36  ;;  %2410 = vmatpush1.msra.mxu1 %v1886_v37  ;;  %v2519_v36 = vld [vmem:[#allocation7 + $0xd8] sm:$0xff]  ;;  %v2516_v37 = vld [vmem:[#allocation7 + $0xc0] sm:$0xff] }
 0x242   : > { %2315 = vmatprep.subr.mxu0 %v1793_v34  ;;  %2411 = vmatprep.subr.mxu1 %v1882_v35  ;;  %v2526_v34 = vld [vmem:[#allocation7 + $0x110] sm:$0xff]  ;;  %v2517_v35 = vld [vmem:[#allocation7 + $0xc8] sm:$0xff] }
 0x243   : > { %2316 = vmatpush1.msra.mxu0 %v1791_v30  ;;  %2412 = vmatpush1.msra.mxu1 %v1880_v31  ;;  %v2534_v30 = vld [vmem:[#allocation7 + $0x150] sm:$0xff]  ;;  %v2525_v31 = vld [vmem:[#allocation7 + $0x108] sm:$0xff] }
 0x244   : > { %2317 = vmatprep.subr.mxu0 %v1787_v28  ;;  %2413 = vmatprep.subr.mxu1 %v1876_v29  ;;  %v2535_v28 = vld [vmem:[#allocation7 + $0x158] sm:$0xff]  ;;  %v2532_v29 = vld [vmem:[#allocation7 + $0x140] sm:$0xff] }
 0x245   : > { %2318 = vmatpush1.msra.mxu0 %v1785_v26  ;;  %2414 = vmatpush1.msra.mxu1 %v1874_v27  ;;  %v2542_v26 = vld [vmem:[#allocation7 + $0x190] sm:$0xff]  ;;  %v2533_v27 = vld [vmem:[#allocation7 + $0x148] sm:$0xff] }
 0x246   : > { %7209 = vmatmul.mubr.msk.f32.vlgmr.msra.gmra.mxu0 %vm1313_vm1, %v7205_v46  ;;  %7215 = vmatmul.mubr.msk.f32.vlgmr.msra.gmra.mxu1 %vm1313_vm1, %v7211_v47  ;;  %v2502_v46 = vld [vmem:[#allocation7 + $0x50] sm:$0xff]  ;;  %v2493_v47 = vld [vmem:[#allocation7 + $0x8] sm:$0xff] }
 0x247   : > { %2357 = vmatprep.mubr.f32.mxu0 %v8441_v0  ;;  %2453 = vmatprep.mubr.f32.mxu1 %v8441_v0 }
 0x248   : > { %2748 = vmatprep.subr.mxu0 %v2613_v48  ;;  %2825 = vmatprep.subr.mxu1 %v2615_v49  ;;  %v2495_v48 = vld [vmem:[#allocation7 + $0x18] sm:$0xff]  ;;  %v2492_v49 = vld [vmem:[#allocation7] sm:$0xff] }
 0x249   : > { %2749 = vmatpush1.msra.mxu0 %v2612_v50  ;;  %2826 = vmatpush1.msra.mxu1 %v2614_v51  ;;  %v2494_v50 = vld [vmem:[#allocation7 + $0x10] sm:$0xff]  ;;  %v2741_v51 = vld [vmem:[#allocation7 + $0x7c8] sm:$0xff] }
 0x24a   : > { %7210 = vmatmul.mubr.msk.f32.gmra.mxu0 %vm1313_vm1, %v7206_v52  ;;  %7216 = vmatmul.mubr.msk.f32.gmra.mxu1 %vm1313_vm1, %v7212_v53  ;;  %v2743_v52 = vld [vmem:[#allocation7 + $0x7d8] sm:$0xff]  ;;  %v2740_v53 = vld [vmem:[#allocation7 + $0x7c0] sm:$0xff] }
 0x24b   : > { %2750 = vmatprep.subr.mxu0 %v2605_v54  ;;  %2827 = vmatprep.subr.mxu1 %v2607_v55  ;;  %v2742_v54 = vld [vmem:[#allocation7 + $0x7d0] sm:$0xff]  ;;  %v2733_v55 = vld [vmem:[#allocation7 + $0x788] sm:$0xff] }
 0x24c   : > { %2751 = vmatpush1.msra.mxu0 %v2604_v56  ;;  %2828 = vmatpush1.msra.mxu1 %v2606_v57  ;;  %v2735_v56 = vld [vmem:[#allocation7 + $0x798] sm:$0xff]  ;;  %v2732_v57 = vld [vmem:[#allocation7 + $0x780] sm:$0xff] }
 0x24d   : > { %2752 = vmatprep.subr.mxu0 %v2597_v58  ;;  %2829 = vmatprep.subr.mxu1 %v2599_v59  ;;  %v2734_v58 = vld [vmem:[#allocation7 + $0x790] sm:$0xff]  ;;  %v2725_v59 = vld [vmem:[#allocation7 + $0x748] sm:$0xff] }
 0x24e   : > { %2753 = vmatpush1.msra.mxu0 %v2596_v60  ;;  %2830 = vmatpush1.msra.mxu1 %v2598_v61  ;;  %v2727_v60 = vld [vmem:[#allocation7 + $0x758] sm:$0xff]  ;;  %v2724_v61 = vld [vmem:[#allocation7 + $0x740] sm:$0xff] }
 0x24f   : > { %2754 = vmatprep.subr.mxu0 %v2589_v62  ;;  %2831 = vmatprep.subr.mxu1 %v2591_v63  ;;  %v2726_v62 = vld [vmem:[#allocation7 + $0x750] sm:$0xff]  ;;  %v2717_v63 = vld [vmem:[#allocation7 + $0x708] sm:$0xff] }
 0x250   : > { %2755 = vmatpush1.msra.mxu0 %v2588_v1  ;;  %2832 = vmatpush1.msra.mxu1 %v2590_v2  ;;  %v2719_v1 = vld [vmem:[#allocation7 + $0x718] sm:$0xff]  ;;  %v2716_v2 = vld [vmem:[#allocation7 + $0x700] sm:$0xff] }
 0x251   : > { %2756 = vmatprep.subr.mxu0 %v2581_v3  ;;  %2833 = vmatprep.subr.mxu1 %v2583_v4  ;;  %v2718_v3 = vld [vmem:[#allocation7 + $0x710] sm:$0xff]  ;;  %v2709_v4 = vld [vmem:[#allocation7 + $0x6c8] sm:$0xff] }
 0x252   : > { %2757 = vmatpush1.msra.mxu0 %v2580_v5  ;;  %2834 = vmatpush1.msra.mxu1 %v2582_v6  ;;  %v2711_v5 = vld [vmem:[#allocation7 + $0x6d8] sm:$0xff]  ;;  %v2708_v6 = vld [vmem:[#allocation7 + $0x6c0] sm:$0xff] }
 0x253   : > { %2758 = vmatprep.subr.mxu0 %v2573_v7  ;;  %2835 = vmatprep.subr.mxu1 %v2575_v8  ;;  %v2710_v7 = vld [vmem:[#allocation7 + $0x6d0] sm:$0xff]  ;;  %v2701_v8 = vld [vmem:[#allocation7 + $0x688] sm:$0xff] }
 0x254   : > { %2759 = vmatpush1.msra.mxu0 %v2572_v9  ;;  %2836 = vmatpush1.msra.mxu1 %v2574_v10  ;;  %v2703_v9 = vld [vmem:[#allocation7 + $0x698] sm:$0xff]  ;;  %v2700_v10 = vld [vmem:[#allocation7 + $0x680] sm:$0xff] }
 0x255   : > { %2760 = vmatprep.subr.mxu0 %v2565_v11  ;;  %2837 = vmatprep.subr.mxu1 %v2567_v12  ;;  %v2702_v11 = vld [vmem:[#allocation7 + $0x690] sm:$0xff]  ;;  %v2693_v12 = vld [vmem:[#allocation7 + $0x648] sm:$0xff] }
 0x256   : > { %2761 = vmatpush1.msra.mxu0 %v2564_v13  ;;  %2838 = vmatpush1.msra.mxu1 %v2566_v14  ;;  %v2695_v13 = vld [vmem:[#allocation7 + $0x658] sm:$0xff]  ;;  %v2692_v14 = vld [vmem:[#allocation7 + $0x640] sm:$0xff] }
 0x257   : > { %2762 = vmatprep.subr.mxu0 %v2557_v15  ;;  %2839 = vmatprep.subr.mxu1 %v2559_v16  ;;  %v2694_v15 = vld [vmem:[#allocation7 + $0x650] sm:$0xff]  ;;  %v2685_v16 = vld [vmem:[#allocation7 + $0x608] sm:$0xff] }
 0x258   : > { %2763 = vmatpush1.msra.mxu0 %v2556_v17  ;;  %2840 = vmatpush1.msra.mxu1 %v2558_v18  ;;  %v2687_v17 = vld [vmem:[#allocation7 + $0x618] sm:$0xff]  ;;  %v2684_v18 = vld [vmem:[#allocation7 + $0x600] sm:$0xff] }
 0x259   : > { %2764 = vmatprep.subr.mxu0 %v2549_v19  ;;  %2841 = vmatprep.subr.mxu1 %v2551_v20  ;;  %v2686_v19 = vld [vmem:[#allocation7 + $0x610] sm:$0xff]  ;;  %v2677_v20 = vld [vmem:[#allocation7 + $0x5c8] sm:$0xff] }
 0x25a   : > { %2765 = vmatpush1.msra.mxu0 %v2548_v21  ;;  %2842 = vmatpush1.msra.mxu1 %v2550_v22  ;;  %v2679_v21 = vld [vmem:[#allocation7 + $0x5d8] sm:$0xff]  ;;  %v2676_v22 = vld [vmem:[#allocation7 + $0x5c0] sm:$0xff] }
 0x25b   : > { %2766 = vmatprep.subr.mxu0 %v2541_v23  ;;  %2843 = vmatprep.subr.mxu1 %v2543_v24  ;;  %v2678_v23 = vld [vmem:[#allocation7 + $0x5d0] sm:$0xff]  ;;  %v2669_v24 = vld [vmem:[#allocation7 + $0x588] sm:$0xff] }
 0x25c   : > { %2767 = vmatpush1.msra.mxu0 %v2540_v25  ;;  %2844 = vmatpush1.msra.mxu1 %v2542_v26  ;;  %v2671_v25 = vld [vmem:[#allocation7 + $0x598] sm:$0xff]  ;;  %v2668_v26 = vld [vmem:[#allocation7 + $0x580] sm:$0xff] }
 0x25d   : > { %2768 = vmatprep.subr.mxu0 %v2533_v27  ;;  %2845 = vmatprep.subr.mxu1 %v2535_v28  ;;  %v2670_v27 = vld [vmem:[#allocation7 + $0x590] sm:$0xff]  ;;  %v2661_v28 = vld [vmem:[#allocation7 + $0x548] sm:$0xff] }
 0x25e   : > { %2769 = vmatpush1.msra.mxu0 %v2532_v29  ;;  %2846 = vmatpush1.msra.mxu1 %v2534_v30  ;;  %v2663_v29 = vld [vmem:[#allocation7 + $0x558] sm:$0xff]  ;;  %v2660_v30 = vld [vmem:[#allocation7 + $0x540] sm:$0xff] }
 0x25f   : > { %2770 = vmatprep.subr.mxu0 %v2525_v31  ;;  %2847 = vmatprep.subr.mxu1 %v2527_v32  ;;  %v2662_v31 = vld [vmem:[#allocation7 + $0x550] sm:$0xff]  ;;  %v2653_v32 = vld [vmem:[#allocation7 + $0x508] sm:$0xff] }
 0x260   : > { %2771 = vmatpush1.msra.mxu0 %v2524_v33  ;;  %2848 = vmatpush1.msra.mxu1 %v2526_v34  ;;  %v2655_v33 = vld [vmem:[#allocation7 + $0x518] sm:$0xff]  ;;  %v2652_v34 = vld [vmem:[#allocation7 + $0x500] sm:$0xff] }
 0x261   : > { %2772 = vmatprep.subr.mxu0 %v2517_v35  ;;  %2849 = vmatprep.subr.mxu1 %v2519_v36  ;;  %v2654_v35 = vld [vmem:[#allocation7 + $0x510] sm:$0xff]  ;;  %v2645_v36 = vld [vmem:[#allocation7 + $0x4c8] sm:$0xff] }
 0x262   : > { %2773 = vmatpush1.msra.mxu0 %v2516_v37  ;;  %2850 = vmatpush1.msra.mxu1 %v2518_v38  ;;  %v2647_v37 = vld [vmem:[#allocation7 + $0x4d8] sm:$0xff]  ;;  %v2644_v38 = vld [vmem:[#allocation7 + $0x4c0] sm:$0xff] }
 0x263   : > { %2774 = vmatprep.subr.mxu0 %v2509_v39  ;;  %2851 = vmatprep.subr.mxu1 %v2511_v40  ;;  %v2646_v39 = vld [vmem:[#allocation7 + $0x4d0] sm:$0xff]  ;;  %v2637_v40 = vld [vmem:[#allocation7 + $0x488] sm:$0xff] }
 0x264   : > { %2775 = vmatpush1.msra.mxu0 %v2508_v41  ;;  %2852 = vmatpush1.msra.mxu1 %v2510_v42  ;;  %v2639_v41 = vld [vmem:[#allocation7 + $0x498] sm:$0xff]  ;;  %v2636_v42 = vld [vmem:[#allocation7 + $0x480] sm:$0xff] }
 0x265   : > { %2776 = vmatprep.subr.mxu0 %v2501_v43  ;;  %2853 = vmatprep.subr.mxu1 %v2503_v44  ;;  %v2638_v43 = vld [vmem:[#allocation7 + $0x490] sm:$0xff]  ;;  %v2629_v44 = vld [vmem:[#allocation7 + $0x448] sm:$0xff] }
 0x266   : > { %2777 = vmatpush1.msra.mxu0 %v2500_v45  ;;  %2854 = vmatpush1.msra.mxu1 %v2502_v46  ;;  %v2631_v45 = vld [vmem:[#allocation7 + $0x458] sm:$0xff]  ;;  %v2628_v46 = vld [vmem:[#allocation7 + $0x440] sm:$0xff] }
 0x267   : > { %2778 = vmatprep.subr.mxu0 %v2493_v47  ;;  %2855 = vmatprep.subr.mxu1 %v2495_v48  ;;  %v2630_v47 = vld [vmem:[#allocation7 + $0x450] sm:$0xff]  ;;  %v2621_v48 = vld [vmem:[#allocation7 + $0x408] sm:$0xff] }
 0x268   : > { %2779 = vmatpush1.msra.mxu0 %v2492_v49  ;;  %2856 = vmatpush1.msra.mxu1 %v2494_v50  ;;  %v2623_v49 = vld [vmem:[#allocation7 + $0x418] sm:$0xff]  ;;  %v2620_v50 = vld [vmem:[#allocation7 + $0x400] sm:$0xff] }
 0x269   : > { %2780 = vmatprep.subr.mxu0 %v2741_v51  ;;  %2857 = vmatprep.subr.mxu1 %v2743_v52  ;;  %v2622_v51 = vld [vmem:[#allocation7 + $0x410] sm:$0xff]  ;;  %v2617_v52 = vld [vmem:[#allocation7 + $0x3e8] sm:$0xff] }
 0x26a   : > { %2781 = vmatpush2.msra.mxu0 %v2740_v53  ;;  %2858 = vmatpush2.msra.mxu1 %v2742_v54  ;;  %v2619_v53 = vld [vmem:[#allocation7 + $0x3f8] sm:$0xff] }
 0x26b   : > { %2782 = vmatprep.subr.mxu0 %v2733_v55  ;;  %2859 = vmatprep.subr.mxu1 %v2735_v56 }
 0x26c   : > { %2783 = vmatpush2.msra.mxu0 %v2732_v57  ;;  %2860 = vmatpush2.msra.mxu1 %v2734_v58 }
 0x26d   : > { %2784 = vmatprep.subr.mxu0 %v2725_v59  ;;  %2861 = vmatprep.subr.mxu1 %v2727_v60 }
 0x26e   : > { %2785 = vmatpush2.msra.mxu0 %v2724_v61  ;;  %2862 = vmatpush2.msra.mxu1 %v2726_v62 }
 0x26f   : > { %2786 = vmatprep.subr.mxu0 %v2717_v63  ;;  %2863 = vmatprep.subr.mxu1 %v2719_v1  ;;  %v2466_v1 = vlaneseq }
 0x270   : > { %2787 = vmatpush2.msra.mxu0 %v2716_v2  ;;  %2864 = vmatpush2.msra.mxu1 %v2718_v3 }
 0x271   : > { %2788 = vmatprep.subr.mxu0 %v2709_v4  ;;  %2865 = vmatprep.subr.mxu1 %v2711_v5 }
 0x272   : > { %2789 = vmatpush2.msra.mxu0 %v2708_v6  ;;  %2866 = vmatpush2.msra.mxu1 %v2710_v7  ;;  %v2467_v6 = vshrl.u32 %v2466_v1, 7  ;;  %v2593_v1 = vld [vmem:[#allocation7 + $0x328] sm:$0xff] }
 0x273   : > { %2790 = vmatprep.subr.mxu0 %v2701_v8  ;;  %2867 = vmatprep.subr.mxu1 %v2703_v9 }
 0x274   : > { %2791 = vmatpush2.msra.mxu0 %v2700_v10  ;;  %2868 = vmatpush2.msra.mxu1 %v2702_v11 }
 0x275   : > { %2792 = vmatprep.subr.mxu0 %v2693_v12  ;;  %2869 = vmatprep.subr.mxu1 %v2695_v13  ;;  %v8999_v13 = vsub.s32 0, %v2467_v6 }
 0x276   : > { %2793 = vmatpush2.msra.mxu0 %v2692_v14  ;;  %2870 = vmatpush2.msra.mxu1 %v2694_v15 }
 0x277   : > { %2794 = vmatprep.subr.mxu0 %v2685_v16  ;;  %2871 = vmatprep.subr.mxu1 %v2687_v17  ;;  %v2464_v16 = vld [vmem:[#allocation5] sm:$0x3] }
 0x278   : > { %2795 = vmatpush2.msra.mxu0 %v2684_v18  ;;  %2872 = vmatpush2.msra.mxu1 %v2686_v19  ;;  %v9001_v19 = vsub.s32 1, %v2467_v6  ;;  %v2587_v6 = vld [vmem:[#allocation7 + $0x2f8] sm:$0xff] }
 0x279   : > { %2796 = vmatprep.subr.mxu0 %v2677_v20  ;;  %2873 = vmatprep.subr.mxu1 %v2679_v21 }
 0x27a   : > { %2797 = vmatpush2.msra.mxu0 %v2676_v22  ;;  %2874 = vmatpush2.msra.mxu1 %v2678_v23 }
 0x27b   : > { %2798 = vmatprep.subr.mxu0 %v2669_v24  ;;  %2875 = vmatprep.subr.mxu1 %v2671_v25  ;;  %v2469_v25 = vrot.slane %v2464_v16, %v8999_v13 }
 0x27c   : > { %2799 = vmatpush2.msra.mxu0 %v2668_v26  ;;  %2876 = vmatpush2.msra.mxu1 %v2670_v27 }
 0x27d   : > { %2800 = vmatprep.subr.mxu0 %v2661_v28  ;;  %2877 = vmatprep.subr.mxu1 %v2663_v29 }
 0x27e   : > { %2801 = vmatpush2.msra.mxu0 %v2660_v30  ;;  %2878 = vmatpush2.msra.mxu1 %v2662_v31  ;;  %v2473_v31 = vrot.slane %v2464_v16, %v9001_v19  ;;  %v2568_v16 = vld [vmem:[#allocation7 + $0x260] sm:$0xff] }
 0x27f   : > { %2802 = vmatprep.subr.mxu0 %v2653_v32  ;;  %2879 = vmatprep.subr.mxu1 %v2655_v33 }
 0x280   : > { %2803 = vmatpush2.msra.mxu0 %v2652_v34  ;;  %2880 = vmatpush2.msra.mxu1 %v2654_v35 }
 0x281   : > { %2804 = vmatprep.subr.mxu0 %v2645_v36  ;;  %2881 = vmatprep.subr.mxu1 %v2647_v37 }
 0x282   : > { %2805 = vmatpush2.msra.mxu0 %v2644_v38  ;;  %2882 = vmatpush2.msra.mxu1 %v2646_v39 }
 0x283   : > { %2806 = vmatprep.subr.mxu0 %v2637_v40  ;;  %2883 = vmatprep.subr.mxu1 %v2639_v41 }
 0x284   : > { %2807 = vmatpush2.msra.mxu0 %v2636_v42  ;;  %2884 = vmatpush2.msra.mxu1 %v2638_v43 }
 0x285   : > { %2808 = vmatprep.subr.mxu0 %v2629_v44  ;;  %2885 = vmatprep.subr.mxu1 %v2631_v45 }
 0x286   : > { %2809 = vmatpush2.msra.mxu0 %v2628_v46  ;;  %2886 = vmatpush2.msra.mxu1 %v2630_v47 }
 0x287   : > { %2810 = vmatprep.subr.mxu0 %v2621_v48  ;;  %2887 = vmatprep.subr.mxu1 %v2623_v49  ;;  %v2616_v49 = vld [vmem:[#allocation7 + $0x3e0] sm:$0xff] }
 0x288   : > { %2811 = vmatpush2.msra.mxu0 %v2620_v50  ;;  %2888 = vmatpush2.msra.mxu1 %v2622_v51  ;;  %v2618_v50 = vld [vmem:[#allocation7 + $0x3f0] sm:$0xff] }
 0x289   : > { %2902 = vmatprep.subr.mxu0 %v2617_v52  ;;  %2979 = vmatprep.subr.mxu1 %v2619_v53  ;;  %v2609_v52 = vld [vmem:[#allocation7 + $0x3a8] sm:$0xff]  ;;  %v2611_v53 = vld [vmem:[#allocation7 + $0x3b8] sm:$0xff] }
 0x2e6   : > { %v1980_v54 = vpop.f32.mrf.mxu0  ;;  %v2069_v55 = vpop.f32.mrf.mxu1 }
 0x2e7   : > { %v2070_v4 = vadd.f32 %v2069_v55, %v1980_v54  ;;  %v2608_v55 = vld [vmem:[#allocation7 + $0x3a0] sm:$0xff] }
 0x2e8   : > { %v1982_v56 = vpop.f32.mrf.mxu0  ;;  %v2071_v57 = vpop.f32.mrf.mxu1 }
 0x2e9   : > { %v2072_v5 = vadd.f32 %v2071_v57, %v1982_v56  ;;  %v2610_v56 = vld [vmem:[#allocation7 + $0x3b0] sm:$0xff] }
 0x2ea   : > { %v1986_v58 = vpop.f32.mrf.mxu0  ;;  %v2075_v59 = vpop.f32.mrf.mxu1 }
 0x2eb   : > { %v2076_v9 = vadd.f32 %v2075_v59, %v1986_v58  ;;  %v2601_v59 = vld [vmem:[#allocation7 + $0x368] sm:$0xff] }
 0x2ec   : > { %v1988_v60 = vpop.f32.mrf.mxu0  ;;  %v2077_v61 = vpop.f32.mrf.mxu1 }
 0x2ed   : > { %v2078_v11 = vadd.f32 %v2077_v61, %v1988_v60  ;;  %v2603_v60 = vld [vmem:[#allocation7 + $0x378] sm:$0xff]  ;;  %v2600_v61 = vld [vmem:[#allocation7 + $0x360] sm:$0xff] }
 0x2f6   : > { %v2161_v62 = vpop.f32.mrf.mxu0  ;;  %v2257_v63 = vpop.f32.mrf.mxu1 }
 0x2f7   : > { %v2172_v10 = vadd.f32 %v2161_v62, %v2070_v4  ;;  %v2602_v62 = vld [vmem:[#allocation7 + $0x370] sm:$0xff] }
 0x2f8   : > { %v2163_v2 = vpop.f32.mrf.mxu0  ;;  %v2259_v3 = vpop.f32.mrf.mxu1  ;;  %v2594_v4 = vld [vmem:[#allocation7 + $0x330] sm:$0xff] }
 0x2f9   : > { %v2173_v12 = vadd.f32 %v2163_v2, %v2072_v5  ;;  %v2268_v17 = vadd.f32 %v2257_v63, %v2172_v10  ;;  %v2595_v2 = vld [vmem:[#allocation7 + $0x338] sm:$0xff]  ;;  %v2585_v5 = vld [vmem:[#allocation7 + $0x2e8] sm:$0xff] }
 0x2fa   : > { %v2167_v7 = vpop.f32.mrf.mxu0  ;;  %v2263_v8 = vpop.f32.mrf.mxu1  ;;  %v2579_v10 = vld [vmem:[#allocation7 + $0x2b8] sm:$0xff] }
 0x2fb   : > { %v2174_v18 = vadd.f32 %v2167_v7, %v2076_v9  ;;  %v2269_v22 = vadd.f32 %v2259_v3, %v2173_v12  ;;  %v2592_v3 = vld [vmem:[#allocation7 + $0x320] sm:$0xff]  ;;  %v2577_v9 = vld [vmem:[#allocation7 + $0x2a8] sm:$0xff]  ;;  %v2578_v12 = vld [vmem:[#allocation7 + $0x2b0] sm:$0xff] }
 0x2fc   : > { %v2169_v14 = vpop.f32.mrf.mxu0  ;;  %v2265_v15 = vpop.f32.mrf.mxu1  ;;  %v2584_v7 = vld [vmem:[#allocation7 + $0x2e0] sm:$0xff] }
 0x2fd   : > { %v2175_v23 = vadd.f32 %v2169_v14, %v2078_v11  ;;  %v2270_v28 = vadd.f32 %v2263_v8, %v2174_v18  ;;  %v2586_v8 = vld [vmem:[#allocation7 + $0x2f0] sm:$0xff]  ;;  %v2576_v11 = vld [vmem:[#allocation7 + $0x2a0] sm:$0xff]  ;;  %v2569_v14 = vld [vmem:[#allocation7 + $0x268] sm:$0xff] }
 0x2fe   : > { %v2561_v18 = vld [vmem:[#allocation7 + $0x228] sm:$0xff] }
 0x2ff   : > { %v2271_v34 = vadd.f32 %v2265_v15, %v2175_v23  ;;  %v2571_v15 = vld [vmem:[#allocation7 + $0x278] sm:$0xff]  ;;  %v2553_v23 = vld [vmem:[#allocation7 + $0x1e8] sm:$0xff] }
 0x306   : > { %v2353_v20 = vpop.f32.mrf.mxu0  ;;  %v2449_v21 = vpop.f32.mrf.mxu1 }
 0x307   : > { %v2364_v24 = vadd.f32 %v2353_v20, %v2268_v17  ;;  %v2570_v17 = vld [vmem:[#allocation7 + $0x270] sm:$0xff]  ;;  %v2563_v20 = vld [vmem:[#allocation7 + $0x238] sm:$0xff] }
 0x308   : > { %v2355_v26 = vpop.f32.mrf.mxu0  ;;  %v2451_v27 = vpop.f32.mrf.mxu1 }
 0x309   : > { %v2460_v29 = vadd.f32 %v2449_v21, %v2364_v24  ;;  %v2365_v30 = vadd.f32 %v2355_v26, %v2269_v22  ;;  %v2560_v21 = vld [vmem:[#allocation7 + $0x220] sm:$0xff]  ;;  %v2562_v22 = vld [vmem:[#allocation7 + $0x230] sm:$0xff]  ;;  %v2555_v24 = vld [vmem:[#allocation7 + $0x1f8] sm:$0xff] }
 0x30a   : > { %v2359_v32 = vpop.f32.mrf.mxu0  ;;  %v2455_v33 = vpop.f32.mrf.mxu1  ;;  %v2554_v26 = vld [vmem:[#allocation7 + $0x1f0] sm:$0xff] }
 0x30b   : > { %v2476_v35 = vadd.f32 %v2469_v25, %v2460_v29  ;;  %v2461_v36 = vadd.f32 %v2451_v27, %v2365_v30  ;;  %v2366_v37 = vadd.f32 %v2359_v32, %v2270_v28  ;;  %v2545_v27 = vld [vmem:[#allocation7 + $0x1a8] sm:$0xff]  ;;  %v2547_v28 = vld [vmem:[#allocation7 + $0x1b8] sm:$0xff]  ;;  %v2544_v29 = vld [vmem:[#allocation7 + $0x1a0] sm:$0xff] }
 0x30c   : > { %v2361_v38 = vpop.f32.mrf.mxu0  ;;  %v2457_v39 = vpop.f32.mrf.mxu1  ;;  %v2546_v30 = vld [vmem:[#allocation7 + $0x1b0] sm:$0xff]  ;;  %v2539_v32 = vld [vmem:[#allocation7 + $0x178] sm:$0xff] }
 0x30d   : > { %v2477_v40 = vadd.f32 %v2473_v31, %v2461_v36  ;;  %v2367_v41 = vadd.f32 %v2361_v38, %v2271_v34  ;;  %v2484_v42 = vmul.f32 0.01, %v2476_v35  ;;  %v2462_v43 = vadd.f32 %v2455_v33, %v2366_v37  ;;  %v2536_v33 = vld [vmem:[#allocation7 + $0x160] sm:$0xff]  ;;  %v2538_v34 = vld [vmem:[#allocation7 + $0x170] sm:$0xff]  ;;  %v2531_v36 = vld [vmem:[#allocation7 + $0x138] sm:$0xff] }
 0x30e   : > { %vm2480_vm2 = vcmp.ge.f32.partialorder %v2476_v35, 0.0  ;;  %v2528_v37 = vld [vmem:[#allocation7 + $0x120] sm:$0xff]  ;;  %v2530_v38 = vld [vmem:[#allocation7 + $0x130] sm:$0xff] }
 0x30f   : > { %v2485_v44 = vmul.f32 0.01, %v2477_v40  ;;  %v2463_v45 = vadd.f32 %v2457_v39, %v2367_v41  ;;  %vm2481_vm3 = vcmp.ge.f32.partialorder %v2477_v40, 0.0  ;;  %v2478_v46 = vadd.f32 %v2469_v25, %v2462_v43  ;;  %v2552_v25 = vld [vmem:[#allocation7 + $0x1e0] sm:$0xff]  ;;  %v2521_v39 = vld [vmem:[#allocation7 + $0xe8] sm:$0xff] }
 0x310   : > { %v9005_v51 = vsel %vm2480_vm2, %v2476_v35, %v2484_v42  ;;  %v2529_v35 = vld [vmem:[#allocation7 + $0x128] sm:$0xff]  ;;  %v2520_v41 = vld [vmem:[#allocation7 + $0xe0] sm:$0xff]  ;;  %v2522_v42 = vld [vmem:[#allocation7 + $0xf0] sm:$0xff]  ;;  %vm4353_vm2 = vcmask 1040384  }
 0x311   : > { %v2479_v47 = vadd.f32 %v2473_v31, %v2463_v45  ;;  %v2489_v48 = vsel %vm2481_vm3, %v2477_v40, %v2485_v44  ;;  %v2486_v57 = vmul.f32 0.01, %v2478_v46  ;;  %vm2482_vm5 = vcmp.ge.f32.partialorder %v2478_v46, 0.0  ;;  %v2537_v31 = vld [vmem:[#allocation7 + $0x168] sm:$0xff]  ;;  %v2523_v40 = vld [vmem:[#allocation7 + $0xf8] sm:$0xff]  ;;  %v2512_v45 = vld [vmem:[#allocation7 + $0xa0] sm:$0xff] }
 0x312   : > { %2812 = vmatprep.mubr.f32.mxu0 %v2489_v48  ;;  %2889 = vmatprep.mubr.f32.mxu1 %v2489_v48  ;;  %v2513_v43 = vld [vmem:[#allocation7 + $0xa8] sm:$0xff]  ;;  %v2515_v44 = vld [vmem:[#allocation7 + $0xb8] sm:$0xff]  ;;  %vm4349_vm3 = vcmask 7168  }
 0x313   : > { %v2487_v54 = vmul.f32 0.01, %v2479_v47  ;;  %2813 = vmatmul.mubr.f32.vlgmr.msra.gmra.mxu0 %v9005_v51  ;;  %2890 = vmatmul.mubr.f32.vlgmr.msra.gmra.mxu1 %v9005_v51  ;;  %vm2483_vm4 = vcmp.ge.f32.partialorder %v2479_v47, 0.0  ;;  %v9013_v63 = vsel %vm2482_vm5, %v2478_v46, %v2486_v57  ;;  %v2514_v46 = vld [vmem:[#allocation7 + $0xb0] sm:$0xff]  ;;  %v2747_v57 = vld [vmem:[#allocation7 + $0x7f8] sm:$0xff]  ;;  %vm5191_vm5 = vcmask 31744  }
 0x314   : > { %2903 = vmatpush1.msra.mxu0 %v2616_v49  ;;  %2980 = vmatpush1.msra.mxu1 %v2618_v50  ;;  %v2504_v49 = vld [vmem:[#allocation7 + $0x60] sm:$0xff]  ;;  %v2506_v50 = vld [vmem:[#allocation7 + $0x70] sm:$0xff] }
 0x315   : > { %2904 = vmatprep.subr.mxu0 %v2609_v52  ;;  %2981 = vmatprep.subr.mxu1 %v2611_v53  ;;  %v9009_v58 = vsel %vm2483_vm4, %v2479_v47, %v2487_v54  ;;  %v2505_v47 = vld [vmem:[#allocation7 + $0x68] sm:$0xff]  ;;  %v2499_v53 = vld [vmem:[#allocation7 + $0x38] sm:$0xff]  ;;  %v2496_v54 = vld [vmem:[#allocation7 + $0x20] sm:$0xff] }
 0x316   : > { %2905 = vmatpush1.msra.mxu0 %v2608_v55  ;;  %2982 = vmatpush1.msra.mxu1 %v2610_v56  ;;  %v2497_v52 = vld [vmem:[#allocation7 + $0x28] sm:$0xff]  ;;  %v2498_v55 = vld [vmem:[#allocation7 + $0x30] sm:$0xff] }
 0x317   : > { %2818 = vmatprep.mubr.f32.mxu0 %v9009_v58  ;;  %2895 = vmatprep.mubr.f32.mxu1 %v9009_v58  ;;  %v2745_v56 = vld [vmem:[#allocation7 + $0x7e8] sm:$0xff] }
 0x318   : > { %2906 = vmatprep.subr.mxu0 %v2601_v59  ;;  %2983 = vmatprep.subr.mxu1 %v2603_v60  ;;  %v2744_v59 = vld [vmem:[#allocation7 + $0x7e0] sm:$0xff]  ;;  %v2746_v60 = vld [vmem:[#allocation7 + $0x7f0] sm:$0xff] }
 0x319   : > { %2819 = vmatmul.mubr.f32.gmra.mxu0 %v9013_v63  ;;  %2896 = vmatmul.mubr.f32.gmra.mxu1 %v9013_v63 }
 0x31a   : > { %2907 = vmatpush1.msra.mxu0 %v2600_v61  ;;  %2984 = vmatpush1.msra.mxu1 %v2602_v62  ;;  %v2737_v61 = vld [vmem:[#allocation7 + $0x7a8] sm:$0xff]  ;;  %v2739_v62 = vld [vmem:[#allocation7 + $0x7b8] sm:$0xff] }
 0x31b   : > { %2908 = vmatprep.subr.mxu0 %v2593_v1  ;;  %2966 = vmatprep.mubr.f32.mxu0 %v2489_v48  ;;  %v2736_v1 = vld [vmem:[#allocation7 + $0x7a0] sm:$0xff] }
 0x31c   : > { %2985 = vmatprep.subr.mxu1 %v2595_v2  ;;  %3043 = vmatprep.mubr.f32.mxu1 %v2489_v48  ;;  %v2507_v48 = vld [vmem:[#allocation7 + $0x78] sm:$0xff]  ;;  %v2738_v2 = vld [vmem:[#allocation7 + $0x7b0] sm:$0xff] }
 0x31d   : > { %2909 = vmatpush1.msra.mxu0 %v2592_v3  ;;  %2986 = vmatpush1.msra.mxu1 %v2594_v4  ;;  %v2729_v3 = vld [vmem:[#allocation7 + $0x768] sm:$0xff]  ;;  %v2731_v4 = vld [vmem:[#allocation7 + $0x778] sm:$0xff] }
 0x31e   : > { %2910 = vmatprep.subr.mxu0 %v2585_v5  ;;  %2987 = vmatprep.subr.mxu1 %v2587_v6  ;;  %v2728_v5 = vld [vmem:[#allocation7 + $0x760] sm:$0xff]  ;;  %v2730_v6 = vld [vmem:[#allocation7 + $0x770] sm:$0xff] }
 0x31f   : > { %2911 = vmatpush1.msra.mxu0 %v2584_v7  ;;  %2988 = vmatpush1.msra.mxu1 %v2586_v8  ;;  %v2721_v7 = vld [vmem:[#allocation7 + $0x728] sm:$0xff]  ;;  %v2723_v8 = vld [vmem:[#allocation7 + $0x738] sm:$0xff] }
 0x320   : > { %2912 = vmatprep.subr.mxu0 %v2577_v9  ;;  %2989 = vmatprep.subr.mxu1 %v2579_v10  ;;  %v2720_v9 = vld [vmem:[#allocation7 + $0x720] sm:$0xff]  ;;  %v2722_v10 = vld [vmem:[#allocation7 + $0x730] sm:$0xff] }
 0x321   : > { %2913 = vmatpush1.msra.mxu0 %v2576_v11  ;;  %2990 = vmatpush1.msra.mxu1 %v2578_v12  ;;  %v2713_v11 = vld [vmem:[#allocation7 + $0x6e8] sm:$0xff]  ;;  %v2715_v12 = vld [vmem:[#allocation7 + $0x6f8] sm:$0xff] }
 0x322   : > { %2914 = vmatprep.subr.mxu0 %v2569_v14  ;;  %2991 = vmatprep.subr.mxu1 %v2571_v15  ;;  %v2712_v14 = vld [vmem:[#allocation7 + $0x6e0] sm:$0xff]  ;;  %v2714_v15 = vld [vmem:[#allocation7 + $0x6f0] sm:$0xff] }
 0x323   : > { %2915 = vmatpush1.msra.mxu0 %v2568_v16  ;;  %2992 = vmatpush1.msra.mxu1 %v2570_v17  ;;  %v2705_v16 = vld [vmem:[#allocation7 + $0x6a8] sm:$0xff]  ;;  %v2707_v17 = vld [vmem:[#allocation7 + $0x6b8] sm:$0xff] }
 0x324   : > { %2916 = vmatprep.subr.mxu0 %v2561_v18  ;;  %2993 = vmatprep.subr.mxu1 %v2563_v20  ;;  %v2704_v18 = vld [vmem:[#allocation7 + $0x6a0] sm:$0xff]  ;;  %v2706_v20 = vld [vmem:[#allocation7 + $0x6b0] sm:$0xff] }
 0x325   : > { %2917 = vmatpush1.msra.mxu0 %v2560_v21  ;;  %2994 = vmatpush1.msra.mxu1 %v2562_v22  ;;  %v2697_v21 = vld [vmem:[#allocation7 + $0x668] sm:$0xff]  ;;  %v2699_v22 = vld [vmem:[#allocation7 + $0x678] sm:$0xff] }
 0x326   : > { %2918 = vmatprep.subr.mxu0 %v2553_v23  ;;  %2995 = vmatprep.subr.mxu1 %v2555_v24  ;;  %v2696_v23 = vld [vmem:[#allocation7 + $0x660] sm:$0xff]  ;;  %v2698_v24 = vld [vmem:[#allocation7 + $0x670] sm:$0xff] }
 0x327   : > { %2919 = vmatpush1.msra.mxu0 %v2552_v25  ;;  %2996 = vmatpush1.msra.mxu1 %v2554_v26  ;;  %v2689_v25 = vld [vmem:[#allocation7 + $0x628] sm:$0xff]  ;;  %v2691_v26 = vld [vmem:[#allocation7 + $0x638] sm:$0xff] }
 0x328   : > { %2920 = vmatprep.subr.mxu0 %v2545_v27  ;;  %2997 = vmatprep.subr.mxu1 %v2547_v28  ;;  %v2688_v27 = vld [vmem:[#allocation7 + $0x620] sm:$0xff]  ;;  %v2690_v28 = vld [vmem:[#allocation7 + $0x630] sm:$0xff] }
 0x329   : > { %2921 = vmatpush1.msra.mxu0 %v2544_v29  ;;  %2998 = vmatpush1.msra.mxu1 %v2546_v30  ;;  %v2681_v29 = vld [vmem:[#allocation7 + $0x5e8] sm:$0xff]  ;;  %v2683_v30 = vld [vmem:[#allocation7 + $0x5f8] sm:$0xff] }
 0x32a   : > { %2922 = vmatprep.subr.mxu0 %v2537_v31  ;;  %2999 = vmatprep.subr.mxu1 %v2539_v32  ;;  %v2680_v31 = vld [vmem:[#allocation7 + $0x5e0] sm:$0xff]  ;;  %v2682_v32 = vld [vmem:[#allocation7 + $0x5f0] sm:$0xff] }
 0x32b   : > { %2923 = vmatpush1.msra.mxu0 %v2536_v33  ;;  %3000 = vmatpush1.msra.mxu1 %v2538_v34  ;;  %v2673_v33 = vld [vmem:[#allocation7 + $0x5a8] sm:$0xff]  ;;  %v2675_v34 = vld [vmem:[#allocation7 + $0x5b8] sm:$0xff] }
 0x32c   : > { %2924 = vmatprep.subr.mxu0 %v2529_v35  ;;  %3001 = vmatprep.subr.mxu1 %v2531_v36  ;;  %v2672_v35 = vld [vmem:[#allocation7 + $0x5a0] sm:$0xff]  ;;  %v2674_v36 = vld [vmem:[#allocation7 + $0x5b0] sm:$0xff] }
 0x32d   : > { %2925 = vmatpush1.msra.mxu0 %v2528_v37  ;;  %3002 = vmatpush1.msra.mxu1 %v2530_v38  ;;  %v2665_v37 = vld [vmem:[#allocation7 + $0x568] sm:$0xff]  ;;  %v2667_v38 = vld [vmem:[#allocation7 + $0x578] sm:$0xff] }
 0x32e   : > { %2926 = vmatprep.subr.mxu0 %v2521_v39  ;;  %3003 = vmatprep.subr.mxu1 %v2523_v40  ;;  %v2664_v39 = vld [vmem:[#allocation7 + $0x560] sm:$0xff]  ;;  %v2666_v40 = vld [vmem:[#allocation7 + $0x570] sm:$0xff] }
 0x32f   : > { %2927 = vmatpush1.msra.mxu0 %v2520_v41  ;;  %3004 = vmatpush1.msra.mxu1 %v2522_v42  ;;  %v2657_v41 = vld [vmem:[#allocation7 + $0x528] sm:$0xff]  ;;  %v2659_v42 = vld [vmem:[#allocation7 + $0x538] sm:$0xff] }
 0x330   : > { %2928 = vmatprep.subr.mxu0 %v2513_v43  ;;  %3005 = vmatprep.subr.mxu1 %v2515_v44  ;;  %v2656_v43 = vld [vmem:[#allocation7 + $0x520] sm:$0xff]  ;;  %v2658_v44 = vld [vmem:[#allocation7 + $0x530] sm:$0xff] }
 0x331   : > { %2929 = vmatpush1.msra.mxu0 %v2512_v45  ;;  %3006 = vmatpush1.msra.mxu1 %v2514_v46  ;;  %v2649_v45 = vld [vmem:[#allocation7 + $0x4e8] sm:$0xff]  ;;  %v2651_v46 = vld [vmem:[#allocation7 + $0x4f8] sm:$0xff] }
 0x332   : > { %2930 = vmatprep.subr.mxu0 %v2505_v47  ;;  %3007 = vmatprep.subr.mxu1 %v2507_v48  ;;  %v2648_v47 = vld [vmem:[#allocation7 + $0x4e0] sm:$0xff]  ;;  %v2650_v48 = vld [vmem:[#allocation7 + $0x4f0] sm:$0xff] }
 0x333   : > { %2931 = vmatpush1.msra.mxu0 %v2504_v49  ;;  %3008 = vmatpush1.msra.mxu1 %v2506_v50  ;;  %v2641_v49 = vld [vmem:[#allocation7 + $0x4a8] sm:$0xff]  ;;  %v2643_v50 = vld [vmem:[#allocation7 + $0x4b8] sm:$0xff] }
 0x334   : > { %2932 = vmatprep.subr.mxu0 %v2497_v52  ;;  %3009 = vmatprep.subr.mxu1 %v2499_v53  ;;  %v2640_v52 = vld [vmem:[#allocation7 + $0x4a0] sm:$0xff]  ;;  %v2642_v53 = vld [vmem:[#allocation7 + $0x4b0] sm:$0xff] }
 0x335   : > { %2933 = vmatpush1.msra.mxu0 %v2496_v54  ;;  %3010 = vmatpush1.msra.mxu1 %v2498_v55  ;;  %v2633_v54 = vld [vmem:[#allocation7 + $0x468] sm:$0xff]  ;;  %v2635_v55 = vld [vmem:[#allocation7 + $0x478] sm:$0xff] }
 0x336   : > { %2934 = vmatprep.subr.mxu0 %v2745_v56  ;;  %3011 = vmatprep.subr.mxu1 %v2747_v57  ;;  %v2632_v56 = vld [vmem:[#allocation7 + $0x460] sm:$0xff]  ;;  %v2634_v57 = vld [vmem:[#allocation7 + $0x470] sm:$0xff] }
 0x337   : > { %2935 = vmatpush2.msra.mxu0 %v2744_v59  ;;  %3012 = vmatpush2.msra.mxu1 %v2746_v60  ;;  %v2625_v59 = vld [vmem:[#allocation7 + $0x428] sm:$0xff]  ;;  %v2627_v60 = vld [vmem:[#allocation7 + $0x438] sm:$0xff] }
 0x338   : > { %2936 = vmatprep.subr.mxu0 %v2737_v61  ;;  %3013 = vmatprep.subr.mxu1 %v2739_v62  ;;  %v2624_v61 = vld [vmem:[#allocation7 + $0x420] sm:$0xff]  ;;  %v2626_v62 = vld [vmem:[#allocation7 + $0x430] sm:$0xff] }
 0x339   : > { %2937 = vmatpush2.msra.mxu0 %v2736_v1  ;;  %3014 = vmatpush2.msra.mxu1 %v2738_v2 }
 0x33a   : > { %2938 = vmatprep.subr.mxu0 %v2729_v3  ;;  %3015 = vmatprep.subr.mxu1 %v2731_v4 }
 0x33b   : > { %2939 = vmatpush2.msra.mxu0 %v2728_v5  ;;  %3016 = vmatpush2.msra.mxu1 %v2730_v6 }
 0x33c   : > { %2940 = vmatprep.subr.mxu0 %v2721_v7  ;;  %3017 = vmatprep.subr.mxu1 %v2723_v8  ;;  %v3056_v7 = vld [vmem:[%s9496_s18] sm:$0x1f] }
 0x33d   : > { %2941 = vmatpush2.msra.mxu0 %v2720_v9  ;;  %3018 = vmatpush2.msra.mxu1 %v2722_v10 }
 0x33e   : > { %2942 = vmatprep.subr.mxu0 %v2713_v11  ;;  %3019 = vmatprep.subr.mxu1 %v2715_v12 }
 0x33f   : > { %2943 = vmatpush2.msra.mxu0 %v2712_v14  ;;  %3020 = vmatpush2.msra.mxu1 %v2714_v15 }
 0x340   : > { %2944 = vmatprep.subr.mxu0 %v2705_v16  ;;  %3021 = vmatprep.subr.mxu1 %v2707_v17  ;;  %v7224_v17 = vld [vmem:[%s9496_s18 + $0x10] sm:$0x1f] }
 0x341   : > { %2945 = vmatpush2.msra.mxu0 %v2704_v18  ;;  %3022 = vmatpush2.msra.mxu1 %v2706_v20  ;;  %v7228_v18 = vld [vmem:[%s9496_s18 + $0x18] sm:$0x1f] }
 0x342   : > { %2946 = vmatprep.subr.mxu0 %v2697_v21  ;;  %3023 = vmatprep.subr.mxu1 %v2699_v22  ;;  %v3439_v20 = vld [vmem:[%s9497_s11 + $0xf8] sm:$0xff]  ;;  %v3438_v21 = vld [vmem:[%s9497_s11 + $0xf0] sm:$0xff]  ;;  %v3437_v22 = vld [vmem:[%s9497_s11 + $0xe8] sm:$0xff] }
 0x343   : > { %2947 = vmatpush2.msra.mxu0 %v2696_v23  ;;  %3024 = vmatpush2.msra.mxu1 %v2698_v24  ;;  %v3436_v23 = vld [vmem:[%s9497_s11 + $0xe0] sm:$0xff]  ;;  %v3435_v24 = vld [vmem:[%s9497_s11 + $0xd8] sm:$0xff] }
 0x344   : > { %2948 = vmatprep.subr.mxu0 %v2689_v25  ;;  %3025 = vmatprep.subr.mxu1 %v2691_v26  ;;  %v3434_v25 = vld [vmem:[%s9497_s11 + $0xd0] sm:$0xff]  ;;  %v3433_v26 = vld [vmem:[%s9497_s11 + $0xc8] sm:$0xff] }
 0x345   : > { %2949 = vmatpush2.msra.mxu0 %v2688_v27  ;;  %3026 = vmatpush2.msra.mxu1 %v2690_v28  ;;  %v3432_v27 = vld [vmem:[%s9497_s11 + $0xc0] sm:$0xff]  ;;  %v3431_v28 = vld [vmem:[%s9497_s11 + $0xb8] sm:$0xff] }
 0x346   : > { %2950 = vmatprep.subr.mxu0 %v2681_v29  ;;  %3027 = vmatprep.subr.mxu1 %v2683_v30  ;;  %v3430_v29 = vld [vmem:[%s9497_s11 + $0xb0] sm:$0xff]  ;;  %v3429_v30 = vld [vmem:[%s9497_s11 + $0xa8] sm:$0xff] }
 0x347   : > { %2951 = vmatpush2.msra.mxu0 %v2680_v31  ;;  %3028 = vmatpush2.msra.mxu1 %v2682_v32  ;;  %v3428_v31 = vld [vmem:[%s9497_s11 + $0xa0] sm:$0xff]  ;;  %v3427_v32 = vld [vmem:[%s9497_s11 + $0x98] sm:$0xff] }
 0x348   : > { %2952 = vmatprep.subr.mxu0 %v2673_v33  ;;  %3029 = vmatprep.subr.mxu1 %v2675_v34  ;;  %v3426_v33 = vld [vmem:[%s9497_s11 + $0x90] sm:$0xff]  ;;  %v3425_v34 = vld [vmem:[%s9497_s11 + $0x88] sm:$0xff] }
 0x349   : > { %2953 = vmatpush2.msra.mxu0 %v2672_v35  ;;  %3030 = vmatpush2.msra.mxu1 %v2674_v36  ;;  %v3424_v35 = vld [vmem:[%s9497_s11 + $0x80] sm:$0xff]  ;;  %v3423_v36 = vld [vmem:[%s9497_s11 + $0x78] sm:$0xff] }
 0x34a   : > { %2954 = vmatprep.subr.mxu0 %v2665_v37  ;;  %3031 = vmatprep.subr.mxu1 %v2667_v38  ;;  %v3422_v37 = vld [vmem:[%s9497_s11 + $0x70] sm:$0xff]  ;;  %v3421_v38 = vld [vmem:[%s9497_s11 + $0x68] sm:$0xff] }
 0x34b   : > { %2955 = vmatpush2.msra.mxu0 %v2664_v39  ;;  %3032 = vmatpush2.msra.mxu1 %v2666_v40  ;;  %v3420_v39 = vld [vmem:[%s9497_s11 + $0x60] sm:$0xff]  ;;  %v3419_v40 = vld [vmem:[%s9497_s11 + $0x58] sm:$0xff] }
 0x34c   : > { %2956 = vmatprep.subr.mxu0 %v2657_v41  ;;  %3033 = vmatprep.subr.mxu1 %v2659_v42  ;;  %v3418_v41 = vld [vmem:[%s9497_s11 + $0x50] sm:$0xff]  ;;  %v3417_v42 = vld [vmem:[%s9497_s11 + $0x48] sm:$0xff] }
 0x34d   : > { %2957 = vmatpush2.msra.mxu0 %v2656_v43  ;;  %3034 = vmatpush2.msra.mxu1 %v2658_v44  ;;  %v3416_v43 = vld [vmem:[%s9497_s11 + $0x40] sm:$0xff]  ;;  %v3415_v44 = vld [vmem:[%s9497_s11 + $0x38] sm:$0xff] }
 0x34e   : > { %2958 = vmatprep.subr.mxu0 %v2649_v45  ;;  %3035 = vmatprep.subr.mxu1 %v2651_v46  ;;  %v3414_v45 = vld [vmem:[%s9497_s11 + $0x30] sm:$0xff]  ;;  %v3413_v46 = vld [vmem:[%s9497_s11 + $0x28] sm:$0xff] }
 0x34f   : > { %2959 = vmatpush2.msra.mxu0 %v2648_v47  ;;  %3036 = vmatpush2.msra.mxu1 %v2650_v48  ;;  %v3412_v47 = vld [vmem:[%s9497_s11 + $0x20] sm:$0xff]  ;;  %v3411_v48 = vld [vmem:[%s9497_s11 + $0x18] sm:$0xff] }
 0x350   : > { %2960 = vmatprep.subr.mxu0 %v2641_v49  ;;  %3037 = vmatprep.subr.mxu1 %v2643_v50  ;;  %v3410_v49 = vld [vmem:[%s9497_s11 + $0x10] sm:$0xff]  ;;  %v3409_v50 = vld [vmem:[%s9497_s11 + $0x8] sm:$0xff] }
 0x351   : > { %2961 = vmatpush2.msra.mxu0 %v2640_v52  ;;  %3038 = vmatpush2.msra.mxu1 %v2642_v53  ;;  %v3408_v52 = vld [vmem:[%s9497_s11] sm:$0xff]  ;;  %v3471_v53 = vld [vmem:[%s9497_s11 + $0x1f8] sm:$0xff] }
 0x352   : > { %2962 = vmatprep.subr.mxu0 %v2633_v54  ;;  %3039 = vmatprep.subr.mxu1 %v2635_v55  ;;  %v3470_v54 = vld [vmem:[%s9497_s11 + $0x1f0] sm:$0xff]  ;;  %v3469_v55 = vld [vmem:[%s9497_s11 + $0x1e8] sm:$0xff] }
 0x353   : > { %2963 = vmatpush2.msra.mxu0 %v2632_v56  ;;  %3040 = vmatpush2.msra.mxu1 %v2634_v57  ;;  %v3468_v56 = vld [vmem:[%s9497_s11 + $0x1e0] sm:$0xff]  ;;  %v3467_v57 = vld [vmem:[%s9497_s11 + $0x1d8] sm:$0xff] }
 0x354   : > { %2964 = vmatprep.subr.mxu0 %v2625_v59  ;;  %3041 = vmatprep.subr.mxu1 %v2627_v60  ;;  %v3466_v59 = vld [vmem:[%s9497_s11 + $0x1d0] sm:$0xff]  ;;  %v3465_v60 = vld [vmem:[%s9497_s11 + $0x1c8] sm:$0xff] }
 0x355   : > { %2965 = vmatpush2.msra.mxu0 %v2624_v61  ;;  %3042 = vmatpush2.msra.mxu1 %v2626_v62  ;;  %v3464_v61 = vld [vmem:[%s9497_s11 + $0x1c0] sm:$0xff]  ;;  %v3463_v62 = vld [vmem:[%s9497_s11 + $0x1b8] sm:$0xff] }
 0x356   : > { %2967 = vmatmul.mubr.f32.vlgmr.msra.gmra.mxu0 %v9005_v51  ;;  %3044 = vmatmul.mubr.f32.vlgmr.msra.gmra.mxu1 %v9005_v51 }
 0x357   : > { %2972 = vmatprep.mubr.f32.mxu0 %v9009_v58  ;;  %3049 = vmatprep.mubr.f32.mxu1 %v9009_v58  ;;  %v7217_v58 = vld [vmem:[%s9496_s18 + $0x8] sm:$0x1f] }
 0x35a   : > { %2973 = vmatmul.mubr.f32.gmra.mxu0 %v9013_v63  ;;  %3050 = vmatmul.mubr.f32.gmra.mxu1 %v9013_v63 }
 0x35b   : > { %3133 = vmatprep.mubr.f32.mxu0 %v8441_v0  ;;  %3379 = vmatprep.mubr.f32.mxu1 %v8441_v0 }
 0x3d3   : > { %v2814_v1 = vpop.f32.mrf.mxu0  ;;  %v2891_v2 = vpop.f32.mrf.mxu1 }
 0x3d5   : > { %v2893_v3 = vpop.f32.mrf.mxu1  ;;  %v2816_v4 = vpop.f32.mrf.mxu0 }
 0x3d9   : > { %v2897_v5 = vpop.f32.mrf.mxu1  ;;  %v2820_v51 = vpop.f32.mrf.mxu0 }
 0x3db   : > { %v2899_v6 = vpop.f32.mrf.mxu1  ;;  %v2822_v63 = vpop.f32.mrf.mxu0 }
 0x3dc   : > { %7218 = vmatprep.subr.msk.mxu0 %vm1326_vm0, %v2899_v6  ;;  %v3456_v6 = vld [vmem:[%s9497_s11 + $0x180] sm:$0xff] }
 0x3dd   : > { %7219 = vmatpush1.msk.msra.mxu0 %vm1326_vm0, %v2897_v5  ;;  %v3458_v5 = vld [vmem:[%s9497_s11 + $0x190] sm:$0xff] }
 0x3de   : > { %3099 = vmatprep.subr.mxu0 %v2893_v3  ;;  %v3460_v3 = vld [vmem:[%s9497_s11 + $0x1a0] sm:$0xff] }
 0x3df   : > { %3100 = vmatpush1.msra.mxu0 %v2891_v2  ;;  %v3461_v2 = vld [vmem:[%s9497_s11 + $0x1a8] sm:$0xff] }
 0x3e0   : > { %7221 = vmatprep.subr.msk.mxu0 %vm1326_vm0, %v2822_v63  ;;  %7220 = vmatmul.mubr.msk.f32.vlgmr.msra.gmra.mxu0 %vm3059_vm6, %v7217_v58  ;;  %v3455_v58 = vld [vmem:[%s9497_s11 + $0x178] sm:$0xff]  ;;  %v3454_v63 = vld [vmem:[%s9497_s11 + $0x170] sm:$0xff] }
 0x3e1   : > { %7222 = vmatpush1.msk.msra.mxu0 %vm1326_vm0, %v2820_v51  ;;  %3213 = vmatprep.mubr.f32.mxu0 %v8441_v0  ;;  %v3457_v51 = vld [vmem:[%s9497_s11 + $0x188] sm:$0xff] }
 0x3e2   : > { %3179 = vmatprep.subr.mxu0 %v2816_v4  ;;  %v3459_v4 = vld [vmem:[%s9497_s11 + $0x198] sm:$0xff] }
 0x3e3   : > { %3180 = vmatpush1.msra.mxu0 %v2814_v1  ;;  %v3462_v1 = vld [vmem:[%s9497_s11 + $0x1b0] sm:$0xff] }
 0x3e4   : > { %7223 = vmatmul.mubr.msk.f32.vlgmr.msra.gmra.mxu0 %vm3059_vm6, %v3056_v7  ;;  %v3453_v7 = vld [vmem:[%s9497_s11 + $0x168] sm:$0xff] }
 0x3e5   : > { %3295 = vmatprep.mubr.f32.mxu0 %v8441_v0 }
 0x416   : > { %v2968_v8 = vpop.f32.mrf.mxu0  ;;  %v3045_v9 = vpop.f32.mrf.mxu1 }
 0x418   : > { %v2970_v10 = vpop.f32.mrf.mxu0  ;;  %v3047_v11 = vpop.f32.mrf.mxu1 }
 0x41a   : > { %v2974_v12 = vpop.f32.mrf.mxu0  ;;  %v3051_v14 = vpop.f32.mrf.mxu1 }
 0x41c   : > { %v2976_v15 = vpop.f32.mrf.mxu0  ;;  %v3053_v16 = vpop.f32.mrf.mxu1 }
 0x41d   : > { %7225 = vmatprep.subr.msk.mxu0 %vm1326_vm0, %v2976_v15  ;;  %7229 = vmatprep.subr.msk.mxu1 %vm1326_vm0, %v3053_v16  ;;  %v3446_v15 = vld [vmem:[%s9497_s11 + $0x130] sm:$0xff]  ;;  %v3445_v16 = vld [vmem:[%s9497_s11 + $0x128] sm:$0xff] }
 0x41e   : > { %7226 = vmatpush1.msk.msra.mxu0 %vm1326_vm0, %v2974_v12  ;;  %7230 = vmatpush1.msk.msra.mxu1 %vm1326_vm0, %v3051_v14  ;;  %v3448_v12 = vld [vmem:[%s9497_s11 + $0x140] sm:$0xff]  ;;  %v3447_v14 = vld [vmem:[%s9497_s11 + $0x138] sm:$0xff] }
 0x41f   : > { %3261 = vmatprep.subr.mxu0 %v2970_v10  ;;  %3345 = vmatprep.subr.mxu1 %v3047_v11  ;;  %v3450_v10 = vld [vmem:[%s9497_s11 + $0x150] sm:$0xff]  ;;  %v3449_v11 = vld [vmem:[%s9497_s11 + $0x148] sm:$0xff] }
 0x420   : > { %3262 = vmatpush1.msra.mxu0 %v2968_v8  ;;  %3346 = vmatpush1.msra.mxu1 %v3045_v9  ;;  %v3452_v8 = vld [vmem:[%s9497_s11 + $0x160] sm:$0xff]  ;;  %v3451_v9 = vld [vmem:[%s9497_s11 + $0x158] sm:$0xff] }
 0x421   : > { %7227 = vmatmul.mubr.msk.f32.vlgmr.msra.gmra.mxu0 %vm3059_vm6, %v7224_v17  ;;  %7231 = vmatmul.mubr.msk.f32.vlgmr.msra.gmra.mxu1 %vm3059_vm6, %v7228_v18  ;;  %v3444_v17 = vld [vmem:[%s9497_s11 + $0x120] sm:$0xff]  ;;  %v3443_v18 = vld [vmem:[%s9497_s11 + $0x118] sm:$0xff] }
 0x422   : > { %3472 = vmatprep.subr.mxu0 %v3439_v20  ;;  %7392 = vmatprep.subr.mxu1 %v8441_v0  ;;  %v3442_v20 = vld [vmem:[%s9497_s11 + $0x110] sm:$0xff] }
 0x423   : > { %3473 = vmatpush1.msra.mxu0 %v3438_v21  ;;  %v3441_v21 = vld [vmem:[%s9497_s11 + $0x108] sm:$0xff]  ;;  %7394 = vmatprep.mubr.msk.f32.mxu1 %vm8442_vm9, %v8441_v0 }
 0x424   : > { %3474 = vmatprep.subr.mxu0 %v3437_v22  ;;  %v3440_v22 = vld [vmem:[%s9497_s11 + $0x100] sm:$0xff]  ;;  %s8443_s11 = smov [#allocation30]  }
 0x425   : > { %3475 = vmatpush1.msra.mxu0 %v3436_v23  ;;  %s8231_s12 = sshll.u32 %s8443_s11, 4  ;;  %s8232_s12 = int_to_ptr.vmem [resolvable:$false] %s8231_s12 }
 0x426   : > { %3476 = vmatprep.subr.mxu0 %v3435_v24  ;;  %p8234_p8 = scmp.lt.s32.totalorder %s6752_s6, %s8232_s12 }
 0x427   : > { %3477 = vmatpush1.msra.mxu0 %v3434_v25 }
 0x428   : > { %3478 = vmatprep.subr.mxu0 %v3433_v26 }
 0x429   : > { %3479 = vmatpush1.msra.mxu0 %v3432_v27  ;;  %v3388_v27 = vld [vmem:[#allocation8] sm:$0x3] }
 0x42a   : > { %3480 = vmatprep.subr.mxu0 %v3431_v28 }
 0x42b   : > { %3481 = vmatpush1.msra.mxu0 %v3430_v29 }
 0x42c   : > { %3482 = vmatprep.subr.mxu0 %v3429_v30 }
 0x42d   : > { %3483 = vmatpush1.msra.mxu0 %v3428_v31 }
 0x42e   : > { %3484 = vmatprep.subr.mxu0 %v3427_v32 }
 0x42f   : > { %3485 = vmatpush1.msra.mxu0 %v3426_v33  ;;  %v3393_v33 = vrot.slane %v3388_v27, %v8999_v13 }
 0x430   : > { %3486 = vmatprep.subr.mxu0 %v3425_v34 }
 0x431   : > { %3487 = vmatpush1.msra.mxu0 %v3424_v35 }
 0x432   : > { %3488 = vmatprep.subr.mxu0 %v3423_v36 }
 0x433   : > { %3489 = vmatpush1.msra.mxu0 %v3422_v37  ;;  %v3397_v37 = vrot.slane %v3388_v27, %v9001_v19 }
 0x434   : > { %3490 = vmatprep.subr.mxu0 %v3421_v38 }
 0x435   : > { %3491 = vmatpush1.msra.mxu0 %v3420_v39 }
 0x436   : > { %3492 = vmatprep.subr.mxu0 %v3419_v40 }
 0x437   : > { %3493 = vmatpush1.msra.mxu0 %v3418_v41 }
 0x438   : > { %3494 = vmatprep.subr.mxu0 %v3417_v42 }
 0x439   : > { %3495 = vmatpush1.msra.mxu0 %v3416_v43 }
 0x43a   : > { %3496 = vmatprep.subr.mxu0 %v3415_v44 }
 0x43b   : > { %3497 = vmatpush1.msra.mxu0 %v3414_v45 }
 0x43c   : > { %3498 = vmatprep.subr.mxu0 %v3413_v46 }
 0x43d   : > { %3499 = vmatpush1.msra.mxu0 %v3412_v47  ;;  %v3545_v47 = vld [vmem:[#allocation10 + $0x2] sm:$0x3] }
 0x43e   : > { %3500 = vmatprep.subr.mxu0 %v3411_v48 }
 0x43f   : > { %3501 = vmatpush1.msra.mxu0 %v3410_v49  ;;  %v3742_v49 = vld [vmem:[#allocation13 + $0xf8] sm:$0xff] }
 0x440   : > { %3502 = vmatprep.subr.mxu0 %v3409_v50  ;;  %v3543_v50 = vld [vmem:[#allocation10] sm:$0x3] }
 0x441   : > { %3503 = vmatpush1.msra.mxu0 %v3408_v52  ;;  %v3741_v52 = vld [vmem:[#allocation13 + $0xf0] sm:$0xff] }
 0x442   : > { %3504 = vmatprep.subr.mxu0 %v3471_v53  ;;  %v3740_v53 = vld [vmem:[#allocation13 + $0xe8] sm:$0xff] }
 0x443   : > { %3505 = vmatpush2.msra.mxu0 %v3470_v54  ;;  %v3739_v54 = vld [vmem:[#allocation13 + $0xe0] sm:$0xff] }
 0x444   : > { %3506 = vmatprep.subr.mxu0 %v3469_v55  ;;  %v3738_v55 = vld [vmem:[#allocation13 + $0xd8] sm:$0xff] }
 0x445   : > { %3507 = vmatpush2.msra.mxu0 %v3468_v56  ;;  %v3737_v56 = vld [vmem:[#allocation13 + $0xd0] sm:$0xff] }
 0x446   : > { %3508 = vmatprep.subr.mxu0 %v3467_v57  ;;  %v3736_v57 = vld [vmem:[#allocation13 + $0xc8] sm:$0xff] }
 0x447   : > { %3509 = vmatpush2.msra.mxu0 %v3466_v59  ;;  %v3735_v59 = vld [vmem:[#allocation13 + $0xc0] sm:$0xff] }
 0x448   : > { %3510 = vmatprep.subr.mxu0 %v3465_v60  ;;  %v3734_v60 = vld [vmem:[#allocation13 + $0xb8] sm:$0xff] }
 0x449   : > { %3511 = vmatpush2.msra.mxu0 %v3464_v61  ;;  %v3733_v61 = vld [vmem:[#allocation13 + $0xb0] sm:$0xff] }
 0x44a   : > { %3512 = vmatprep.subr.mxu0 %v3463_v62  ;;  %v3732_v62 = vld [vmem:[#allocation13 + $0xa8] sm:$0xff] }
 0x44b   : > { %3513 = vmatpush2.msra.mxu0 %v3462_v1  ;;  %v3731_v1 = vld [vmem:[#allocation13 + $0xa0] sm:$0xff] }
 0x44c   : > { %3514 = vmatprep.subr.mxu0 %v3461_v2  ;;  %v3730_v2 = vld [vmem:[#allocation13 + $0x98] sm:$0xff] }
 0x44d   : > { %3515 = vmatpush2.msra.mxu0 %v3460_v3  ;;  %v3729_v3 = vld [vmem:[#allocation13 + $0x90] sm:$0xff] }
 0x44e   : > { %3516 = vmatprep.subr.mxu0 %v3459_v4  ;;  %v3728_v4 = vld [vmem:[#allocation13 + $0x88] sm:$0xff] }
 0x44f   : > { %3517 = vmatpush2.msra.mxu0 %v3458_v5  ;;  %v3727_v5 = vld [vmem:[#allocation13 + $0x80] sm:$0xff] }
 0x450   : > { %3518 = vmatprep.subr.mxu0 %v3457_v51  ;;  %v3726_v51 = vld [vmem:[#allocation13 + $0x78] sm:$0xff] }
 0x451   : > { %3519 = vmatpush2.msra.mxu0 %v3456_v6  ;;  %v3725_v6 = vld [vmem:[#allocation13 + $0x70] sm:$0xff] }
 0x452   : > { %3520 = vmatprep.subr.mxu0 %v3455_v58  ;;  %v3724_v58 = vld [vmem:[#allocation13 + $0x68] sm:$0xff] }
 0x453   : > { %3521 = vmatpush2.msra.mxu0 %v3454_v63  ;;  %v3723_v63 = vld [vmem:[#allocation13 + $0x60] sm:$0xff] }
 0x454   : > { %3522 = vmatprep.subr.mxu0 %v3453_v7  ;;  %v3722_v7 = vld [vmem:[#allocation13 + $0x58] sm:$0xff] }
 0x455   : > { %3523 = vmatpush2.msra.mxu0 %v3452_v8  ;;  %v3721_v8 = vld [vmem:[#allocation13 + $0x50] sm:$0xff] }
 0x456   : > { %3524 = vmatprep.subr.mxu0 %v3451_v9  ;;  %v3720_v9 = vld [vmem:[#allocation13 + $0x48] sm:$0xff] }
 0x457   : > { %3525 = vmatpush2.msra.mxu0 %v3450_v10  ;;  %v3719_v10 = vld [vmem:[#allocation13 + $0x40] sm:$0xff] }
 0x458   : > { %3526 = vmatprep.subr.mxu0 %v3449_v11  ;;  %v3718_v11 = vld [vmem:[#allocation13 + $0x38] sm:$0xff] }
 0x459   : > { %3527 = vmatpush2.msra.mxu0 %v3448_v12  ;;  %v3717_v12 = vld [vmem:[#allocation13 + $0x30] sm:$0xff] }
 0x45a   : > { %3528 = vmatprep.subr.mxu0 %v3447_v14  ;;  %v3716_v14 = vld [vmem:[#allocation13 + $0x28] sm:$0xff] }
 0x45b   : > { %3529 = vmatpush2.msra.mxu0 %v3446_v15  ;;  %v3715_v15 = vld [vmem:[#allocation13 + $0x20] sm:$0xff] }
 0x45c   : > { %3530 = vmatprep.subr.mxu0 %v3445_v16  ;;  %v3714_v16 = vld [vmem:[#allocation13 + $0x18] sm:$0xff] }
 0x45d   : > { %3531 = vmatpush2.msra.mxu0 %v3444_v17  ;;  %v3713_v17 = vld [vmem:[#allocation13 + $0x10] sm:$0xff] }
 0x45e   : > { %3532 = vmatprep.subr.mxu0 %v3443_v18  ;;  %v3712_v18 = vld [vmem:[#allocation13 + $0x8] sm:$0xff] }
 0x45f   : > { %3533 = vmatpush2.msra.mxu0 %v3442_v20  ;;  %v3711_v20 = vld [vmem:[#allocation13] sm:$0xff] }
 0x460   : > { %3534 = vmatprep.subr.mxu0 %v3441_v21 }
 0x461   : > { %3535 = vmatpush2.msra.mxu0 %v3440_v22 }
 0x462   : > { %7412 = vmatprep.subr.mxu0 %v8441_v0 }
 0x4a0   : > { %v3135_v23 = vpop.f32.mrf.mxu0 }
 0x4a2   : > { %v3137_v24 = vpop.f32.mrf.mxu0 }
 0x4a4   : > { %v3215_v25 = vpop.f32.mrf.mxu0 }
 0x4a5   : > { %v3216_v28 = vadd.f32 %v3215_v25, %v3135_v23 }
 0x4a6   : > { %v3217_v26 = vpop.f32.mrf.mxu0 }
 0x4a7   : > { %v3218_v31 = vadd.f32 %v3217_v26, %v3137_v24  ;;  %v7236_v24 = vld [vmem:[%s9498_s21] ss:$0 sm:$0xff]  ;;  %s9501_s21 = sld [smem:[#allocation59_spill]] }
 0x4e1   : > { %v3297_v29 = vpop.f32.mrf.mxu0  ;;  %v3381_v30 = vpop.f32.mrf.mxu1 }
 0x4e2   : > { %v3302_v32 = vadd.f32 %v3297_v29, %v3216_v28 }
 0x4e3   : > { %v3299_v34 = vpop.f32.mrf.mxu0  ;;  %v3383_v38 = vpop.f32.mrf.mxu1 }
 0x4e4   : > { %v3386_v35 = vadd.f32 %v3381_v30, %v3302_v32  ;;  %v3303_v36 = vadd.f32 %v3299_v34, %v3218_v31  ;;  %v3816_v31 = vld [vmem:[#allocation11 + $0x1] sm:$0x1]  ;;  %v3814_v34 = vld [vmem:[#allocation11] sm:$0x1] }
 0x4e6   : > { %v3400_v39 = vadd.f32 %v3393_v33, %v3386_v35  ;;  %v3387_v40 = vadd.f32 %v3383_v38, %v3303_v36  ;;  %v4004_v33 = vld [vmem:[#allocation17 + $0xf8] sm:$0xff]  ;;  %v4003_v35 = vld [vmem:[#allocation17 + $0xf0] sm:$0xff]  ;;  %v4002_v36 = vld [vmem:[#allocation17 + $0xe8] sm:$0xff] }
 0x4e7   : > { %v4000_v38 = vld [vmem:[#allocation17 + $0xd8] sm:$0xff] }
 0x4e8   : > { %v3401_v41 = vadd.f32 %v3397_v37, %v3387_v40  ;;  %v3404_v42 = vmul.f32 0.01, %v3400_v39  ;;  %vm3402_vm8 = vcmp.ge.f32.partialorder %v3400_v39, 0.0  ;;  %v4001_v37 = vld [vmem:[#allocation17 + $0xe0] sm:$0xff]  ;;  %v3998_v40 = vld [vmem:[#allocation17 + $0xc8] sm:$0xff] }
 0x4ea   : > { %vm3403_vm7 = vcmp.ge.f32.partialorder %v3401_v41, 0.0  ;;  %v3405_v43 = vmul.f32 0.01, %v3401_v41  ;;  %v3406_v45 = vsel %vm3402_vm8, %v3400_v39, %v3404_v42  ;;  %v3999_v39 = vld [vmem:[#allocation17 + $0xd0] sm:$0xff]  ;;  %v3996_v42 = vld [vmem:[#allocation17 + $0xb8] sm:$0xff] }
 0x4ec   : > { %v3407_v44 = vsel %vm3403_vm7, %v3401_v41, %v3405_v43  ;;  %v3997_v41 = vld [vmem:[#allocation17 + $0xc0] sm:$0xff]  ;;  %v3995_v43 = vld [vmem:[#allocation17 + $0xb0] sm:$0xff] }
 0x4ed   : > { %3536 = vmatprep.mubr.f32.mxu0 %v3407_v44  ;;  %v3994_v44 = vld [vmem:[#allocation17 + $0xa8] sm:$0xff] }
 0x4ee   : > { %3537 = vmatmul.mubr.f32.vlgmr.msra.gmra.mxu0 %v3406_v45  ;;  %v3993_v45 = vld [vmem:[#allocation17 + $0xa0] sm:$0xff] }
 0x4ef   : > { %7414 = vmatprep.mubr.msk.f32.mxu0 %vm8442_vm9, %v8441_v0 }
 0x5ae   : > { %v3538_v46 = vpop.f32.mrf.mxu0 }
 0x5b0   : > { %v3540_v48 = vpop.f32.mrf.mxu0 }
 0x5b1   : > { %7393 = vmatpush3.msk.msra.mxu1 %vm3550_vm10, %v3540_v48  ;;  %v3990_v48 = vld [vmem:[#allocation17 + $0x88] sm:$0xff] }
 0x5b2   : > { %7395 = vmatmul.mubr.msk.f32.vlgmr.msra.gmra.mxu1 %vm3546_vm11, %v3545_v47  ;;  %7397 = vmatprep.subr.mxu1 %v8441_v0  ;;  %v3991_v47 = vld [vmem:[#allocation17 + $0x90] sm:$0xff] }
 0x5b3   : > { %7398 = vmatpush3.msk.msra.mxu1 %vm3550_vm10, %v3538_v46  ;;  %7399 = vmatprep.mubr.msk.f32.mxu1 %vm8442_vm9, %v8441_v0  ;;  %v3992_v46 = vld [vmem:[#allocation17 + $0x98] sm:$0xff]  ;;  %vm6035_vm10 = vcmask 1042432  }
 0x5b4   : > { %3743 = vmatprep.subr.mxu1 %v3742_v49  ;;  %v3989_v49 = vld [vmem:[#allocation17 + $0x80] sm:$0xff] }
 0x5b6   : > { %7400 = vmatmul.mubr.msk.f32.vlgmr.msra.gmra.mxu1 %vm3546_vm11, %v3543_v50  ;;  %v3988_v50 = vld [vmem:[#allocation17 + $0x78] sm:$0xff] }
 0x5b7   : > { %3744 = vmatpush1.msra.mxu1 %v3741_v52  ;;  %3807 = vmatprep.mubr.f32.mxu1 %v8441_v0  ;;  %v3987_v52 = vld [vmem:[#allocation17 + $0x70] sm:$0xff] }
 0x5b8   : > { %3745 = vmatprep.subr.mxu1 %v3740_v53  ;;  %v3986_v53 = vld [vmem:[#allocation17 + $0x68] sm:$0xff] }
 0x5b9   : > { %3746 = vmatpush1.msra.mxu1 %v3739_v54  ;;  %v3985_v54 = vld [vmem:[#allocation17 + $0x60] sm:$0xff] }
 0x5ba   : > { %3747 = vmatprep.subr.mxu1 %v3738_v55  ;;  %v3984_v55 = vld [vmem:[#allocation17 + $0x58] sm:$0xff] }
 0x5bb   : > { %3748 = vmatpush1.msra.mxu1 %v3737_v56  ;;  %v3983_v56 = vld [vmem:[#allocation17 + $0x50] sm:$0xff] }
 0x5bc   : > { %3749 = vmatprep.subr.mxu1 %v3736_v57  ;;  %v3982_v57 = vld [vmem:[#allocation17 + $0x48] sm:$0xff] }
 0x5bd   : > { %3750 = vmatpush1.msra.mxu1 %v3735_v59  ;;  %v3981_v59 = vld [vmem:[#allocation17 + $0x40] sm:$0xff] }
 0x5be   : > { %3751 = vmatprep.subr.mxu1 %v3734_v60  ;;  %v3980_v60 = vld [vmem:[#allocation17 + $0x38] sm:$0xff] }
 0x5bf   : > { %3752 = vmatpush1.msra.mxu1 %v3733_v61  ;;  %v3979_v61 = vld [vmem:[#allocation17 + $0x30] sm:$0xff] }
 0x5c0   : > { %3753 = vmatprep.subr.mxu1 %v3732_v62  ;;  %v3978_v62 = vld [vmem:[#allocation17 + $0x28] sm:$0xff] }
 0x5c1   : > { %3754 = vmatpush1.msra.mxu1 %v3731_v1  ;;  %v3977_v1 = vld [vmem:[#allocation17 + $0x20] sm:$0xff] }
 0x5c2   : > { %3755 = vmatprep.subr.mxu1 %v3730_v2  ;;  %v3976_v2 = vld [vmem:[#allocation17 + $0x18] sm:$0xff] }
 0x5c3   : > { %3756 = vmatpush1.msra.mxu1 %v3729_v3  ;;  %v3975_v3 = vld [vmem:[#allocation17 + $0x10] sm:$0xff] }
 0x5c4   : > { %3757 = vmatprep.subr.mxu1 %v3728_v4  ;;  %v3974_v4 = vld [vmem:[#allocation17 + $0x8] sm:$0xff] }
 0x5c5   : > { %3758 = vmatpush1.msra.mxu1 %v3727_v5  ;;  %v3973_v5 = vld [vmem:[#allocation17] sm:$0xff] }
 0x5c6   : > { %3759 = vmatprep.subr.mxu1 %v3726_v51 }
 0x5c7   : > { %3760 = vmatpush1.msra.mxu1 %v3725_v6 }
 0x5c8   : > { %3761 = vmatprep.subr.mxu1 %v3724_v58 }
 0x5c9   : > { %3762 = vmatpush1.msra.mxu1 %v3723_v63  ;;  %v3971_v63 = vld [vmem:[#allocation14] sm:$0x1] }
 0x5ca   : > { %3763 = vmatprep.subr.mxu1 %v3722_v7 }
 0x5cb   : > { %3764 = vmatpush1.msra.mxu1 %v3721_v8 }
 0x5cc   : > { %3765 = vmatprep.subr.mxu1 %v3720_v9 }
 0x5cd   : > { %3766 = vmatpush1.msra.mxu1 %v3719_v10 }
 0x5ce   : > { %3767 = vmatprep.subr.mxu1 %v3718_v11  ;;  %v4078_v11 = vld [vmem:[#allocation16 + $0x1] sm:$0x1] }
 0x5cf   : > { %3768 = vmatpush1.msra.mxu1 %v3717_v12 }
 0x5d0   : > { %3769 = vmatprep.subr.mxu1 %v3716_v14  ;;  %v4274_v14 = vld [vmem:[#allocation20 + $0xf8] sm:$0xff] }
 0x5d1   : > { %3770 = vmatpush1.msra.mxu1 %v3715_v15  ;;  %v4076_v15 = vld [vmem:[#allocation16] sm:$0x1] }
 0x5d2   : > { %3771 = vmatprep.subr.mxu1 %v3714_v16  ;;  %v4273_v16 = vld [vmem:[#allocation20 + $0xf0] sm:$0xff] }
 0x5d3   : > { %3772 = vmatpush1.msra.mxu1 %v3713_v17  ;;  %v4272_v17 = vld [vmem:[#allocation20 + $0xe8] sm:$0xff] }
 0x5d4   : > { %3773 = vmatprep.subr.mxu1 %v3712_v18  ;;  %v4271_v18 = vld [vmem:[#allocation20 + $0xe0] sm:$0xff] }
 0x5d5   : > { %3774 = vmatpush1.msra.mxu1 %v3711_v20  ;;  %v4270_v20 = vld [vmem:[#allocation20 + $0xd8] sm:$0xff] }
 0x5d6   : > { %7402 = vmatprep.subr.mxu1 %v8441_v0 }
 0x672   : > { %v3620_v21 = vpop.f32.mrf.mxu1 }
 0x674   : > { %v7396_v22 = vpop.f32.mrf.mxu1 }
 0x675   : > { %v4268_v22 = vld [vmem:[#allocation20 + $0xc8] sm:$0xff] }
 0x676   : > { %v3696_v23 = vpop.f32.mrf.mxu1 }
 0x677   : > { %v3697_v25 = vadd.f32 %v3696_v23, %v3620_v21  ;;  %v4269_v21 = vld [vmem:[#allocation20 + $0xd0] sm:$0xff]  ;;  %v4267_v23 = vld [vmem:[#allocation20 + $0xc0] sm:$0xff] }
 0x678   : > { %v7401_v26 = vpop.f32.mrf.mxu1 }
 0x679   : > { %v3707_v27 = vadd.f32 %v7236_v24, %v3697_v25  ;;  %v4266_v24 = vld [vmem:[#allocation20 + $0xb8] sm:$0xff]  ;;  %v4265_v25 = vld [vmem:[#allocation20 + $0xb0] sm:$0xff]  ;;  %v4264_v26 = vld [vmem:[#allocation20 + $0xa8] sm:$0xff] }
 0x67b   : > { %v3709_v28 = vmul.f32 0.01, %v3707_v27  ;;  %vm3708_vm12 = vcmp.ge.f32.partialorder %v3707_v27, 0.0 }
 0x67d   : > { %v9121_v29 = vsel %vm3708_vm12, %v3707_v27, %v3709_v28  ;;  %v4263_v27 = vld [vmem:[#allocation20 + $0xa0] sm:$0xff]  ;;  %v4262_v28 = vld [vmem:[#allocation20 + $0x98] sm:$0xff] }
 0x67e   : > { %3808 = vmatmul.mubr.f32.vlgmr.msra.gmra.mxu1 %v9121_v29 }
 0x67f   : > { %7404 = vmatprep.mubr.msk.f32.mxu1 %vm8442_vm9, %v8441_v0 }
 0x73e   : > { %v3809_v30 = vpop.f32.mrf.mxu1 }
 0x740   : > { %v3811_v32 = vpop.f32.mrf.mxu1 }
 0x741   : > { %7403 = vmatpush3.msk.msra.mxu1 %vm3821_vm13, %v3811_v32  ;;  %v4258_v32 = vld [vmem:[#allocation20 + $0x78] sm:$0xff] }
 0x742   : > { %7405 = vmatmul.mubr.msk.f32.vlgmr.msra.gmra.mxu1 %vm3817_vm14, %v3816_v31  ;;  %7407 = vmatprep.subr.mxu1 %v8441_v0  ;;  %v4259_v31 = vld [vmem:[#allocation20 + $0x80] sm:$0xff] }
 0x743   : > { %7408 = vmatpush3.msk.msra.mxu1 %vm3821_vm13, %v3809_v30  ;;  %7409 = vmatprep.mubr.msk.f32.mxu1 %vm8442_vm9, %v8441_v0  ;;  %v4260_v30 = vld [vmem:[#allocation20 + $0x88] sm:$0xff] }
 0x744   : > { %4005 = vmatprep.subr.mxu1 %v4004_v33  ;;  %v4257_v33 = vld [vmem:[#allocation20 + $0x70] sm:$0xff] }
 0x746   : > { %7410 = vmatmul.mubr.msk.f32.vlgmr.msra.gmra.mxu1 %vm3817_vm14, %v3814_v34  ;;  %v4256_v34 = vld [vmem:[#allocation20 + $0x68] sm:$0xff] }
 0x747   : > { %4006 = vmatpush1.msra.mxu1 %v4003_v35  ;;  %4069 = vmatprep.mubr.f32.mxu1 %v8441_v0  ;;  %v4255_v35 = vld [vmem:[#allocation20 + $0x60] sm:$0xff] }
 0x748   : > { %4007 = vmatprep.subr.mxu1 %v4002_v36  ;;  %v4254_v36 = vld [vmem:[#allocation20 + $0x58] sm:$0xff] }
 0x749   : > { %4008 = vmatpush1.msra.mxu1 %v4001_v37  ;;  %v4253_v37 = vld [vmem:[#allocation20 + $0x50] sm:$0xff] }
 0x74a   : > { %4009 = vmatprep.subr.mxu1 %v4000_v38  ;;  %v4252_v38 = vld [vmem:[#allocation20 + $0x48] sm:$0xff] }
 0x74b   : > { %4010 = vmatpush1.msra.mxu1 %v3999_v39  ;;  %v4251_v39 = vld [vmem:[#allocation20 + $0x40] sm:$0xff] }
 0x74c   : > { %4011 = vmatprep.subr.mxu1 %v3998_v40  ;;  %v4250_v40 = vld [vmem:[#allocation20 + $0x38] sm:$0xff] }
 0x74d   : > { %4012 = vmatpush1.msra.mxu1 %v3997_v41  ;;  %v4249_v41 = vld [vmem:[#allocation20 + $0x30] sm:$0xff] }
 0x74e   : > { %4013 = vmatprep.subr.mxu1 %v3996_v42  ;;  %v4248_v42 = vld [vmem:[#allocation20 + $0x28] sm:$0xff] }
 0x74f   : > { %4014 = vmatpush1.msra.mxu1 %v3995_v43  ;;  %v4247_v43 = vld [vmem:[#allocation20 + $0x20] sm:$0xff] }
 0x750   : > { %4015 = vmatprep.subr.mxu1 %v3994_v44  ;;  %v4246_v44 = vld [vmem:[#allocation20 + $0x18] sm:$0xff] }
 0x751   : > { %4016 = vmatpush1.msra.mxu1 %v3993_v45  ;;  %v4245_v45 = vld [vmem:[#allocation20 + $0x10] sm:$0xff] }
 0x752   : > { %4017 = vmatprep.subr.mxu1 %v3992_v46  ;;  %v4244_v46 = vld [vmem:[#allocation20 + $0x8] sm:$0xff] }
 0x753   : > { %4018 = vmatpush1.msra.mxu1 %v3991_v47  ;;  %v4243_v47 = vld [vmem:[#allocation20] sm:$0xff] }
 0x754   : > { %4019 = vmatprep.subr.mxu1 %v3990_v48 }
 0x755   : > { %4020 = vmatpush1.msra.mxu1 %v3989_v49 }
 0x756   : > { %4021 = vmatprep.subr.mxu1 %v3988_v50 }
 0x757   : > { %4022 = vmatpush1.msra.mxu1 %v3987_v52  ;;  %v4231_v52 = vld [vmem:[#allocation19] sm:$0x1] }
 0x758   : > { %4023 = vmatprep.subr.mxu1 %v3986_v53 }
 0x759   : > { %4024 = vmatpush1.msra.mxu1 %v3985_v54 }
 0x75a   : > { %4025 = vmatprep.subr.mxu1 %v3984_v55 }
 0x75b   : > { %4026 = vmatpush1.msra.mxu1 %v3983_v56 }
 0x75c   : > { %4027 = vmatprep.subr.mxu1 %v3982_v57 }
 0x75d   : > { %4028 = vmatpush1.msra.mxu1 %v3981_v59  ;;  %v4233_v59 = vld [vmem:[%s1255_s26] sm:$0x1]  ;;  %s9503_s26 = sld [smem:[#allocation64_spill]] }
 0x75e   : > { %4029 = vmatprep.subr.mxu1 %v3980_v60 }
 0x75f   : > { %4030 = vmatpush1.msra.mxu1 %v3979_v61 }
 0x760   : > { %4031 = vmatprep.subr.mxu1 %v3978_v62 }
 0x761   : > { %4032 = vmatpush1.msra.mxu1 %v3977_v1 }
 0x762   : > { %4033 = vmatprep.subr.mxu1 %v3976_v2  ;;  %v7245_v2 = vld [vmem:[%s9500_s10 + $0x2] sm:$0x3] }
 0x763   : > { %4034 = vmatpush1.msra.mxu1 %v3975_v3 }
 0x764   : > { %4035 = vmatprep.subr.mxu1 %v3974_v4  ;;  %v4536_v4 = vld [vmem:[#allocation23 + $0xf8] sm:$0xff] }
 0x765   : > { %4036 = vmatpush1.msra.mxu1 %v3973_v5  ;;  %v4346_v5 = vld [vmem:[%s9500_s10] sm:$0x3]  ;;  %s8227_s10 = scalar_lea.vmem %s6752_s6, 16 }
 0x766   : > { %4070 = vmatmul.mubr.f32.vlgmr.msra.gmra.mxu1 %v9121_v29  ;;  %7422 = vmatprep.subr.mxu1 %v8441_v0  ;;  %v4261_v29 = vld [vmem:[#allocation20 + $0x90] sm:$0xff]  ;;  %p8228_p12 = scmp.ne.s32.totalorder %s6752_s6, %s8227_s10 }
 0x767   : > { %7424 = vmatprep.mubr.msk.f32.mxu1 %vm8442_vm9, %v8441_v0 }
 0x768   : > { %p8229_p9 = pnand %p8228_p12, %p9505_p4 }
 0x76a   : > { %p8230_p7 = pneg %p8229_p9 }
 0x802   : > { %v3891_v51 = vpop.f32.mrf.mxu1 }
 0x804   : > { %v7406_v6 = vpop.f32.mrf.mxu1 }
 0x805   : > { %v4534_v6 = vld [vmem:[#allocation23 + $0xe8] sm:$0xff] }
 0x806   : > { %v3967_v58 = vpop.f32.mrf.mxu1 }
 0x807   : > { %v3968_v7 = vadd.f32 %v3967_v58, %v3891_v51  ;;  %v4535_v51 = vld [vmem:[#allocation23 + $0xf0] sm:$0xff]  ;;  %v4533_v58 = vld [vmem:[#allocation23 + $0xe0] sm:$0xff] }
 0x808   : > { %v7411_v8 = vpop.f32.mrf.mxu1 }
 0x809   : > { %v9141_v9 = vadd.f32 %v3971_v63, %v3968_v7  ;;  %v4532_v63 = vld [vmem:[#allocation23 + $0xd8] sm:$0xff]  ;;  %v4531_v7 = vld [vmem:[#allocation23 + $0xd0] sm:$0xff]  ;;  %v4530_v8 = vld [vmem:[#allocation23 + $0xc8] sm:$0xff] }
 0x80b   : > { %4240 = vst.msk [vmem:[%s9419_s23] sm:$0x1] %vm4239_vm15, %v9141_v9 }
 0x826   : > { %v4071_v10 = vpop.f32.mrf.mxu1 }
 0x828   : > { %v4073_v12 = vpop.f32.mrf.mxu1 }
 0x829   : > { %7413 = vmatpush3.msk.msra.mxu0 %vm3821_vm13, %v4073_v12  ;;  %v4526_v12 = vld [vmem:[#allocation23 + $0xa8] sm:$0xff] }
 0x82a   : > { %7415 = vmatmul.mubr.msk.f32.vlgmr.msra.gmra.mxu0 %vm3817_vm14, %v4078_v11  ;;  %7417 = vmatprep.subr.mxu0 %v8441_v0  ;;  %v4527_v11 = vld [vmem:[#allocation23 + $0xb0] sm:$0xff] }
 0x82b   : > { %7418 = vmatpush3.msk.msra.mxu0 %vm3821_vm13, %v4071_v10  ;;  %7419 = vmatprep.mubr.msk.f32.mxu0 %vm8442_vm9, %v8441_v0  ;;  %v4528_v10 = vld [vmem:[#allocation23 + $0xb8] sm:$0xff] }
 0x82c   : > { %4275 = vmatprep.subr.mxu0 %v4274_v14  ;;  %v4525_v14 = vld [vmem:[#allocation23 + $0xa0] sm:$0xff] }
 0x82e   : > { %7420 = vmatmul.mubr.msk.f32.vlgmr.msra.gmra.mxu0 %vm3817_vm14, %v4076_v15  ;;  %v4524_v15 = vld [vmem:[#allocation23 + $0x98] sm:$0xff] }
 0x82f   : > { %4339 = vmatprep.mubr.f32.mxu0 %v8441_v0  ;;  %4276 = vmatpush1.msra.mxu0 %v4273_v16  ;;  %v4523_v16 = vld [vmem:[#allocation23 + $0x90] sm:$0xff] }
 0x830   : > { %4277 = vmatprep.subr.mxu0 %v4272_v17  ;;  %v4522_v17 = vld [vmem:[#allocation23 + $0x88] sm:$0xff] }
 0x831   : > { %4278 = vmatpush1.msra.mxu0 %v4271_v18  ;;  %v4521_v18 = vld [vmem:[#allocation23 + $0x80] sm:$0xff] }
 0x832   : > { %4279 = vmatprep.subr.mxu0 %v4270_v20  ;;  %v4520_v20 = vld [vmem:[#allocation23 + $0x78] sm:$0xff] }
 0x833   : > { %4280 = vmatpush1.msra.mxu0 %v4269_v21  ;;  %v4519_v21 = vld [vmem:[#allocation23 + $0x70] sm:$0xff] }
 0x834   : > { %4281 = vmatprep.subr.mxu0 %v4268_v22  ;;  %v4518_v22 = vld [vmem:[#allocation23 + $0x68] sm:$0xff] }
 0x835   : > { %4282 = vmatpush1.msra.mxu0 %v4267_v23  ;;  %v4517_v23 = vld [vmem:[#allocation23 + $0x60] sm:$0xff] }
 0x836   : > { %4283 = vmatprep.subr.mxu0 %v4266_v24  ;;  %v4516_v24 = vld [vmem:[#allocation23 + $0x58] sm:$0xff] }
 0x837   : > { %4284 = vmatpush1.msra.mxu0 %v4265_v25  ;;  %v4515_v25 = vld [vmem:[#allocation23 + $0x50] sm:$0xff] }
 0x838   : > { %4285 = vmatprep.subr.mxu0 %v4264_v26  ;;  %v4514_v26 = vld [vmem:[#allocation23 + $0x48] sm:$0xff] }
 0x839   : > { %4286 = vmatpush1.msra.mxu0 %v4263_v27  ;;  %v4513_v27 = vld [vmem:[#allocation23 + $0x40] sm:$0xff] }
 0x83a   : > { %4287 = vmatprep.subr.mxu0 %v4262_v28  ;;  %v4512_v28 = vld [vmem:[#allocation23 + $0x38] sm:$0xff] }
 0x83b   : > { %4288 = vmatpush1.msra.mxu0 %v4261_v29  ;;  %v4511_v29 = vld [vmem:[#allocation23 + $0x30] sm:$0xff] }
 0x83c   : > { %4289 = vmatprep.subr.mxu0 %v4260_v30  ;;  %v4510_v30 = vld [vmem:[#allocation23 + $0x28] sm:$0xff] }
 0x83d   : > { %4290 = vmatpush1.msra.mxu0 %v4259_v31  ;;  %v4509_v31 = vld [vmem:[#allocation23 + $0x20] sm:$0xff] }
 0x83e   : > { %4291 = vmatprep.subr.mxu0 %v4258_v32  ;;  %v4508_v32 = vld [vmem:[#allocation23 + $0x18] sm:$0xff] }
 0x83f   : > { %4292 = vmatpush1.msra.mxu0 %v4257_v33  ;;  %v4507_v33 = vld [vmem:[#allocation23 + $0x10] sm:$0xff] }
 0x840   : > { %4293 = vmatprep.subr.mxu0 %v4256_v34  ;;  %v4506_v34 = vld [vmem:[#allocation23 + $0x8] sm:$0xff] }
 0x841   : > { %4294 = vmatpush1.msra.mxu0 %v4255_v35  ;;  %v4505_v35 = vld [vmem:[#allocation23] sm:$0xff] }
 0x842   : > { %4295 = vmatprep.subr.mxu0 %v4254_v36 }
 0x843   : > { %4296 = vmatpush1.msra.mxu0 %v4253_v37 }
 0x844   : > { %4297 = vmatprep.subr.mxu0 %v4252_v38 }
 0x845   : > { %4298 = vmatpush1.msra.mxu0 %v4251_v39  ;;  %v4503_v39 = vld [vmem:[#allocation22] sm:$0x3] }
 0x846   : > { %4299 = vmatprep.subr.mxu0 %v4250_v40 }
 0x847   : > { %4300 = vmatpush1.msra.mxu0 %v4249_v41 }
 0x848   : > { %4301 = vmatprep.subr.mxu0 %v4248_v42 }
 0x849   : > { %4302 = vmatpush1.msra.mxu0 %v4247_v43  ;;  %v4897_v43 = vld [vmem:[#allocation26 + $0x3d8] sm:$0xff] }
 0x84a   : > { %4303 = vmatprep.subr.mxu0 %v4246_v44  ;;  %v4896_v44 = vld [vmem:[#allocation26 + $0x3d0] sm:$0xff] }
 0x84b   : > { %4304 = vmatpush1.msra.mxu0 %v4245_v45  ;;  %v4889_v45 = vld [vmem:[#allocation26 + $0x398] sm:$0xff] }
 0x84c   : > { %4305 = vmatprep.subr.mxu0 %v4244_v46  ;;  %v4888_v46 = vld [vmem:[#allocation26 + $0x390] sm:$0xff] }
 0x84d   : > { %4306 = vmatpush1.msra.mxu0 %v4243_v47  ;;  %v4881_v47 = vld [vmem:[#allocation26 + $0x358] sm:$0xff] }
 0x84e   : > { %7432 = vmatprep.subr.mxu0 %v8441_v0 }
 0x8ea   : > { %v4151_v48 = vpop.f32.mrf.mxu0 }
 0x8ec   : > { %v7416_v49 = vpop.f32.mrf.mxu0 }
 0x8ed   : > { %v4873_v49 = vld [vmem:[#allocation26 + $0x318] sm:$0xff] }
 0x8ee   : > { %v4227_v50 = vpop.f32.mrf.mxu0 }
 0x8ef   : > { %v4228_v53 = vadd.f32 %v4227_v50, %v4151_v48  ;;  %v4880_v48 = vld [vmem:[#allocation26 + $0x350] sm:$0xff] }
 0x8f0   : > { %v7421_v54 = vpop.f32.mrf.mxu0  ;;  %v4872_v50 = vld [vmem:[#allocation26 + $0x310] sm:$0xff] }
 0x8f1   : > { %v4232_v55 = vadd.f32 %v4231_v52, %v4228_v53  ;;  %v4865_v52 = vld [vmem:[#allocation26 + $0x2d8] sm:$0xff]  ;;  %v4864_v53 = vld [vmem:[#allocation26 + $0x2d0] sm:$0xff] }
 0x8f2   : > { %v4857_v54 = vld [vmem:[#allocation26 + $0x298] sm:$0xff] }
 0x8f3   : > { %v4234_v56 = vmul.f32 0.5, %v4232_v55  ;;  %4241 = vst.msk [vmem:[%s1234_s3] sm:$0x1] %vm4239_vm15, %v4232_v55  ;;  %v4856_v55 = vld [vmem:[#allocation26 + $0x290] sm:$0xff] }
 0x8f5   : > { %v4235_v57 = vmul.f32 1.442695, %v4234_v56  ;;  %v4849_v56 = vld [vmem:[#allocation26 + $0x258] sm:$0xff] }
 0x8f7   : > { %7767 = vpow2.f32 %v4235_v57  ;;  %v4848_v57 = vld [vmem:[#allocation26 + $0x250] sm:$0xff] }
 0x904   : > { %v7768_v60 = vpop.eup %7767 }
 0x905   : > { %v4237_v61 = vmul.f32 %v7768_v60, %v4233_v59  ;;  %v4841_v59 = vld [vmem:[#allocation26 + $0x218] sm:$0xff]  ;;  %v4840_v60 = vld [vmem:[#allocation26 + $0x210] sm:$0xff] }
 0x907   : > { %v4238_v62 = vadd.f32 %v4237_v61, %v9141_v9  ;;  %v4529_v9 = vld [vmem:[#allocation23 + $0xc0] sm:$0xff] }
 0x908   : > { %v4833_v61 = vld [vmem:[#allocation26 + $0x1d8] sm:$0xff] }
 0x909   : > { %4340 = vmatmul.mubr.f32.vlgmr.msra.gmra.mxu0 %v4238_v62  ;;  %4242 = vst.msk [vmem:[%s9418_s16] sm:$0x1] %vm4239_vm15, %v4238_v62  ;;  %v4832_v62 = vld [vmem:[#allocation26 + $0x1d0] sm:$0xff]  ;;  %s9307_s16 = sshll.u32 %s8637_s7, 4  ;;  %s8233_s7 = scalar_lea.vmem %s8232_s12, 32 }
 0x90a   : > { %7434 = vmatprep.mubr.msk.f32.mxu0 %vm8442_vm9, %v8441_v0  ;;  %s9311_s23 = scalar_lea.hbm %s8604_s25, %s9307_s16  ;;  %s9317_s8 = scalar_lea.hbm %s8599_s5, %s9307_s16 }
 0x90b   : > { %p8235_p5 = scmp.lt.s32.totalorder %s8233_s7, %s8227_s10 }
 0x90d   : > { %p8236_p6 = por %p8235_p5, %p8234_p8 }
 0x90f   : > { %p8237_p10 = pnand %p8236_p6, %p8230_p7 }
 0x9c9   : > { %v4341_v1 = vpop.f32.mrf.mxu0 }
 0x9cb   : > { %v4343_v3 = vpop.f32.mrf.mxu0 }
 0x9cc   : > { %7423 = vmatpush3.msk.msra.mxu1 %vm4353_vm2, %v4343_v3  ;;  %v4817_v3 = vld [vmem:[#allocation26 + $0x158] sm:$0xff] }
 0x9cd   : > { %7425 = vmatmul.mubr.msk.f32.vlgmr.msra.gmra.mxu1 %vm4349_vm3, %v7245_v2  ;;  %7427 = vmatprep.subr.mxu1 %v8441_v0  ;;  %v4824_v2 = vld [vmem:[#allocation26 + $0x190] sm:$0xff] }
 0x9ce   : > { %7428 = vmatpush3.msk.msra.mxu1 %vm4353_vm2, %v4341_v1  ;;  %7429 = vmatprep.mubr.msk.f32.mxu1 %vm8442_vm9, %v8441_v0  ;;  %v4825_v1 = vld [vmem:[#allocation26 + $0x198] sm:$0xff] }
 0x9cf   : > { %4537 = vmatprep.subr.mxu1 %v4536_v4 }
 0x9d1   : > { %7430 = vmatmul.mubr.msk.f32.vlgmr.msra.gmra.mxu1 %vm4349_vm3, %v4346_v5  ;;  %v7250_v5 = vld [vmem:[%s9501_s21 + $0x4] sm:$0xf] }
 0x9d2   : > { %4538 = vmatpush1.msra.mxu1 %v4535_v51  ;;  %4601 = vmatprep.mubr.f32.mxu1 %v8441_v0 }
 0x9d3   : > { %4539 = vmatprep.subr.mxu1 %v4534_v6  ;;  %v4895_v6 = vld [vmem:[#allocation26 + $0x3c8] sm:$0xff] }
 0x9d4   : > { %4540 = vmatpush1.msra.mxu1 %v4533_v58  ;;  %v4608_v58 = vld [vmem:[%s9501_s21] sm:$0xf] }
 0x9d5   : > { %4541 = vmatprep.subr.mxu1 %v4532_v63  ;;  %v4894_v63 = vld [vmem:[#allocation26 + $0x3c0] sm:$0xff] }
 0x9d6   : > { %4542 = vmatpush1.msra.mxu1 %v4531_v7  ;;  %v4887_v7 = vld [vmem:[#allocation26 + $0x388] sm:$0xff] }
 0x9d7   : > { %4543 = vmatprep.subr.mxu1 %v4530_v8  ;;  %v4886_v8 = vld [vmem:[#allocation26 + $0x380] sm:$0xff] }
 0x9d8   : > { %4544 = vmatpush1.msra.mxu1 %v4529_v9  ;;  %v4879_v9 = vld [vmem:[#allocation26 + $0x348] sm:$0xff] }
 0x9d9   : > { %4545 = vmatprep.subr.mxu1 %v4528_v10  ;;  %v4878_v10 = vld [vmem:[#allocation26 + $0x340] sm:$0xff] }
 0x9da   : > { %4546 = vmatpush1.msra.mxu1 %v4527_v11  ;;  %v4871_v11 = vld [vmem:[#allocation26 + $0x308] sm:$0xff] }
 0x9db   : > { %4547 = vmatprep.subr.mxu1 %v4526_v12  ;;  %v4870_v12 = vld [vmem:[#allocation26 + $0x300] sm:$0xff] }
 0x9dc   : > { %4548 = vmatpush1.msra.mxu1 %v4525_v14  ;;  %v4863_v14 = vld [vmem:[#allocation26 + $0x2c8] sm:$0xff] }
 0x9dd   : > { %4549 = vmatprep.subr.mxu1 %v4524_v15  ;;  %v4862_v15 = vld [vmem:[#allocation26 + $0x2c0] sm:$0xff] }
 0x9de   : > { %4550 = vmatpush1.msra.mxu1 %v4523_v16  ;;  %v4855_v16 = vld [vmem:[#allocation26 + $0x288] sm:$0xff] }
 0x9df   : > { %4551 = vmatprep.subr.mxu1 %v4522_v17  ;;  %v4854_v17 = vld [vmem:[#allocation26 + $0x280] sm:$0xff] }
 0x9e0   : > { %4552 = vmatpush1.msra.mxu1 %v4521_v18  ;;  %v4847_v18 = vld [vmem:[#allocation26 + $0x248] sm:$0xff] }
 0x9e1   : > { %4553 = vmatprep.subr.mxu1 %v4520_v20  ;;  %v4846_v20 = vld [vmem:[#allocation26 + $0x240] sm:$0xff] }
 0x9e2   : > { %4554 = vmatpush1.msra.mxu1 %v4519_v21  ;;  %v4839_v21 = vld [vmem:[#allocation26 + $0x208] sm:$0xff] }
 0x9e3   : > { %4555 = vmatprep.subr.mxu1 %v4518_v22  ;;  %v4838_v22 = vld [vmem:[#allocation26 + $0x200] sm:$0xff] }
 0x9e4   : > { %4556 = vmatpush1.msra.mxu1 %v4517_v23  ;;  %v4831_v23 = vld [vmem:[#allocation26 + $0x1c8] sm:$0xff] }
 0x9e5   : > { %4557 = vmatprep.subr.mxu1 %v4516_v24  ;;  %v4830_v24 = vld [vmem:[#allocation26 + $0x1c0] sm:$0xff] }
 0x9e6   : > { %4558 = vmatpush1.msra.mxu1 %v4515_v25  ;;  %v4823_v25 = vld [vmem:[#allocation26 + $0x188] sm:$0xff] }
 0x9e7   : > { %4559 = vmatprep.subr.mxu1 %v4514_v26  ;;  %v4822_v26 = vld [vmem:[#allocation26 + $0x180] sm:$0xff] }
 0x9e8   : > { %4560 = vmatpush1.msra.mxu1 %v4513_v27  ;;  %v4815_v27 = vld [vmem:[#allocation26 + $0x148] sm:$0xff] }
 0x9e9   : > { %4561 = vmatprep.subr.mxu1 %v4512_v28  ;;  %v4814_v28 = vld [vmem:[#allocation26 + $0x140] sm:$0xff] }
 0x9ea   : > { %4562 = vmatpush1.msra.mxu1 %v4511_v29  ;;  %v4816_v29 = vld [vmem:[#allocation26 + $0x150] sm:$0xff] }
 0x9eb   : > { %4563 = vmatprep.subr.mxu1 %v4510_v30  ;;  %v4807_v30 = vld [vmem:[#allocation26 + $0x108] sm:$0xff] }
 0x9ec   : > { %4564 = vmatpush1.msra.mxu1 %v4509_v31  ;;  %v4809_v31 = vld [vmem:[#allocation26 + $0x118] sm:$0xff] }
 0x9ed   : > { %4565 = vmatprep.subr.mxu1 %v4508_v32  ;;  %v4806_v32 = vld [vmem:[#allocation26 + $0x100] sm:$0xff] }
 0x9ee   : > { %4566 = vmatpush1.msra.mxu1 %v4507_v33  ;;  %v4808_v33 = vld [vmem:[#allocation26 + $0x110] sm:$0xff] }
 0x9ef   : > { %4567 = vmatprep.subr.mxu1 %v4506_v34  ;;  %v4799_v34 = vld [vmem:[#allocation26 + $0xc8] sm:$0xff] }
 0x9f0   : > { %4568 = vmatpush1.msra.mxu1 %v4505_v35  ;;  %v4801_v35 = vld [vmem:[#allocation26 + $0xd8] sm:$0xff] }
 0x9f1   : > { %4973 = vmatprep.subr.mxu1 %v4897_v43  ;;  %v4785_v43 = vld [vmem:[#allocation26 + $0x58] sm:$0xff] }
 0xa8d   : > { %v4423_v36 = vpop.f32.mrf.mxu1 }
 0xa8f   : > { %v7426_v37 = vpop.f32.mrf.mxu1 }
 0xa90   : > { %v4800_v37 = vld [vmem:[#allocation26 + $0xd0] sm:$0xff] }
 0xa91   : > { %v4499_v38 = vpop.f32.mrf.mxu1 }
 0xa92   : > { %v4500_v40 = vadd.f32 %v4499_v38, %v4423_v36  ;;  %v4798_v36 = vld [vmem:[#allocation26 + $0xc0] sm:$0xff]  ;;  %v4791_v38 = vld [vmem:[#allocation26 + $0x88] sm:$0xff] }
 0xa93   : > { %v7431_v41 = vpop.f32.mrf.mxu1 }
 0xa94   : > { %v4504_v42 = vadd.f32 %v4503_v39, %v4500_v40  ;;  %v4793_v39 = vld [vmem:[#allocation26 + $0x98] sm:$0xff]  ;;  %v4790_v40 = vld [vmem:[#allocation26 + $0x80] sm:$0xff]  ;;  %v4792_v41 = vld [vmem:[#allocation26 + $0x90] sm:$0xff] }
 0xa96   : > { %4602 = vmatmul.mubr.f32.vlgmr.msra.gmra.mxu1 %v4504_v42  ;;  %v4783_v42 = vld [vmem:[#allocation26 + $0x48] sm:$0xff] }
 0xa97   : > { %5037 = vmatprep.mubr.f32.mxu1 %v8441_v0  ;;  %4974 = vmatpush1.msra.mxu1 %v4896_v44  ;;  %v4782_v44 = vld [vmem:[#allocation26 + $0x40] sm:$0xff] }
 0xa98   : > { %4975 = vmatprep.subr.mxu1 %v4889_v45  ;;  %v4784_v45 = vld [vmem:[#allocation26 + $0x50] sm:$0xff] }
 0xa99   : > { %4976 = vmatpush1.msra.mxu1 %v4888_v46  ;;  %v4775_v46 = vld [vmem:[#allocation26 + $0x8] sm:$0xff] }
 0xa9a   : > { %4977 = vmatprep.subr.mxu1 %v4881_v47  ;;  %v4777_v47 = vld [vmem:[#allocation26 + $0x18] sm:$0xff] }
 0xa9b   : > { %4978 = vmatpush1.msra.mxu1 %v4880_v48  ;;  %v4774_v48 = vld [vmem:[#allocation26] sm:$0xff] }
 0xa9c   : > { %4979 = vmatprep.subr.mxu1 %v4873_v49  ;;  %v4776_v49 = vld [vmem:[#allocation26 + $0x10] sm:$0xff] }
 0xa9d   : > { %4980 = vmatpush1.msra.mxu1 %v4872_v50  ;;  %v4899_v50 = vld [vmem:[#allocation26 + $0x3e8] sm:$0xff] }
 0xa9e   : > { %4981 = vmatprep.subr.mxu1 %v4865_v52  ;;  %v4901_v52 = vld [vmem:[#allocation26 + $0x3f8] sm:$0xff] }
 0xa9f   : > { %4982 = vmatpush1.msra.mxu1 %v4864_v53 }
 0xaa0   : > { %4983 = vmatprep.subr.mxu1 %v4857_v54 }
 0xaa1   : > { %4984 = vmatpush1.msra.mxu1 %v4856_v55 }
 0xaa2   : > { %4985 = vmatprep.subr.mxu1 %v4849_v56  ;;  %v7255_v56 = vld [vmem:[#allocation25] ss:$0 sm:$0xff] }
 0xaa3   : > { %4986 = vmatpush1.msra.mxu1 %v4848_v57 }
 0xaa4   : > { %4987 = vmatprep.subr.mxu1 %v4841_v59 }
 0xaa5   : > { %4988 = vmatpush1.msra.mxu1 %v4840_v60 }
 0xaa6   : > { %4989 = vmatprep.subr.mxu1 %v4833_v61 }
 0xaa7   : > { %4990 = vmatpush1.msra.mxu1 %v4832_v62  ;;  %v4898_v62 = vld [vmem:[#allocation26 + $0x3e0] sm:$0xff] }
 0xaa8   : > { %4991 = vmatprep.subr.mxu1 %v4825_v1  ;;  %v4900_v1 = vld [vmem:[#allocation26 + $0x3f0] sm:$0xff] }
 0xaa9   : > { %4992 = vmatpush1.msra.mxu1 %v4824_v2 }
 0xaaa   : > { %4993 = vmatprep.subr.mxu1 %v4817_v3  ;;  %v4891_v3 = vld [vmem:[#allocation26 + $0x3a8] sm:$0xff] }
 0xaab   : > { %4994 = vmatpush1.msra.mxu1 %v4816_v29  ;;  %v4844_v29 = vld [vmem:[#allocation26 + $0x230] sm:$0xff] }
 0xaac   : > { %4995 = vmatprep.subr.mxu1 %v4809_v31  ;;  %v4837_v31 = vld [vmem:[#allocation26 + $0x1f8] sm:$0xff] }
 0xaad   : > { %4996 = vmatpush1.msra.mxu1 %v4808_v33  ;;  %v4836_v33 = vld [vmem:[#allocation26 + $0x1f0] sm:$0xff] }
 0xaae   : > { %4997 = vmatprep.subr.mxu1 %v4801_v35  ;;  %v4829_v35 = vld [vmem:[#allocation26 + $0x1b8] sm:$0xff] }
 0xaaf   : > { %4998 = vmatpush1.msra.mxu1 %v4800_v37  ;;  %v4828_v37 = vld [vmem:[#allocation26 + $0x1b0] sm:$0xff] }
 0xab0   : > { %4999 = vmatprep.subr.mxu1 %v4793_v39  ;;  %v4821_v39 = vld [vmem:[#allocation26 + $0x178] sm:$0xff] }
 0xab1   : > { %5000 = vmatpush1.msra.mxu1 %v4792_v41  ;;  %v4820_v41 = vld [vmem:[#allocation26 + $0x170] sm:$0xff] }
 0xab2   : > { %5001 = vmatprep.subr.mxu1 %v4785_v43  ;;  %v4813_v43 = vld [vmem:[#allocation26 + $0x138] sm:$0xff] }
 0xab3   : > { %5002 = vmatpush1.msra.mxu1 %v4784_v45  ;;  %v4812_v45 = vld [vmem:[#allocation26 + $0x130] sm:$0xff] }
 0xab4   : > { %5003 = vmatprep.subr.mxu1 %v4777_v47  ;;  %v4805_v47 = vld [vmem:[#allocation26 + $0xf8] sm:$0xff] }
 0xab5   : > { %5004 = vmatpush1.msra.mxu1 %v4776_v49  ;;  %v4804_v49 = vld [vmem:[#allocation26 + $0xf0] sm:$0xff] }
 0xab6   : > { %5115 = vmatprep.subr.mxu1 %v4901_v52  ;;  %v4797_v52 = vld [vmem:[#allocation26 + $0xb8] sm:$0xff] }
 0xb56   : > { %v4603_v4 = vpop.f32.mrf.mxu1 }
 0xb58   : > { %v4605_v51 = vpop.f32.mrf.mxu1 }
 0xb59   : > { %7433 = vmatpush3.msk.msra.mxu0 %vm3821_vm13, %v4605_v51  ;;  %v4892_v51 = vld [vmem:[#allocation26 + $0x3b0] sm:$0xff] }
 0xb5a   : > { %7435 = vmatmul.mubr.msk.f32.vlgmr.msra.gmra.mxu0 %vm3817_vm14, %v7250_v5  ;;  %7437 = vmatprep.subr.mxu0 %v8441_v0  ;;  %v4890_v5 = vld [vmem:[#allocation26 + $0x3a0] sm:$0xff] }
 0xb5b   : > { %7438 = vmatpush3.msk.msra.mxu0 %vm3821_vm13, %v4603_v4  ;;  %7439 = vmatprep.mubr.msk.f32.mxu0 %vm8442_vm9, %v8441_v0  ;;  %v4893_v4 = vld [vmem:[#allocation26 + $0x3b8] sm:$0xff]  ;;  %vm6022_vm9 = vcmask 89088  }
 0xb5c   : > { %4902 = vmatprep.subr.mxu0 %v4895_v6  ;;  %v4883_v6 = vld [vmem:[#allocation26 + $0x368] sm:$0xff] }
 0xb5e   : > { %7440 = vmatmul.mubr.msk.f32.vlgmr.msra.gmra.mxu0 %vm3817_vm14, %v4608_v58  ;;  %v4885_v58 = vld [vmem:[#allocation26 + $0x378] sm:$0xff] }
 0xb5f   : > { %4903 = vmatpush1.msra.mxu0 %v4894_v63  ;;  %4966 = vmatprep.mubr.f32.mxu0 %v8441_v0  ;;  %v4882_v63 = vld [vmem:[#allocation26 + $0x360] sm:$0xff] }
 0xb60   : > { %4904 = vmatprep.subr.mxu0 %v4887_v7  ;;  %v4884_v7 = vld [vmem:[#allocation26 + $0x370] sm:$0xff] }
 0xb61   : > { %4905 = vmatpush1.msra.mxu0 %v4886_v8  ;;  %v4875_v8 = vld [vmem:[#allocation26 + $0x328] sm:$0xff] }
 0xb62   : > { %4906 = vmatprep.subr.mxu0 %v4879_v9  ;;  %v4877_v9 = vld [vmem:[#allocation26 + $0x338] sm:$0xff] }
 0xb63   : > { %4907 = vmatpush1.msra.mxu0 %v4878_v10  ;;  %v4874_v10 = vld [vmem:[#allocation26 + $0x320] sm:$0xff] }
 0xb64   : > { %4908 = vmatprep.subr.mxu0 %v4871_v11  ;;  %v4876_v11 = vld [vmem:[#allocation26 + $0x330] sm:$0xff] }
 0xb65   : > { %4909 = vmatpush1.msra.mxu0 %v4870_v12  ;;  %v4867_v12 = vld [vmem:[#allocation26 + $0x2e8] sm:$0xff] }
 0xb66   : > { %4910 = vmatprep.subr.mxu0 %v4863_v14  ;;  %v4869_v14 = vld [vmem:[#allocation26 + $0x2f8] sm:$0xff] }
 0xb67   : > { %4911 = vmatpush1.msra.mxu0 %v4862_v15  ;;  %v4866_v15 = vld [vmem:[#allocation26 + $0x2e0] sm:$0xff] }
 0xb68   : > { %4912 = vmatprep.subr.mxu0 %v4855_v16  ;;  %v4868_v16 = vld [vmem:[#allocation26 + $0x2f0] sm:$0xff] }
 0xb69   : > { %4913 = vmatpush1.msra.mxu0 %v4854_v17  ;;  %v4859_v17 = vld [vmem:[#allocation26 + $0x2a8] sm:$0xff] }
 0xb6a   : > { %4914 = vmatprep.subr.mxu0 %v4847_v18  ;;  %v4861_v18 = vld [vmem:[#allocation26 + $0x2b8] sm:$0xff] }
 0xb6b   : > { %4915 = vmatpush1.msra.mxu0 %v4846_v20  ;;  %v4858_v20 = vld [vmem:[#allocation26 + $0x2a0] sm:$0xff] }
 0xb6c   : > { %4916 = vmatprep.subr.mxu0 %v4839_v21  ;;  %v4860_v21 = vld [vmem:[#allocation26 + $0x2b0] sm:$0xff] }
 0xb6d   : > { %4917 = vmatpush1.msra.mxu0 %v4838_v22  ;;  %v4851_v22 = vld [vmem:[#allocation26 + $0x268] sm:$0xff] }
 0xb6e   : > { %4918 = vmatprep.subr.mxu0 %v4831_v23  ;;  %v4853_v23 = vld [vmem:[#allocation26 + $0x278] sm:$0xff] }
 0xb6f   : > { %4919 = vmatpush1.msra.mxu0 %v4830_v24  ;;  %v4850_v24 = vld [vmem:[#allocation26 + $0x260] sm:$0xff] }
 0xb70   : > { %4920 = vmatprep.subr.mxu0 %v4823_v25  ;;  %v4852_v25 = vld [vmem:[#allocation26 + $0x270] sm:$0xff] }
 0xb71   : > { %4921 = vmatpush1.msra.mxu0 %v4822_v26  ;;  %v4843_v26 = vld [vmem:[#allocation26 + $0x228] sm:$0xff] }
 0xb72   : > { %4922 = vmatprep.subr.mxu0 %v4815_v27  ;;  %v4845_v27 = vld [vmem:[#allocation26 + $0x238] sm:$0xff] }
 0xb73   : > { %4923 = vmatpush1.msra.mxu0 %v4814_v28  ;;  %v4842_v28 = vld [vmem:[#allocation26 + $0x220] sm:$0xff] }
 0xb74   : > { %4924 = vmatprep.subr.mxu0 %v4807_v30  ;;  %v4835_v30 = vld [vmem:[#allocation26 + $0x1e8] sm:$0xff] }
 0xb75   : > { %4925 = vmatpush1.msra.mxu0 %v4806_v32  ;;  %v4834_v32 = vld [vmem:[#allocation26 + $0x1e0] sm:$0xff] }
 0xb76   : > { %4926 = vmatprep.subr.mxu0 %v4799_v34  ;;  %v4827_v34 = vld [vmem:[#allocation26 + $0x1a8] sm:$0xff] }
 0xb77   : > { %4927 = vmatpush1.msra.mxu0 %v4798_v36  ;;  %v4826_v36 = vld [vmem:[#allocation26 + $0x1a0] sm:$0xff] }
 0xb78   : > { %4928 = vmatprep.subr.mxu0 %v4791_v38  ;;  %v4819_v38 = vld [vmem:[#allocation26 + $0x168] sm:$0xff] }
 0xb79   : > { %4929 = vmatpush1.msra.mxu0 %v4790_v40  ;;  %v4818_v40 = vld [vmem:[#allocation26 + $0x160] sm:$0xff] }
 0xb7a   : > { %4930 = vmatprep.subr.mxu0 %v4783_v42  ;;  %v4811_v42 = vld [vmem:[#allocation26 + $0x128] sm:$0xff] }
 0xb7b   : > { %4931 = vmatpush1.msra.mxu0 %v4782_v44  ;;  %v4810_v44 = vld [vmem:[#allocation26 + $0x120] sm:$0xff] }
 0xb7c   : > { %4932 = vmatprep.subr.mxu0 %v4775_v46  ;;  %v4803_v46 = vld [vmem:[#allocation26 + $0xe8] sm:$0xff] }
 0xb7d   : > { %4933 = vmatpush1.msra.mxu0 %v4774_v48  ;;  %v4802_v48 = vld [vmem:[#allocation26 + $0xe0] sm:$0xff] }
 0xb7e   : > { %5044 = vmatprep.subr.mxu0 %v4899_v50  ;;  %v4795_v50 = vld [vmem:[#allocation26 + $0xa8] sm:$0xff] }
 0xc1a   : > { %v4683_v53 = vpop.f32.mrf.mxu0 }
 0xc1c   : > { %v7436_v54 = vpop.f32.mrf.mxu0 }
 0xc1d   : > { %v4796_v54 = vld [vmem:[#allocation26 + $0xb0] sm:$0xff] }
 0xc1e   : > { %v4759_v55 = vpop.f32.mrf.mxu0 }
 0xc1f   : > { %v4760_v57 = vadd.f32 %v4759_v55, %v4683_v53  ;;  %v4794_v53 = vld [vmem:[#allocation26 + $0xa0] sm:$0xff]  ;;  %v4787_v55 = vld [vmem:[#allocation26 + $0x68] sm:$0xff] }
 0xc20   : > { %v7441_v59 = vpop.f32.mrf.mxu0 }
 0xc21   : > { %v4770_v60 = vadd.f32 %v7255_v56, %v4760_v57  ;;  %v4789_v56 = vld [vmem:[#allocation26 + $0x78] sm:$0xff]  ;;  %v4786_v57 = vld [vmem:[#allocation26 + $0x60] sm:$0xff]  ;;  %v4788_v59 = vld [vmem:[#allocation26 + $0x70] sm:$0xff] }
 0xc23   : > { %v4772_v61 = vmul.f32 0.01, %v4770_v60  ;;  %vm4771_vm4 = vcmp.ge.f32.partialorder %v4770_v60, 0.0 }
 0xc25   : > { %v9187_v2 = vsel %vm4771_vm4, %v4770_v60, %v4772_v61  ;;  %v4779_v60 = vld [vmem:[#allocation26 + $0x28] sm:$0xff]  ;;  %v4781_v61 = vld [vmem:[#allocation26 + $0x38] sm:$0xff] }
 0xc26   : > { %4967 = vmatmul.mubr.f32.vlgmr.msra.gmra.mxu0 %v9187_v2  ;;  %5038 = vmatmul.mubr.f32.vlgmr.msra.gmra.mxu1 %v9187_v2 }
 0xc27   : > { %5045 = vmatpush1.msra.mxu0 %v4898_v62  ;;  %5116 = vmatpush1.msra.mxu1 %v4900_v1  ;;  %v4778_v62 = vld [vmem:[#allocation26 + $0x20] sm:$0xff]  ;;  %v4780_v1 = vld [vmem:[#allocation26 + $0x30] sm:$0xff] }
 0xc28   : > { %5046 = vmatprep.subr.mxu0 %v4891_v3  ;;  %5117 = vmatprep.subr.mxu1 %v4893_v4 }
 0xc29   : > { %5047 = vmatpush1.msra.mxu0 %v4890_v5  ;;  %5118 = vmatpush1.msra.mxu1 %v4892_v51  ;;  %v7256_v51 = vld [vmem:[%s9502_s15 + $0x10] sm:$0xff] }
 0xc2a   : > { %5048 = vmatprep.subr.mxu0 %v4883_v6  ;;  %5119 = vmatprep.subr.mxu1 %v4885_v58  ;;  %v5186_v58 = vld [vmem:[%s9502_s15] sm:$0xff] }
 0xc2b   : > { %5049 = vmatpush1.msra.mxu0 %v4882_v63  ;;  %5120 = vmatpush1.msra.mxu1 %v4884_v7  ;;  %v5187_v63 = vld [vmem:[%s9502_s15 + $0x8] sm:$0x7] }
 0xc2c   : > { %5050 = vmatprep.subr.mxu0 %v4875_v8  ;;  %5121 = vmatprep.subr.mxu1 %v4877_v9 }
 0xc2d   : > { %5051 = vmatpush1.msra.mxu0 %v4874_v10  ;;  %5122 = vmatpush1.msra.mxu1 %v4876_v11  ;;  %v7266_v11 = vld [vmem:[%s9502_s15 + $0x20] sm:$0xff] }
 0xc2e   : > { %5052 = vmatprep.subr.mxu0 %v4867_v12  ;;  %5123 = vmatprep.subr.mxu1 %v4869_v14  ;;  %v7272_v12 = vld [vmem:[%s9502_s15 + $0x30] sm:$0xff] }
 0xc2f   : > { %5053 = vmatpush1.msra.mxu0 %v4866_v15  ;;  %5124 = vmatpush1.msra.mxu1 %v4868_v16  ;;  %v5681_v14 = vld [vmem:[#allocation28 + $0x2d8] sm:$0xff]  ;;  %v5683_v15 = vld [vmem:[#allocation28 + $0x2e8] sm:$0xff]  ;;  %v5680_v16 = vld [vmem:[#allocation28 + $0x2d0] sm:$0xff] }
 0xc30   : > { %5054 = vmatprep.subr.mxu0 %v4859_v17  ;;  %5125 = vmatprep.subr.mxu1 %v4861_v18  ;;  %v5682_v17 = vld [vmem:[#allocation28 + $0x2e0] sm:$0xff]  ;;  %v7267_v18 = vld [vmem:[%s9502_s15 + $0x28] sm:$0x7] }
 0xc31   : > { %5055 = vmatpush1.msra.mxu0 %v4858_v20  ;;  %5126 = vmatpush1.msra.mxu1 %v4860_v21  ;;  %v7273_v20 = vld [vmem:[%s9502_s15 + $0x38] sm:$0x7]  ;;  %v5675_v21 = vld [vmem:[#allocation28 + $0x2a8] sm:$0xff] }
 0xc32   : > { %5056 = vmatprep.subr.mxu0 %v4851_v22  ;;  %5127 = vmatprep.subr.mxu1 %v4853_v23  ;;  %v5677_v22 = vld [vmem:[#allocation28 + $0x2b8] sm:$0xff]  ;;  %v5674_v23 = vld [vmem:[#allocation28 + $0x2a0] sm:$0xff] }
 0xc33   : > { %5057 = vmatpush1.msra.mxu0 %v4850_v24  ;;  %5128 = vmatpush1.msra.mxu1 %v4852_v25  ;;  %v5676_v24 = vld [vmem:[#allocation28 + $0x2b0] sm:$0xff]  ;;  %v5669_v25 = vld [vmem:[#allocation28 + $0x278] sm:$0xff] }
 0xc34   : > { %5058 = vmatprep.subr.mxu0 %v4843_v26  ;;  %5129 = vmatprep.subr.mxu1 %v4845_v27  ;;  %v5671_v26 = vld [vmem:[#allocation28 + $0x288] sm:$0xff]  ;;  %v5668_v27 = vld [vmem:[#allocation28 + $0x270] sm:$0xff] }
 0xc35   : > { %5059 = vmatpush1.msra.mxu0 %v4842_v28  ;;  %5130 = vmatpush1.msra.mxu1 %v4844_v29  ;;  %v5670_v28 = vld [vmem:[#allocation28 + $0x280] sm:$0xff]  ;;  %v5665_v29 = vld [vmem:[#allocation28 + $0x258] sm:$0xff] }
 0xc36   : > { %5060 = vmatprep.subr.mxu0 %v4835_v30  ;;  %5131 = vmatprep.subr.mxu1 %v4837_v31  ;;  %v5662_v30 = vld [vmem:[#allocation28 + $0x240] sm:$0xff]  ;;  %v5664_v31 = vld [vmem:[#allocation28 + $0x250] sm:$0xff] }
 0xc37   : > { %5061 = vmatpush1.msra.mxu0 %v4834_v32  ;;  %5132 = vmatpush1.msra.mxu1 %v4836_v33  ;;  %v5657_v32 = vld [vmem:[#allocation28 + $0x218] sm:$0xff]  ;;  %v5659_v33 = vld [vmem:[#allocation28 + $0x228] sm:$0xff] }
 0xc38   : > { %5062 = vmatprep.subr.mxu0 %v4827_v34  ;;  %5133 = vmatprep.subr.mxu1 %v4829_v35  ;;  %v5656_v34 = vld [vmem:[#allocation28 + $0x210] sm:$0xff]  ;;  %v5658_v35 = vld [vmem:[#allocation28 + $0x220] sm:$0xff] }
 0xc39   : > { %5063 = vmatpush1.msra.mxu0 %v4826_v36  ;;  %5134 = vmatpush1.msra.mxu1 %v4828_v37  ;;  %v5651_v36 = vld [vmem:[#allocation28 + $0x1e8] sm:$0xff]  ;;  %v5653_v37 = vld [vmem:[#allocation28 + $0x1f8] sm:$0xff] }
 0xc3a   : > { %5064 = vmatprep.subr.mxu0 %v4819_v38  ;;  %5135 = vmatprep.subr.mxu1 %v4821_v39  ;;  %v5650_v38 = vld [vmem:[#allocation28 + $0x1e0] sm:$0xff]  ;;  %v5652_v39 = vld [vmem:[#allocation28 + $0x1f0] sm:$0xff] }
 0xc3b   : > { %5065 = vmatpush1.msra.mxu0 %v4818_v40  ;;  %5136 = vmatpush1.msra.mxu1 %v4820_v41  ;;  %v5645_v40 = vld [vmem:[#allocation28 + $0x1b8] sm:$0xff]  ;;  %v5647_v41 = vld [vmem:[#allocation28 + $0x1c8] sm:$0xff] }
 0xc3c   : > { %5066 = vmatprep.subr.mxu0 %v4811_v42  ;;  %5137 = vmatprep.subr.mxu1 %v4813_v43  ;;  %v5644_v42 = vld [vmem:[#allocation28 + $0x1b0] sm:$0xff]  ;;  %v5646_v43 = vld [vmem:[#allocation28 + $0x1c0] sm:$0xff] }
 0xc3d   : > { %5067 = vmatpush1.msra.mxu0 %v4810_v44  ;;  %5138 = vmatpush1.msra.mxu1 %v4812_v45  ;;  %v5639_v44 = vld [vmem:[#allocation28 + $0x188] sm:$0xff]  ;;  %v5641_v45 = vld [vmem:[#allocation28 + $0x198] sm:$0xff] }
 0xc3e   : > { %5068 = vmatprep.subr.mxu0 %v4803_v46  ;;  %5139 = vmatprep.subr.mxu1 %v4805_v47  ;;  %v5638_v46 = vld [vmem:[#allocation28 + $0x180] sm:$0xff]  ;;  %v5640_v47 = vld [vmem:[#allocation28 + $0x190] sm:$0xff] }
 0xc3f   : > { %5069 = vmatpush1.msra.mxu0 %v4802_v48  ;;  %5140 = vmatpush1.msra.mxu1 %v4804_v49  ;;  %v5633_v48 = vld [vmem:[#allocation28 + $0x158] sm:$0xff]  ;;  %v5635_v49 = vld [vmem:[#allocation28 + $0x168] sm:$0xff] }
 0xc40   : > { %5070 = vmatprep.subr.mxu0 %v4795_v50  ;;  %5141 = vmatprep.subr.mxu1 %v4797_v52  ;;  %v5632_v50 = vld [vmem:[#allocation28 + $0x150] sm:$0xff]  ;;  %v5634_v52 = vld [vmem:[#allocation28 + $0x160] sm:$0xff] }
 0xc41   : > { %5071 = vmatpush1.msra.mxu0 %v4794_v53  ;;  %5142 = vmatpush1.msra.mxu1 %v4796_v54  ;;  %v5627_v53 = vld [vmem:[#allocation28 + $0x128] sm:$0xff]  ;;  %v5629_v54 = vld [vmem:[#allocation28 + $0x138] sm:$0xff] }
 0xc42   : > { %5072 = vmatprep.subr.mxu0 %v4787_v55  ;;  %5143 = vmatprep.subr.mxu1 %v4789_v56  ;;  %v5626_v55 = vld [vmem:[#allocation28 + $0x120] sm:$0xff]  ;;  %v5628_v56 = vld [vmem:[#allocation28 + $0x130] sm:$0xff] }
 0xc43   : > { %5073 = vmatpush1.msra.mxu0 %v4786_v57  ;;  %5144 = vmatpush1.msra.mxu1 %v4788_v59  ;;  %v5621_v57 = vld [vmem:[#allocation28 + $0xf8] sm:$0xff]  ;;  %v5623_v59 = vld [vmem:[#allocation28 + $0x108] sm:$0xff] }
 0xc44   : > { %5074 = vmatprep.subr.mxu0 %v4779_v60  ;;  %5145 = vmatprep.subr.mxu1 %v4781_v61  ;;  %v5620_v60 = vld [vmem:[#allocation28 + $0xf0] sm:$0xff]  ;;  %v5622_v61 = vld [vmem:[#allocation28 + $0x100] sm:$0xff] }
 0xc45   : > { %5075 = vmatpush1.msra.mxu0 %v4778_v62  ;;  %5108 = vmatprep.mubr.f32.mxu0 %v8441_v0  ;;  %v5615_v62 = vld [vmem:[#allocation28 + $0xc8] sm:$0xff] }
 0xc46   : > { %5146 = vmatpush1.msra.mxu1 %v4780_v1  ;;  %5179 = vmatprep.mubr.f32.mxu1 %v8441_v0  ;;  %v5617_v1 = vld [vmem:[#allocation28 + $0xd8] sm:$0xff] }
 0xc47   : > { %5109 = vmatmul.mubr.f32.vlgmr.msra.gmra.mxu0 %v9187_v2  ;;  %5180 = vmatmul.mubr.f32.vlgmr.msra.gmra.mxu1 %v9187_v2  ;;  %v7257_v2 = vld [vmem:[%s9502_s15 + $0x18] sm:$0x7] }
 0xc48   : > { %5268 = vmatprep.mubr.f32.mxu0 %v8441_v0  ;;  %5449 = vmatprep.mubr.f32.mxu1 %v8441_v0 }
 0xce6   : > { %v4968_v3 = vpop.f32.mrf.mxu0  ;;  %v5039_v4 = vpop.f32.mrf.mxu1 }
 0xce8   : > { %v5041_v5 = vpop.f32.mrf.mxu1  ;;  %v4970_v6 = vpop.f32.mrf.mxu0 }
 0xce9   : > { %7258 = vmatprep.subr.msk.mxu0 %vm1326_vm0, %v5041_v5  ;;  %v5609_v5 = vld [vmem:[#allocation28 + $0x98] sm:$0xff] }
 0xcea   : > { %7259 = vmatpush1.msk.msra.mxu0 %vm1326_vm0, %v5039_v4  ;;  %v5616_v4 = vld [vmem:[#allocation28 + $0xd0] sm:$0xff] }
 0xceb   : > { %7262 = vmatprep.subr.msk.mxu0 %vm1326_vm0, %v4970_v6  ;;  %7260 = vmatmul.mubr.msk.f32.vlgmr.msra.gmra.mxu0 %vm5191_vm5, %v7256_v51  ;;  %v5611_v51 = vld [vmem:[#allocation28 + $0xa8] sm:$0xff]  ;;  %v5608_v6 = vld [vmem:[#allocation28 + $0x90] sm:$0xff] }
 0xcec   : > { %7263 = vmatpush1.msk.msra.mxu0 %vm1326_vm0, %v4968_v3  ;;  %5274 = vmatprep.mubr.f32.mxu0 %v8441_v0  ;;  %v5614_v3 = vld [vmem:[#allocation28 + $0xc0] sm:$0xff] }
 0xcef   : > { %7261 = vmatmul.mubr.msk.f32.gmra.mxu0 %vm5191_vm5, %v7257_v2  ;;  %v5610_v2 = vld [vmem:[#allocation28 + $0xa0] sm:$0xff] }
 0xcf0   : > { %5357 = vmatprep.mubr.f32.mxu0 %v8441_v0 }
 0xcf3   : > { %7264 = vmatmul.mubr.msk.f32.vlgmr.msra.gmra.mxu0 %vm5191_vm5, %v5186_v58  ;;  %v5603_v58 = vld [vmem:[#allocation28 + $0x68] sm:$0xff] }
 0xcf4   : > { %5363 = vmatprep.mubr.f32.mxu0 %v8441_v0 }
 0xcf7   : > { %7265 = vmatmul.mubr.msk.f32.gmra.mxu0 %vm5191_vm5, %v5187_v63  ;;  %v5605_v63 = vld [vmem:[#allocation28 + $0x78] sm:$0xff] }
 0xcf8   : > { %5545 = vmatprep.mubr.f32.mxu0 %v8441_v0 }
 0xd07   : > { %v5110_v7 = vpop.f32.mrf.mxu0  ;;  %v5181_v8 = vpop.f32.mrf.mxu1 }
 0xd09   : > { %v5112_v9 = vpop.f32.mrf.mxu0  ;;  %v5183_v10 = vpop.f32.mrf.mxu1 }
 0xd0a   : > { %7268 = vmatprep.subr.msk.mxu1 %vm1326_vm0, %v5112_v9  ;;  %7274 = vmatprep.subr.msk.mxu0 %vm1326_vm0, %v5183_v10  ;;  %v5604_v9 = vld [vmem:[#allocation28 + $0x70] sm:$0xff] }
 0xd0b   : > { %7269 = vmatpush1.msk.msra.mxu1 %vm1326_vm0, %v5110_v7  ;;  %7275 = vmatpush1.msk.msra.mxu0 %vm1326_vm0, %v5181_v8  ;;  %v5602_v7 = vld [vmem:[#allocation28 + $0x60] sm:$0xff]  ;;  %v5597_v8 = vld [vmem:[#allocation28 + $0x38] sm:$0xff]  ;;  %v5596_v10 = vld [vmem:[#allocation28 + $0x30] sm:$0xff] }
 0xd0c   : > { %7270 = vmatmul.mubr.msk.f32.vlgmr.msra.gmra.mxu1 %vm5191_vm5, %v7266_v11  ;;  %7276 = vmatmul.mubr.msk.f32.vlgmr.msra.gmra.mxu0 %vm5191_vm5, %v7272_v12  ;;  %v5599_v11 = vld [vmem:[#allocation28 + $0x48] sm:$0xff] }
 0xd0d   : > { %5455 = vmatprep.mubr.f32.mxu1 %v8441_v0  ;;  %5551 = vmatprep.mubr.f32.mxu0 %v8441_v0  ;;  %v5663_v0 = vld [vmem:[#allocation28 + $0x248] sm:$0xff] }
 0xd0e   : > { %5782 = vmatprep.subr.mxu1 %v5681_v14  ;;  %5859 = vmatprep.subr.mxu0 %v5683_v15  ;;  %v5591_v12 = vld [vmem:[#allocation28 + $0x8] sm:$0xff]  ;;  %v5598_v14 = vld [vmem:[#allocation28 + $0x40] sm:$0xff] }
 0xd0f   : > { %5783 = vmatpush1.msra.mxu1 %v5680_v16  ;;  %5860 = vmatpush1.msra.mxu0 %v5682_v17  ;;  %v5590_v15 = vld [vmem:[#allocation28] sm:$0xff]  ;;  %v5593_v16 = vld [vmem:[#allocation28 + $0x18] sm:$0xff] }
 0xd10   : > { %7271 = vmatmul.mubr.msk.f32.gmra.mxu1 %vm5191_vm5, %v7267_v18  ;;  %7277 = vmatmul.mubr.msk.f32.gmra.mxu0 %vm5191_vm5, %v7273_v20  ;;  %v5777_v17 = vld [vmem:[#allocation28 + $0x5d8] sm:$0xff]  ;;  %v5592_v18 = vld [vmem:[#allocation28 + $0x10] sm:$0xff] }
 0xd11   : > { %5784 = vmatprep.subr.mxu1 %v5675_v21  ;;  %5861 = vmatprep.subr.mxu0 %v5677_v22  ;;  %v5776_v20 = vld [vmem:[#allocation28 + $0x5d0] sm:$0xff]  ;;  %v5779_v21 = vld [vmem:[#allocation28 + $0x5e8] sm:$0xff] }
 0xd12   : > { %5785 = vmatpush1.msra.mxu1 %v5674_v23  ;;  %5862 = vmatpush1.msra.mxu0 %v5676_v24  ;;  %v5771_v22 = vld [vmem:[#allocation28 + $0x5a8] sm:$0xff]  ;;  %v5778_v23 = vld [vmem:[#allocation28 + $0x5e0] sm:$0xff] }
 0xd13   : > { %5786 = vmatprep.subr.mxu1 %v5669_v25  ;;  %5863 = vmatprep.subr.mxu0 %v5671_v26  ;;  %v5770_v24 = vld [vmem:[#allocation28 + $0x5a0] sm:$0xff]  ;;  %v5773_v25 = vld [vmem:[#allocation28 + $0x5b8] sm:$0xff] }
 0xd14   : > { %5787 = vmatpush1.msra.mxu1 %v5668_v27  ;;  %5864 = vmatpush1.msra.mxu0 %v5670_v28  ;;  %v5765_v26 = vld [vmem:[#allocation28 + $0x578] sm:$0xff]  ;;  %v5772_v27 = vld [vmem:[#allocation28 + $0x5b0] sm:$0xff] }
 0xd15   : > { %5788 = vmatprep.subr.mxu1 %v5663_v0  ;;  %5865 = vmatprep.subr.mxu0 %v5665_v29  ;;  %v5764_v28 = vld [vmem:[#allocation28 + $0x570] sm:$0xff]  ;;  %v5767_v0 = vld [vmem:[#allocation28 + $0x588] sm:$0xff] }
 0xd16   : > { %5789 = vmatpush1.msra.mxu1 %v5662_v30  ;;  %5866 = vmatpush1.msra.mxu0 %v5664_v31  ;;  %v5759_v29 = vld [vmem:[#allocation28 + $0x548] sm:$0xff]  ;;  %v5766_v30 = vld [vmem:[#allocation28 + $0x580] sm:$0xff] }
 0xd17   : > { %5790 = vmatprep.subr.mxu1 %v5657_v32  ;;  %5867 = vmatprep.subr.mxu0 %v5659_v33  ;;  %v5758_v31 = vld [vmem:[#allocation28 + $0x540] sm:$0xff]  ;;  %v5761_v32 = vld [vmem:[#allocation28 + $0x558] sm:$0xff] }
 0xd18   : > { %5791 = vmatpush1.msra.mxu1 %v5656_v34  ;;  %5868 = vmatpush1.msra.mxu0 %v5658_v35  ;;  %v5753_v33 = vld [vmem:[#allocation28 + $0x518] sm:$0xff]  ;;  %v5760_v34 = vld [vmem:[#allocation28 + $0x550] sm:$0xff] }
 0xd19   : > { %5792 = vmatprep.subr.mxu1 %v5651_v36  ;;  %5869 = vmatprep.subr.mxu0 %v5653_v37  ;;  %v5752_v35 = vld [vmem:[#allocation28 + $0x510] sm:$0xff]  ;;  %v5755_v36 = vld [vmem:[#allocation28 + $0x528] sm:$0xff] }
 0xd1a   : > { %5793 = vmatpush1.msra.mxu1 %v5650_v38  ;;  %5870 = vmatpush1.msra.mxu0 %v5652_v39  ;;  %v5747_v37 = vld [vmem:[#allocation28 + $0x4e8] sm:$0xff]  ;;  %v5754_v38 = vld [vmem:[#allocation28 + $0x520] sm:$0xff] }
 0xd1b   : > { %5794 = vmatprep.subr.mxu1 %v5645_v40  ;;  %5871 = vmatprep.subr.mxu0 %v5647_v41  ;;  %v5746_v39 = vld [vmem:[#allocation28 + $0x4e0] sm:$0xff]  ;;  %v5749_v40 = vld [vmem:[#allocation28 + $0x4f8] sm:$0xff] }
 0xd1c   : > { %5795 = vmatpush1.msra.mxu1 %v5644_v42  ;;  %5872 = vmatpush1.msra.mxu0 %v5646_v43  ;;  %v5741_v41 = vld [vmem:[#allocation28 + $0x4b8] sm:$0xff]  ;;  %v5748_v42 = vld [vmem:[#allocation28 + $0x4f0] sm:$0xff] }
 0xd1d   : > { %5796 = vmatprep.subr.mxu1 %v5639_v44  ;;  %5873 = vmatprep.subr.mxu0 %v5641_v45  ;;  %v5740_v43 = vld [vmem:[#allocation28 + $0x4b0] sm:$0xff]  ;;  %v5743_v44 = vld [vmem:[#allocation28 + $0x4c8] sm:$0xff] }
 0xd1e   : > { %5797 = vmatpush1.msra.mxu1 %v5638_v46  ;;  %5874 = vmatpush1.msra.mxu0 %v5640_v47  ;;  %v5735_v45 = vld [vmem:[#allocation28 + $0x488] sm:$0xff]  ;;  %v5742_v46 = vld [vmem:[#allocation28 + $0x4c0] sm:$0xff] }
 0xd1f   : > { %5798 = vmatprep.subr.mxu1 %v5633_v48  ;;  %5875 = vmatprep.subr.mxu0 %v5635_v49  ;;  %v5734_v47 = vld [vmem:[#allocation28 + $0x480] sm:$0xff]  ;;  %v5737_v48 = vld [vmem:[#allocation28 + $0x498] sm:$0xff] }
 0xd20   : > { %5799 = vmatpush1.msra.mxu1 %v5632_v50  ;;  %5876 = vmatpush1.msra.mxu0 %v5634_v52  ;;  %v5729_v49 = vld [vmem:[#allocation28 + $0x458] sm:$0xff]  ;;  %v5736_v50 = vld [vmem:[#allocation28 + $0x490] sm:$0xff] }
 0xd21   : > { %5800 = vmatprep.subr.mxu1 %v5627_v53  ;;  %5877 = vmatprep.subr.mxu0 %v5629_v54  ;;  %v5728_v52 = vld [vmem:[#allocation28 + $0x450] sm:$0xff]  ;;  %v5731_v53 = vld [vmem:[#allocation28 + $0x468] sm:$0xff] }
 0xd22   : > { %5801 = vmatpush1.msra.mxu1 %v5626_v55  ;;  %5878 = vmatpush1.msra.mxu0 %v5628_v56  ;;  %v5723_v54 = vld [vmem:[#allocation28 + $0x428] sm:$0xff]  ;;  %v5730_v55 = vld [vmem:[#allocation28 + $0x460] sm:$0xff] }
 0xd23   : > { %5802 = vmatprep.subr.mxu1 %v5621_v57  ;;  %5879 = vmatprep.subr.mxu0 %v5623_v59  ;;  %v5722_v56 = vld [vmem:[#allocation28 + $0x420] sm:$0xff]  ;;  %v5725_v57 = vld [vmem:[#allocation28 + $0x438] sm:$0xff] }
 0xd24   : > { %5803 = vmatpush1.msra.mxu1 %v5620_v60  ;;  %5880 = vmatpush1.msra.mxu0 %v5622_v61  ;;  %v5717_v59 = vld [vmem:[#allocation28 + $0x3f8] sm:$0xff]  ;;  %v5724_v60 = vld [vmem:[#allocation28 + $0x430] sm:$0xff] }
 0xd25   : > { %5804 = vmatprep.subr.mxu1 %v5615_v62  ;;  %5881 = vmatprep.subr.mxu0 %v5617_v1  ;;  %v5716_v61 = vld [vmem:[#allocation28 + $0x3f0] sm:$0xff]  ;;  %v5719_v62 = vld [vmem:[#allocation28 + $0x408] sm:$0xff] }
 0xd26   : > { %5805 = vmatpush1.msra.mxu1 %v5614_v3  ;;  %5882 = vmatpush1.msra.mxu0 %v5616_v4  ;;  %v5711_v1 = vld [vmem:[#allocation28 + $0x3c8] sm:$0xff]  ;;  %v5718_v3 = vld [vmem:[#allocation28 + $0x400] sm:$0xff] }
 0xd27   : > { %5806 = vmatprep.subr.mxu1 %v5609_v5  ;;  %5883 = vmatprep.subr.mxu0 %v5611_v51  ;;  %v5710_v4 = vld [vmem:[#allocation28 + $0x3c0] sm:$0xff]  ;;  %v5713_v5 = vld [vmem:[#allocation28 + $0x3d8] sm:$0xff] }
 0xd28   : > { %5807 = vmatpush1.msra.mxu1 %v5608_v6  ;;  %5884 = vmatpush1.msra.mxu0 %v5610_v2  ;;  %v5705_v51 = vld [vmem:[#allocation28 + $0x398] sm:$0xff]  ;;  %v5712_v6 = vld [vmem:[#allocation28 + $0x3d0] sm:$0xff] }
 0xd29   : > { %5808 = vmatprep.subr.mxu1 %v5603_v58  ;;  %5885 = vmatprep.subr.mxu0 %v5605_v63  ;;  %v5704_v2 = vld [vmem:[#allocation28 + $0x390] sm:$0xff]  ;;  %v5707_v58 = vld [vmem:[#allocation28 + $0x3a8] sm:$0xff] }
 0xd2a   : > { %5809 = vmatpush1.msra.mxu1 %v5602_v7  ;;  %5886 = vmatpush1.msra.mxu0 %v5604_v9  ;;  %v5699_v63 = vld [vmem:[#allocation28 + $0x368] sm:$0xff]  ;;  %v5706_v7 = vld [vmem:[#allocation28 + $0x3a0] sm:$0xff]  ;;  %v5701_v9 = vld [vmem:[#allocation28 + $0x378] sm:$0xff] }
 0xd2b   : > { %5810 = vmatprep.subr.mxu1 %v5597_v8  ;;  %5887 = vmatprep.subr.mxu0 %v5599_v11  ;;  %v5698_v8 = vld [vmem:[#allocation28 + $0x360] sm:$0xff]  ;;  %v5700_v11 = vld [vmem:[#allocation28 + $0x370] sm:$0xff] }
 0xd2c   : > { %5811 = vmatpush1.msra.mxu1 %v5596_v10  ;;  %5888 = vmatpush1.msra.mxu0 %v5598_v14  ;;  %v5693_v10 = vld [vmem:[#allocation28 + $0x338] sm:$0xff]  ;;  %v5695_v14 = vld [vmem:[#allocation28 + $0x348] sm:$0xff] }
 0xd2d   : > { %5812 = vmatprep.subr.mxu1 %v5591_v12  ;;  %5889 = vmatprep.subr.mxu0 %v5593_v16  ;;  %v5692_v12 = vld [vmem:[#allocation28 + $0x330] sm:$0xff]  ;;  %v5694_v16 = vld [vmem:[#allocation28 + $0x340] sm:$0xff] }
 0xd2e   : > { %5813 = vmatpush1.msra.mxu1 %v5590_v15  ;;  %5890 = vmatpush1.msra.mxu0 %v5592_v18  ;;  %v5687_v15 = vld [vmem:[#allocation28 + $0x308] sm:$0xff]  ;;  %v5689_v18 = vld [vmem:[#allocation28 + $0x318] sm:$0xff] }
 0xd2f   : > { %5814 = vmatprep.subr.mxu1 %v5777_v17  ;;  %5891 = vmatprep.subr.mxu0 %v5779_v21  ;;  %v5686_v17 = vld [vmem:[#allocation28 + $0x300] sm:$0xff]  ;;  %v5685_v21 = vld [vmem:[#allocation28 + $0x2f8] sm:$0xff] }
 0xd30   : > { %5815 = vmatpush2.msra.mxu1 %v5776_v20  ;;  %5892 = vmatpush2.msra.mxu0 %v5778_v23  ;;  %v5688_v20 = vld [vmem:[#allocation28 + $0x310] sm:$0xff] }
 0xd31   : > { %5816 = vmatprep.subr.mxu1 %v5771_v22  ;;  %5893 = vmatprep.subr.mxu0 %v5773_v25 }
 0xd32   : > { %5817 = vmatpush2.msra.mxu1 %v5770_v24  ;;  %5894 = vmatpush2.msra.mxu0 %v5772_v27 }
 0xd33   : > { %5818 = vmatprep.subr.mxu1 %v5765_v26  ;;  %5895 = vmatprep.subr.mxu0 %v5767_v0 }
 0xd34   : > { %5819 = vmatpush2.msra.mxu1 %v5764_v28  ;;  %5896 = vmatpush2.msra.mxu0 %v5766_v30 }
 0xd35   : > { %5820 = vmatprep.subr.mxu1 %v5759_v29  ;;  %5897 = vmatprep.subr.mxu0 %v5761_v32  ;;  %v5562_v29 = vld [vmem:[%s9503_s26] sm:$0x3]  ;;  %s9504_s26 = sld [smem:[#allocation65_spill]] }
 0xd36   : > { %5821 = vmatpush2.msra.mxu1 %v5758_v31  ;;  %5898 = vmatpush2.msra.mxu0 %v5760_v34 }
 0xd37   : > { %5822 = vmatprep.subr.mxu1 %v5753_v33  ;;  %5899 = vmatprep.subr.mxu0 %v5755_v36 }
 0xd38   : > { %5823 = vmatpush2.msra.mxu1 %v5752_v35  ;;  %5900 = vmatpush2.msra.mxu0 %v5754_v38  ;;  %v5567_v35 = vrot.slane %v5562_v29, %v8999_v13 }
 0xd39   : > { %5824 = vmatprep.subr.mxu1 %v5747_v37  ;;  %5901 = vmatprep.subr.mxu0 %v5749_v40 }
 0xd3a   : > { %5825 = vmatpush2.msra.mxu1 %v5746_v39  ;;  %5902 = vmatpush2.msra.mxu0 %v5748_v42 }
 0xd3b   : > { %5826 = vmatprep.subr.mxu1 %v5741_v41  ;;  %5903 = vmatprep.subr.mxu0 %v5743_v44  ;;  %v5571_v41 = vrot.slane %v5562_v29, %v9001_v19  ;;  %v5684_v19 = vld [vmem:[#allocation28 + $0x2f0] sm:$0xff]  ;;  %v5595_v29 = vld [vmem:[#allocation28 + $0x28] sm:$0xff] }
 0xd3c   : > { %5827 = vmatpush2.msra.mxu1 %v5740_v43  ;;  %5904 = vmatpush2.msra.mxu0 %v5742_v46 }
 0xd3d   : > { %5828 = vmatprep.subr.mxu1 %v5735_v45  ;;  %5905 = vmatprep.subr.mxu0 %v5737_v48 }
 0xd3e   : > { %5829 = vmatpush2.msra.mxu1 %v5734_v47  ;;  %5906 = vmatpush2.msra.mxu0 %v5736_v50 }
 0xd3f   : > { %5830 = vmatprep.subr.mxu1 %v5729_v49  ;;  %5907 = vmatprep.subr.mxu0 %v5731_v53 }
 0xd40   : > { %5831 = vmatpush2.msra.mxu1 %v5728_v52  ;;  %5908 = vmatpush2.msra.mxu0 %v5730_v55 }
 0xd41   : > { %5832 = vmatprep.subr.mxu1 %v5723_v54  ;;  %5909 = vmatprep.subr.mxu0 %v5725_v57 }
 0xd42   : > { %5833 = vmatpush2.msra.mxu1 %v5722_v56  ;;  %5910 = vmatpush2.msra.mxu0 %v5724_v60 }
 0xd43   : > { %5834 = vmatprep.subr.mxu1 %v5717_v59  ;;  %5911 = vmatprep.subr.mxu0 %v5719_v62  ;;  %v5678_v62 = vld [vmem:[#allocation28 + $0x2c0] sm:$0xff] }
 0xd44   : > { %5835 = vmatpush2.msra.mxu1 %v5716_v61  ;;  %5912 = vmatpush2.msra.mxu0 %v5718_v3  ;;  %v5679_v61 = vld [vmem:[#allocation28 + $0x2c8] sm:$0xff] }
 0xd45   : > { %5836 = vmatprep.subr.mxu1 %v5711_v1  ;;  %5913 = vmatprep.subr.mxu0 %v5713_v5 }
 0xd46   : > { %5837 = vmatpush2.msra.mxu1 %v5710_v4  ;;  %5914 = vmatpush2.msra.mxu0 %v5712_v6  ;;  %v5673_v4 = vld [vmem:[#allocation28 + $0x298] sm:$0xff] }
 0xd47   : > { %5838 = vmatprep.subr.mxu1 %v5705_v51  ;;  %5915 = vmatprep.subr.mxu0 %v5707_v58  ;;  %v5672_v51 = vld [vmem:[#allocation28 + $0x290] sm:$0xff]  ;;  %v5666_v58 = vld [vmem:[#allocation28 + $0x260] sm:$0xff] }
 0xd48   : > { %5839 = vmatpush2.msra.mxu1 %v5704_v2  ;;  %5916 = vmatpush2.msra.mxu0 %v5706_v7  ;;  %v5667_v2 = vld [vmem:[#allocation28 + $0x268] sm:$0xff]  ;;  %v5660_v7 = vld [vmem:[#allocation28 + $0x230] sm:$0xff] }
 0xd49   : > { %5840 = vmatprep.subr.mxu1 %v5699_v63  ;;  %5917 = vmatprep.subr.mxu0 %v5701_v9  ;;  %v5661_v63 = vld [vmem:[#allocation28 + $0x238] sm:$0xff]  ;;  %v5654_v9 = vld [vmem:[#allocation28 + $0x200] sm:$0xff] }
 0xd4a   : > { %5841 = vmatpush2.msra.mxu1 %v5698_v8  ;;  %5918 = vmatpush2.msra.mxu0 %v5700_v11  ;;  %v5655_v8 = vld [vmem:[#allocation28 + $0x208] sm:$0xff]  ;;  %v5648_v11 = vld [vmem:[#allocation28 + $0x1d0] sm:$0xff] }
 0xd4b   : > { %5842 = vmatprep.subr.mxu1 %v5693_v10  ;;  %5919 = vmatprep.subr.mxu0 %v5695_v14  ;;  %v5649_v10 = vld [vmem:[#allocation28 + $0x1d8] sm:$0xff]  ;;  %v5642_v14 = vld [vmem:[#allocation28 + $0x1a0] sm:$0xff] }
 0xd4c   : > { %5843 = vmatpush2.msra.mxu1 %v5692_v12  ;;  %5920 = vmatpush2.msra.mxu0 %v5694_v16  ;;  %v5643_v12 = vld [vmem:[#allocation28 + $0x1a8] sm:$0xff]  ;;  %v5636_v16 = vld [vmem:[#allocation28 + $0x170] sm:$0xff] }
 0xd4d   : > { %5844 = vmatprep.subr.mxu1 %v5687_v15  ;;  %5921 = vmatprep.subr.mxu0 %v5689_v18  ;;  %v5637_v15 = vld [vmem:[#allocation28 + $0x178] sm:$0xff]  ;;  %v5630_v18 = vld [vmem:[#allocation28 + $0x140] sm:$0xff] }
 0xd4e   : > { %5845 = vmatpush2.msra.mxu1 %v5686_v17  ;;  %5922 = vmatpush2.msra.mxu0 %v5688_v20  ;;  %v5631_v17 = vld [vmem:[#allocation28 + $0x148] sm:$0xff]  ;;  %v5625_v20 = vld [vmem:[#allocation28 + $0x118] sm:$0xff] }
 0xd4f   : > { %5936 = vmatprep.subr.mxu1 %v5685_v21  ;;  %v5624_v21 = vld [vmem:[#allocation28 + $0x110] sm:$0xff] }
 0xdab   : > { %v5270_v22 = vpop.f32.mrf.mxu0 }
 0xdad   : > { %v5272_v23 = vpop.f32.mrf.mxu0 }
 0xdaf   : > { %v5276_v24 = vpop.f32.mrf.mxu0 }
 0xdb1   : > { %v5278_v25 = vpop.f32.mrf.mxu0 }
 0xdb3   : > { %v5359_v26 = vpop.f32.mrf.mxu0 }
 0xdb4   : > { %v5360_v30 = vadd.f32 %v5359_v26, %v5270_v22  ;;  %v5619_v22 = vld [vmem:[#allocation28 + $0xe8] sm:$0xff] }
 0xdb5   : > { %v5361_v27 = vpop.f32.mrf.mxu0  ;;  %v5607_v26 = vld [vmem:[#allocation28 + $0x88] sm:$0xff] }
 0xdb6   : > { %v5362_v33 = vadd.f32 %v5361_v27, %v5272_v23  ;;  %v5618_v23 = vld [vmem:[#allocation28 + $0xe0] sm:$0xff] }
 0xdb7   : > { %v5365_v28 = vpop.f32.mrf.mxu0  ;;  %v5606_v27 = vld [vmem:[#allocation28 + $0x80] sm:$0xff] }
 0xdb8   : > { %v5366_v38 = vadd.f32 %v5365_v28, %v5276_v24  ;;  %v5613_v24 = vld [vmem:[#allocation28 + $0xb8] sm:$0xff] }
 0xdb9   : > { %v5367_v0 = vpop.f32.mrf.mxu0  ;;  %v5601_v28 = vld [vmem:[#allocation28 + $0x58] sm:$0xff] }
 0xdba   : > { %v5368_v44 = vadd.f32 %v5367_v0, %v5278_v25  ;;  %v5612_v25 = vld [vmem:[#allocation28 + $0xb0] sm:$0xff] }
 0xdbb   : > { %v5600_v0 = vld [vmem:[#allocation28 + $0x50] sm:$0xff] }
 0xdcc   : > { %v5451_v31 = vpop.f32.mrf.mxu1  ;;  %v5547_v32 = vpop.f32.mrf.mxu0 }
 0xdcd   : > { %v5462_v34 = vadd.f32 %v5451_v31, %v5360_v30  ;;  %v5594_v30 = vld [vmem:[#allocation28 + $0x20] sm:$0xff]  ;;  %v5781_v31 = vld [vmem:[#allocation28 + $0x5f8] sm:$0xff] }
 0xdce   : > { %v5453_v36 = vpop.f32.mrf.mxu1  ;;  %v5549_v37 = vpop.f32.mrf.mxu0 }
 0xdcf   : > { %v5558_v39 = vadd.f32 %v5547_v32, %v5462_v34  ;;  %v5463_v40 = vadd.f32 %v5453_v36, %v5362_v33  ;;  %v5780_v32 = vld [vmem:[#allocation28 + $0x5f0] sm:$0xff]  ;;  %v5775_v33 = vld [vmem:[#allocation28 + $0x5c8] sm:$0xff]  ;;  %v5774_v34 = vld [vmem:[#allocation28 + $0x5c0] sm:$0xff] }
 0xdd0   : > { %v5457_v42 = vpop.f32.mrf.mxu1  ;;  %v5553_v43 = vpop.f32.mrf.mxu0  ;;  %v5768_v36 = vld [vmem:[#allocation28 + $0x590] sm:$0xff] }
 0xdd1   : > { %v5574_v45 = vadd.f32 %v5567_v35, %v5558_v39  ;;  %v5559_v46 = vadd.f32 %v5549_v37, %v5463_v40  ;;  %v5464_v47 = vadd.f32 %v5457_v42, %v5366_v38  ;;  %v5763_v37 = vld [vmem:[#allocation28 + $0x568] sm:$0xff]  ;;  %v5762_v38 = vld [vmem:[#allocation28 + $0x560] sm:$0xff]  ;;  %v5757_v39 = vld [vmem:[#allocation28 + $0x538] sm:$0xff] }
 0xdd2   : > { %v5459_v48 = vpop.f32.mrf.mxu1  ;;  %v5555_v49 = vpop.f32.mrf.mxu0  ;;  %v5756_v40 = vld [vmem:[#allocation28 + $0x530] sm:$0xff]  ;;  %v5750_v42 = vld [vmem:[#allocation28 + $0x500] sm:$0xff] }
 0xdd3   : > { %v5575_v50 = vadd.f32 %v5571_v41, %v5559_v46  ;;  %v5465_v52 = vadd.f32 %v5459_v48, %v5368_v44  ;;  %v5582_v53 = vmul.f32 0.01, %v5574_v45  ;;  %v5560_v54 = vadd.f32 %v5553_v43, %v5464_v47  ;;  %v5745_v43 = vld [vmem:[#allocation28 + $0x4d8] sm:$0xff]  ;;  %v5744_v44 = vld [vmem:[#allocation28 + $0x4d0] sm:$0xff]  ;;  %v5738_v46 = vld [vmem:[#allocation28 + $0x4a0] sm:$0xff] }
 0xdd4   : > { %vm5578_vm0 = vcmp.ge.f32.partialorder %v5574_v45, 0.0  ;;  %v5733_v47 = vld [vmem:[#allocation28 + $0x478] sm:$0xff]  ;;  %v5732_v48 = vld [vmem:[#allocation28 + $0x470] sm:$0xff] }
 0xdd5   : > { %v5561_v13 = vadd.f32 %v5555_v49, %v5465_v52  ;;  %vm5579_vm6 = vcmp.ge.f32.partialorder %v5575_v50, 0.0  ;;  %v5583_v55 = vmul.f32 0.01, %v5575_v50  ;;  %v5576_v56 = vadd.f32 %v5567_v35, %v5560_v54  ;;  %v5769_v35 = vld [vmem:[#allocation28 + $0x598] sm:$0xff]  ;;  %v5727_v49 = vld [vmem:[#allocation28 + $0x448] sm:$0xff] }
 0xdd6   : > { %v9230_v60 = vsel %vm5578_vm0, %v5574_v45, %v5582_v53  ;;  %v5739_v45 = vld [vmem:[#allocation28 + $0x4a8] sm:$0xff]  ;;  %v5721_v52 = vld [vmem:[#allocation28 + $0x418] sm:$0xff]  ;;  %v5720_v53 = vld [vmem:[#allocation28 + $0x410] sm:$0xff] }
 0xdd7   : > { %v5577_v57 = vadd.f32 %v5571_v41, %v5561_v13  ;;  %v5587_v59 = vsel %vm5579_vm6, %v5575_v50, %v5583_v55  ;;  %v5584_v3 = vmul.f32 0.01, %v5576_v56  ;;  %vm5580_vm8 = vcmp.ge.f32.partialorder %v5576_v56, 0.0  ;;  %v5751_v41 = vld [vmem:[#allocation28 + $0x508] sm:$0xff]  ;;  %v5726_v50 = vld [vmem:[#allocation28 + $0x440] sm:$0xff]  ;;  %v5709_v55 = vld [vmem:[#allocation28 + $0x3b8] sm:$0xff] }
 0xdd8   : > { %5846 = vmatprep.mubr.f32.mxu1 %v5587_v59  ;;  %5923 = vmatprep.mubr.f32.mxu0 %v5587_v59  ;;  %v5715_v54 = vld [vmem:[#allocation28 + $0x3e8] sm:$0xff]  ;;  %v5714_v13 = vld [vmem:[#allocation28 + $0x3e0] sm:$0xff] }
 0xdd9   : > { %5847 = vmatmul.mubr.f32.vlgmr.msra.gmra.mxu1 %v9230_v60  ;;  %5924 = vmatmul.mubr.f32.vlgmr.msra.gmra.mxu0 %v9230_v60  ;;  %vm5581_vm7 = vcmp.ge.f32.partialorder %v5577_v57, 0.0  ;;  %v5585_v1 = vmul.f32 0.01, %v5577_v57  ;;  %v9238_v6 = vsel %vm5580_vm8, %v5576_v56, %v5584_v3  ;;  %v5708_v56 = vld [vmem:[#allocation28 + $0x3b0] sm:$0xff] }
 0xdda   : > { %5937 = vmatpush1.msra.mxu1 %v5684_v19  ;;  %v5697_v19 = vld [vmem:[#allocation28 + $0x358] sm:$0xff]  ;;  %v7278_v3 = vld [vmem:[%s9504_s26 + $0x20] sm:$0xff] }
 0xddb   : > { %5938 = vmatprep.subr.mxu1 %v5679_v61  ;;  %v9234_v5 = vsel %vm5581_vm7, %v5577_v57, %v5585_v1  ;;  %v5703_v57 = vld [vmem:[#allocation28 + $0x388] sm:$0xff]  ;;  %v5696_v61 = vld [vmem:[#allocation28 + $0x350] sm:$0xff]  ;;  %v5690_v1 = vld [vmem:[#allocation28 + $0x320] sm:$0xff] }
 0xddc   : > { %5939 = vmatpush1.msra.mxu1 %v5678_v62  ;;  %5852 = vmatprep.mubr.f32.mxu1 %v9234_v5  ;;  %v5691_v62 = vld [vmem:[#allocation28 + $0x328] sm:$0xff] }
 0xddd   : > { %5929 = vmatprep.mubr.f32.mxu0 %v9234_v5  ;;  %5940 = vmatprep.subr.mxu1 %v5673_v4 }
 0xdde   : > { %5853 = vmatmul.mubr.f32.gmra.mxu1 %v9238_v6  ;;  %5930 = vmatmul.mubr.f32.gmra.mxu0 %v9238_v6 }
 0xddf   : > { %5941 = vmatpush1.msra.mxu1 %v5672_v51  ;;  %6000 = vmatprep.mubr.f32.mxu1 %v5587_v59  ;;  %v5702_v59 = vld [vmem:[#allocation28 + $0x380] sm:$0xff] }
 0xde0   : > { %5942 = vmatprep.subr.mxu1 %v5667_v2  ;;  %7446 = vmatprep.mubr.msk.f32.mxu0 %vm6022_vm9, %v7278_v3 }
 0xde1   : > { %5943 = vmatpush1.msra.mxu1 %v5666_v58 }
 0xde2   : > { %5944 = vmatprep.subr.mxu1 %v5661_v63 }
 0xde3   : > { %5945 = vmatpush1.msra.mxu1 %v5660_v7  ;;  %v7281_v7 = vld [vmem:[%s9504_s26 + $0x38] sm:$0xf] }
 0xde4   : > { %5946 = vmatprep.subr.mxu1 %v5655_v8  ;;  %v6013_v8 = vld [vmem:[%s9504_s26] sm:$0xff] }
 0xde5   : > { %5947 = vmatpush1.msra.mxu1 %v5654_v9 }
 0xde6   : > { %5948 = vmatprep.subr.mxu1 %v5649_v10  ;;  %v6014_v10 = vld [vmem:[%s9504_s26 + $0x8] sm:$0xff] }
 0xde7   : > { %5949 = vmatpush1.msra.mxu1 %v5648_v11  ;;  %v6015_v11 = vld [vmem:[%s9504_s26 + $0x10] sm:$0xff] }
 0xde8   : > { %5950 = vmatprep.subr.mxu1 %v5643_v12  ;;  %v6016_v12 = vld [vmem:[%s9504_s26 + $0x18] sm:$0xf] }
 0xde9   : > { %5951 = vmatpush1.msra.mxu1 %v5642_v14  ;;  %v7292_v14 = vld [vmem:[%s9504_s26 + $0x40] sm:$0xff] }
 0xdea   : > { %5952 = vmatprep.subr.mxu1 %v5637_v15 }
 0xdeb   : > { %5953 = vmatpush1.msra.mxu1 %v5636_v16  ;;  %v7293_v16 = vld [vmem:[%s9504_s26 + $0x48] sm:$0xff] }
 0xdec   : > { %5954 = vmatprep.subr.mxu1 %v5631_v17  ;;  %v7294_v17 = vld [vmem:[%s9504_s26 + $0x50] sm:$0xff] }
 0xded   : > { %5955 = vmatpush1.msra.mxu1 %v5630_v18  ;;  %v7295_v18 = vld [vmem:[%s9504_s26 + $0x58] sm:$0xf] }
 0xdee   : > { %5956 = vmatprep.subr.mxu1 %v5625_v20  ;;  %v7301_v20 = vld [vmem:[%s9504_s26 + $0x60] sm:$0xff] }
 0xdef   : > { %5957 = vmatpush1.msra.mxu1 %v5624_v21  ;;  %v7302_v21 = vld [vmem:[%s9504_s26 + $0x68] sm:$0xff] }
 0xdf0   : > { %5958 = vmatprep.subr.mxu1 %v5619_v22  ;;  %v7303_v22 = vld [vmem:[%s9504_s26 + $0x70] sm:$0xff] }
 0xdf1   : > { %5959 = vmatpush1.msra.mxu1 %v5618_v23  ;;  %v7304_v23 = vld [vmem:[%s9504_s26 + $0x78] sm:$0xf] }
 0xdf2   : > { %5960 = vmatprep.subr.mxu1 %v5613_v24  ;;  %v7310_v24 = vld [vmem:[%s9504_s26 + $0x80] sm:$0xff] }
 0xdf3   : > { %5961 = vmatpush1.msra.mxu1 %v5612_v25 }
 0xdf4   : > { %5962 = vmatprep.subr.mxu1 %v5607_v26 }
 0xdf5   : > { %5963 = vmatpush1.msra.mxu1 %v5606_v27 }
 0xdf6   : > { %5964 = vmatprep.subr.mxu1 %v5601_v28  ;;  %v7311_v28 = vld [vmem:[%s9504_s26 + $0x88] sm:$0xff] }
 0xdf7   : > { %5965 = vmatpush1.msra.mxu1 %v5600_v0  ;;  %v7312_v0 = vld [vmem:[%s9504_s26 + $0x90] sm:$0xff] }
 0xdf8   : > { %5966 = vmatprep.subr.mxu1 %v5595_v29 }
 0xdf9   : > { %5967 = vmatpush1.msra.mxu1 %v5594_v30  ;;  %v7313_v30 = vld [vmem:[%s9504_s26 + $0x98] sm:$0xf] }
 0xdfa   : > { %5968 = vmatprep.subr.mxu1 %v5781_v31  ;;  %v7319_v31 = vld [vmem:[%s9504_s26 + $0xa0] sm:$0xff] }
 0xdfb   : > { %5969 = vmatpush2.msra.mxu1 %v5780_v32  ;;  %v7320_v32 = vld [vmem:[%s9504_s26 + $0xa8] sm:$0xff] }
 0xdfc   : > { %5970 = vmatprep.subr.mxu1 %v5775_v33  ;;  %v7321_v33 = vld [vmem:[%s9504_s26 + $0xb0] sm:$0xff] }
 0xdfd   : > { %5971 = vmatpush2.msra.mxu1 %v5774_v34  ;;  %v7322_v34 = vld [vmem:[%s9504_s26 + $0xb8] sm:$0xf] }
 0xdfe   : > { %5972 = vmatprep.subr.mxu1 %v5769_v35 }
 0xdff   : > { %5973 = vmatpush2.msra.mxu1 %v5768_v36 }
 0xe00   : > { %5974 = vmatprep.subr.mxu1 %v5763_v37 }
 0xe01   : > { %5975 = vmatpush2.msra.mxu1 %v5762_v38 }
 0xe02   : > { %5976 = vmatprep.subr.mxu1 %v5757_v39 }
 0xe03   : > { %5977 = vmatpush2.msra.mxu1 %v5756_v40 }
 0xe04   : > { %5978 = vmatprep.subr.mxu1 %v5751_v41 }
 0xe05   : > { %5979 = vmatpush2.msra.mxu1 %v5750_v42 }
 0xe06   : > { %5980 = vmatprep.subr.mxu1 %v5745_v43 }
 0xe07   : > { %5981 = vmatpush2.msra.mxu1 %v5744_v44 }
 0xe08   : > { %5982 = vmatprep.subr.mxu1 %v5739_v45 }
 0xe09   : > { %5983 = vmatpush2.msra.mxu1 %v5738_v46 }
 0xe0a   : > { %5984 = vmatprep.subr.mxu1 %v5733_v47 }
 0xe0b   : > { %5985 = vmatpush2.msra.mxu1 %v5732_v48 }
 0xe0c   : > { %5986 = vmatprep.subr.mxu1 %v5727_v49 }
 0xe0d   : > { %5987 = vmatpush2.msra.mxu1 %v5726_v50 }
 0xe0e   : > { %5988 = vmatprep.subr.mxu1 %v5721_v52 }
 0xe0f   : > { %5989 = vmatpush2.msra.mxu1 %v5720_v53 }
 0xe10   : > { %5990 = vmatprep.subr.mxu1 %v5715_v54 }
 0xe11   : > { %5991 = vmatpush2.msra.mxu1 %v5714_v13 }
 0xe12   : > { %5992 = vmatprep.subr.mxu1 %v5709_v55 }
 0xe13   : > { %5993 = vmatpush2.msra.mxu1 %v5708_v56 }
 0xe14   : > { %5994 = vmatprep.subr.mxu1 %v5703_v57 }
 0xe15   : > { %5995 = vmatpush2.msra.mxu1 %v5702_v59 }
 0xe16   : > { %5996 = vmatprep.subr.mxu1 %v5697_v19 }
 0xe17   : > { %5997 = vmatpush2.msra.mxu1 %v5696_v61 }
 0xe18   : > { %5998 = vmatprep.subr.mxu1 %v5691_v62 }
 0xe19   : > { %5999 = vmatpush2.msra.mxu1 %v5690_v1 }
 0xe1a   : > { %6001 = vmatmul.mubr.f32.vlgmr.msra.gmra.mxu1 %v9230_v60  ;;  %v7279_v60 = vld [vmem:[%s9504_s26 + $0x28] sm:$0xff] }
 0xe1b   : > { %6006 = vmatprep.mubr.f32.mxu1 %v9234_v5  ;;  %v7280_v5 = vld [vmem:[%s9504_s26 + $0x30] sm:$0xff] }
 0xe1e   : > { %6007 = vmatmul.mubr.f32.gmra.mxu1 %v9238_v6 }
 0xe99   : > { %v5848_v4 = vpop.f32.mrf.mxu1  ;;  %v5925_v58 = vpop.f32.mrf.mxu0 }
 0xe9b   : > { %v5850_v51 = vpop.f32.mrf.mxu1  ;;  %v5927_v6 = vpop.f32.mrf.mxu0 }
 0xe9e   : > { %v5854_v2 = vpop.f32.mrf.mxu1  ;;  %v5931_v9 = vpop.f32.mrf.mxu0 }
 0xea0   : > { %v5856_v63 = vpop.f32.mrf.mxu1  ;;  %v5933_v15 = vpop.f32.mrf.mxu0 }
 0xea1   : > { %7442 = vmatprep.subr.msk.mxu0 %vm6035_vm10, %v5856_v63 }
 0xea2   : > { %7443 = vmatpush3.msk.msra.mxu0 %vm6035_vm10, %v5856_v63 }
 0xea3   : > { %7444 = vmatprep.subr.mxu0 %v5850_v51 }
 0xea4   : > { %7445 = vmatpush3.msra.mxu0 %v5850_v51 }
 0xea5   : > { %7447 = vmatmul.mubr.msk.f32.vlgmr.msra.gmra.mxu0 %vm6022_vm9, %v7279_v60  ;;  %7452 = vmatprep.subr.msk.mxu0 %vm6035_vm10, %v5854_v2 }
 0xea6   : > { %7453 = vmatpush3.msk.msra.mxu0 %vm6035_vm10, %v5854_v2  ;;  %7449 = vmatprep.mubr.msk.f32.mxu0 %vm6022_vm9, %v7280_v5 }
 0xea7   : > { %7454 = vmatprep.subr.mxu0 %v5848_v4 }
 0xea8   : > { %7455 = vmatpush3.msra.mxu0 %v5848_v4 }
 0xea9   : > { %7450 = vmatmul.mubr.msk.f32.gmra.mxu0 %vm6022_vm9, %v7281_v7  ;;  %7462 = vmatprep.subr.msk.mxu0 %vm6035_vm10, %v5931_v9 }
 0xeaa   : > { %7456 = vmatprep.mubr.msk.f32.mxu0 %vm6022_vm9, %v6013_v8 }
 0xead   : > { %7457 = vmatmul.mubr.msk.f32.vlgmr.msra.gmra.mxu0 %vm6022_vm9, %v6014_v10 }
 0xeae   : > { %7463 = vmatpush3.msk.msra.mxu0 %vm6035_vm10, %v5931_v9  ;;  %7459 = vmatprep.mubr.msk.f32.mxu0 %vm6022_vm9, %v6015_v11 }
 0xeaf   : > { %7464 = vmatprep.subr.mxu0 %v5925_v58 }
 0xeb0   : > { %7465 = vmatpush3.msra.mxu0 %v5925_v58 }
 0xeb1   : > { %7472 = vmatprep.subr.msk.mxu0 %vm6035_vm10, %v5933_v15  ;;  %7460 = vmatmul.mubr.msk.f32.gmra.mxu0 %vm6022_vm9, %v6016_v12 }
 0xeb2   : > { %7466 = vmatprep.mubr.msk.f32.mxu0 %vm6022_vm9, %v7292_v14 }
 0xeb5   : > { %7467 = vmatmul.mubr.msk.f32.vlgmr.msra.gmra.mxu0 %vm6022_vm9, %v7293_v16 }
 0xeb6   : > { %7473 = vmatpush3.msk.msra.mxu0 %vm6035_vm10, %v5933_v15  ;;  %7469 = vmatprep.mubr.msk.f32.mxu0 %vm6022_vm9, %v7294_v17 }
 0xeb7   : > { %7474 = vmatprep.subr.mxu0 %v5927_v6 }
 0xeb8   : > { %7475 = vmatpush3.msra.mxu0 %v5927_v6 }
 0xeb9   : > { %7470 = vmatmul.mubr.msk.f32.gmra.mxu0 %vm6022_vm9, %v7295_v18 }
 0xeba   : > { %7476 = vmatprep.mubr.msk.f32.mxu0 %vm6022_vm9, %v7301_v20 }
 0xebd   : > { %7477 = vmatmul.mubr.msk.f32.vlgmr.msra.gmra.mxu0 %vm6022_vm9, %v7302_v21 }
 0xebe   : > { %7479 = vmatprep.mubr.msk.f32.mxu0 %vm6022_vm9, %v7303_v22 }
 0xec1   : > { %7480 = vmatmul.mubr.msk.f32.gmra.mxu0 %vm6022_vm9, %v7304_v23 }
 0xec2   : > { %7486 = vmatprep.mubr.msk.f32.mxu0 %vm6022_vm9, %v7310_v24 }
 0xeda   : > { %v6002_v25 = vpop.f32.mrf.mxu1 }
 0xedc   : > { %v6004_v26 = vpop.f32.mrf.mxu1 }
 0xede   : > { %v6008_v27 = vpop.f32.mrf.mxu1 }
 0xedf   : > { %7482 = vmatprep.subr.msk.mxu0 %vm6035_vm10, %v6008_v27 }
 0xee0   : > { %7483 = vmatpush3.msk.msra.mxu0 %vm6035_vm10, %v6008_v27  ;;  %v6010_v29 = vpop.f32.mrf.mxu1 }
 0xee1   : > { %7484 = vmatprep.subr.mxu0 %v6002_v25 }
 0xee2   : > { %7485 = vmatpush3.msra.mxu0 %v6002_v25 }
 0xee3   : > { %7487 = vmatmul.mubr.msk.f32.vlgmr.msra.gmra.mxu0 %vm6022_vm9, %v7311_v28  ;;  %7492 = vmatprep.subr.msk.mxu0 %vm6035_vm10, %v6010_v29 }
 0xee4   : > { %7493 = vmatpush3.msk.msra.mxu0 %vm6035_vm10, %v6010_v29  ;;  %7489 = vmatprep.mubr.msk.f32.mxu0 %vm6022_vm9, %v7312_v0 }
 0xee5   : > { %7494 = vmatprep.subr.mxu0 %v6004_v26 }
 0xee6   : > { %7495 = vmatpush3.msra.mxu0 %v6004_v26 }
 0xee7   : > { %7490 = vmatmul.mubr.msk.f32.gmra.mxu0 %vm6022_vm9, %v7313_v30 }
 0xee8   : > { %7496 = vmatprep.mubr.msk.f32.mxu0 %vm6022_vm9, %v7319_v31 }
 0xeeb   : > { %7497 = vmatmul.mubr.msk.f32.vlgmr.msra.gmra.mxu0 %vm6022_vm9, %v7320_v32 }
 0xeec   : > { %7499 = vmatprep.mubr.msk.f32.mxu0 %vm6022_vm9, %v7321_v33 }
 0xeef   : > { %7500 = vmatmul.mubr.msk.f32.gmra.mxu0 %vm6022_vm9, %v7322_v34 }
 0xef0   : > { %8240 = shalt.err (!%p8237_p10)
}
 0xef1   : > { %s8241_s2 = scalar_lea.hbm %s9311_s23, 16  ;;  %s8245_s3 = scalar_lea.hbm %s8604_s25, 32 }
 0xef2   : > { %p8242_p11 = scmp.ne.s32.totalorder %s9311_s23, %s8241_s2  ;;  %p8246_p1 = scmp.lt.s32.totalorder %s9311_s23, %s8604_s25 }
 0xef3   : > { %p8247_p2 = scmp.lt.s32.totalorder %s8245_s3, %s8241_s2 }
 0xef4   : > { %p8243_p0 = pnand %p8242_p11, %p9505_p4 }
 0xef5   : > { %p8248_p3 = por %p8247_p2, %p8246_p1 }
 0xef6   : > { %p8244_p13 = pneg %p8243_p0 }
 0xef8   : > { %p8249_p12 = pnand %p8248_p3, %p8244_p13 }
 0xefa   : > { %8252 = shalt.err (!%p8249_p12)
}
 0xefb   : > { %7571 = dma.vmem_to_hbm [thread:$0]  (%p9505_p4), %s6752_s6, 16, %s9311_s23, %s9319_s9  }
 0xefc   : > { %s9506_s12 = scalar_lea.vmem [#allocation29], %s9139_s4  ;;  %s9338_s10 = scalar_lea.hbm %s8609_s13, %s9307_s16 }
 0xefd   : > { %s6738_s11 = sshll.u32 %s9506_s12, 4  ;;  %s9507_s7 = scalar_lea.vmem [#allocation32], %s9139_s4  ;;  %s6739_s11 = int_to_ptr.vmem [resolvable:$true] %s6738_s11 }
 0xefe   : > { %s6764_s2 = sshll.u32 %s9507_s7, 4  ;;  %s6713_s3 = scalar_lea.sflag [#allocation4], %s9139_s4  ;;  %s6765_s2 = int_to_ptr.vmem [resolvable:$true] %s6764_s2 }
 0xeff   : > { %s8253_s14 = scalar_lea.vmem %s6739_s11, 16  ;;  %s8444_s15 = smov [#allocation29]  }
 0xf00   : > { %p8254_p9 = scmp.ne.s32.totalorder %s6739_s11, %s8253_s14  ;;  %s8257_s17 = sshll.u32 %s8444_s15, 4  ;;  %s8258_s17 = int_to_ptr.vmem [resolvable:$false] %s8257_s17 }
 0xf01   : > { %s8259_s18 = scalar_lea.vmem %s8258_s17, 32  ;;  %p8260_p5 = scmp.lt.s32.totalorder %s6739_s11, %s8258_s17 }
 0xf02   : > { %p8255_p7 = pnand %p8254_p9, %p9505_p4  ;;  %p8261_p6 = scmp.lt.s32.totalorder %s8259_s18, %s8253_s14 }
 0xf04   : > { %p8256_p8 = pneg %p8255_p7  ;;  %p8262_p10 = por %p8261_p6, %p8260_p5 }
 0xf06   : > { %p8263_p11 = pnand %p8262_p10, %p8256_p8 }
 0xf08   : > { %8266 = shalt.err (!%p8263_p11)
}
 0xf09   : > { %s8267_s6 = scalar_lea.hbm %s9317_s8, 16  ;;  %s8271_s4 = scalar_lea.hbm %s8599_s5, 32 }
 0xf0a   : > { %p8268_p0 = scmp.ne.s32.totalorder %s9317_s8, %s8267_s6  ;;  %p8272_p2 = scmp.lt.s32.totalorder %s9317_s8, %s8599_s5 }
 0xf0b   : > { %p8273_p3 = scmp.lt.s32.totalorder %s8271_s4, %s8267_s6 }
 0xf0c   : > { %p8269_p13 = pnand %p8268_p0, %p9505_p4 }
 0xf0d   : > { %p8274_p12 = por %p8273_p3, %p8272_p2 }
 0xf0e   : > { %p8270_p1 = pneg %p8269_p13 }
 0xf10   : > { %p8275_p9 = pnand %p8274_p12, %p8270_p1 }
 0xf12   : > { %8278 = shalt.err (!%p8275_p9)
}
 0xf13   : > { %7570 = dma.vmem_to_hbm [thread:$0]  (%p9505_p4), %s6739_s11, 16, %s9317_s8, %s6713_s3  }
 0xf14   : > { %s8279_s17 = scalar_lea.vmem %s6765_s2, 16  ;;  %s8445_s14 = smov [#allocation32]  }
 0xf15   : > { %p8280_p7 = scmp.ne.s32.totalorder %s6765_s2, %s8279_s17  ;;  %s8283_s18 = sshll.u32 %s8445_s14, 4  ;;  %s8284_s18 = int_to_ptr.vmem [resolvable:$false] %s8283_s18 }
 0xf16   : > { %s8285_s23 = scalar_lea.vmem %s8284_s18, 32  ;;  %p8286_p6 = scmp.lt.s32.totalorder %s6765_s2, %s8284_s18 }
 0xf17   : > { %p8281_p8 = pnand %p8280_p7, %p9505_p4  ;;  %p8287_p10 = scmp.lt.s32.totalorder %s8285_s23, %s8279_s17 }
 0xf19   : > { %p8282_p5 = pneg %p8281_p8  ;;  %p8288_p11 = por %p8287_p10, %p8286_p6 }
 0xf1b   : > { %p8289_p0 = pnand %p8288_p11, %p8282_p5 }
 0xf1d   : > { %8292 = shalt.err (!%p8289_p0)
}
 0xf1e   : > { %s8293_s8 = scalar_lea.hbm %s9338_s10, 16  ;;  %s8297_s16 = scalar_lea.hbm %s8609_s13, 32 }
 0xf1f   : > { %p8294_p13 = scmp.ne.s32.totalorder %s9338_s10, %s8293_s8  ;;  %p8298_p3 = scmp.lt.s32.totalorder %s9338_s10, %s8609_s13 }
 0xf20   : > { %p8299_p12 = scmp.lt.s32.totalorder %s8297_s16, %s8293_s8 }
 0xf21   : > { %p8295_p1 = pnand %p8294_p13, %p9505_p4 }
 0xf22   : > { %p8300_p9 = por %p8299_p12, %p8298_p3 }
 0xf23   : > { %p8296_p2 = pneg %p8295_p1 }
 0xf25   : > { %p8301_p7 = pnand %p8300_p9, %p8296_p2 }
 0xf27   : > { %8304 = shalt.err (!%p8301_p7)
}
 0xf28   : > { %7572 = dma.vmem_to_hbm [thread:$0]  (%p9505_p4), %s6765_s2, 16, %s9338_s10, %s9319_s9   ;;  %vm6710_vm15 = vcmask 224256  }
 0xf29   : > { %s9508_s22 = sld [smem:[#allocation67_spill]]  ;;  %s9509_s9 = sshll.u32 %s8843_s28, 5 }
 0xf2a   : > { %s1260_s15 = scalar_lea.vmem %s8614_s19, %s9509_s9 }
 0xf2f   : > { %v7328_v58 = vld [vmem:[%s9508_s22] ss:$0 sm:$0xff] }
 0xf65   : > { %v7448_v35 = vpop.f32.mrf.mxu0 }
 0xf67   : > { %v6105_v36 = vpop.f32.mrf.mxu0 }
 0xf69   : > { %v7451_v37 = vpop.f32.mrf.mxu0 }
 0xf6b   : > { %v6115_v38 = vpop.f32.mrf.mxu0 }
 0xf6d   : > { %v7458_v39 = vpop.f32.mrf.mxu0 }
 0xf6e   : > { %v6211_v50 = vadd.f32 %v7458_v39, %v7448_v35 }
 0xf6f   : > { %v6205_v40 = vpop.f32.mrf.mxu0 }
 0xf70   : > { %v6206_v53 = vadd.f32 %v6205_v40, %v6105_v36 }
 0xf71   : > { %v7461_v41 = vpop.f32.mrf.mxu0 }
 0xf72   : > { %v6221_v13 = vadd.f32 %v7461_v41, %v7451_v37 }
 0xf73   : > { %v6215_v42 = vpop.f32.mrf.mxu0 }
 0xf74   : > { %v6216_v59 = vadd.f32 %v6215_v42, %v6115_v38 }
 0xf75   : > { %v7468_v43 = vpop.f32.mrf.mxu0 }
 0xf76   : > { %v6330_v55 = vadd.f32 %v7468_v43, %v6211_v50 }
 0xf77   : > { %v6310_v44 = vpop.f32.mrf.mxu0 }
 0xf78   : > { %v6329_v57 = vadd.f32 %v6310_v44, %v6206_v53 }
 0xf79   : > { %v7471_v45 = vpop.f32.mrf.mxu0 }
 0xf7a   : > { %v6332_v61 = vadd.f32 %v7471_v45, %v6221_v13 }
 0xf7b   : > { %v6320_v46 = vpop.f32.mrf.mxu0 }
 0xf7c   : > { %v6331_v51 = vadd.f32 %v6320_v46, %v6216_v59 }
 0xf7d   : > { %v7478_v47 = vpop.f32.mrf.mxu0 }
 0xf7e   : > { %v6439_v62 = vadd.f32 %v7478_v47, %v6330_v55 }
 0xf7f   : > { %v6419_v48 = vpop.f32.mrf.mxu0 }
 0xf80   : > { %v6438_v3 = vadd.f32 %v6419_v48, %v6329_v57 }
 0xf81   : > { %v7481_v49 = vpop.f32.mrf.mxu0 }
 0xf82   : > { %v6441_v63 = vadd.f32 %v7481_v49, %v6332_v61 }
 0xf83   : > { %v6429_v52 = vpop.f32.mrf.mxu0 }
 0xf84   : > { %v6440_v10 = vadd.f32 %v6429_v52, %v6331_v51 }
 0xfa3   : > { %v7488_v54 = vpop.f32.mrf.mxu0 }
 0xfa4   : > { %v6548_v4 = vadd.f32 %v7488_v54, %v6439_v62 }
 0xfa5   : > { %v6528_v56 = vpop.f32.mrf.mxu0 }
 0xfa6   : > { %v6547_v60 = vadd.f32 %v6528_v56, %v6438_v3 }
 0xfa7   : > { %v7491_v19 = vpop.f32.mrf.mxu0 }
 0xfa8   : > { %v6550_v7 = vadd.f32 %v7491_v19, %v6441_v63 }
 0xfa9   : > { %v6538_v1 = vpop.f32.mrf.mxu0 }
 0xfaa   : > { %v6549_v16 = vadd.f32 %v6538_v1, %v6440_v10 }
 0xfab   : > { %v7498_v2 = vpop.f32.mrf.mxu0 }
 0xfac   : > { %v6657_v5 = vadd.f32 %v7498_v2, %v6548_v4 }
 0xfad   : > { %v6637_v6 = vpop.f32.mrf.mxu0 }
 0xfae   : > { %v6668_v8 = vadd.f32 %v7328_v58, %v6657_v5  ;;  %v6656_v9 = vadd.f32 %v6637_v6, %v6547_v60 }
 0xfaf   : > { %v7501_v11 = vpop.f32.mrf.mxu0 }
 0xfb0   : > { %vm6672_vm11 = vcmp.ge.f32.partialorder %v6668_v8, 0.0  ;;  %v6676_v12 = vmul.f32 0.01, %v6668_v8  ;;  %v6667_v14 = vadd.f32 %v7328_v58, %v6656_v9  ;;  %v6659_v15 = vadd.f32 %v7501_v11, %v6550_v7 }
 0xfb1   : > { %v6647_v17 = vpop.f32.mrf.mxu0 }
 0xfb2   : > { %v6680_v18 = vsel %vm6672_vm11, %v6668_v8, %v6676_v12  ;;  %vm6671_vm12 = vcmp.ge.f32.partialorder %v6667_v14, 0.0  ;;  %v6675_v20 = vmul.f32 0.01, %v6667_v14  ;;  %v6670_v21 = vadd.f32 %v7328_v58, %v6659_v15 }
 0xfb3   : > { %v6684_v22 = vsub.f32 0.0, %v6680_v18  ;;  %v6658_v23 = vadd.f32 %v6647_v17, %v6549_v16 }
 0xfb4   : > { %v6679_v24 = vsel %vm6671_vm12, %v6667_v14, %v6675_v20  ;;  %vm6674_vm13 = vcmp.ge.f32.partialorder %v6670_v21, 0.0  ;;  %v6678_v25 = vmul.f32 0.01, %v6670_v21 }
 0xfb5   : > { %v6689_v26 = vmul.f32 1.442695, %v6684_v22  ;;  %v6683_v27 = vsub.f32 0.0, %v6679_v24  ;;  %v6669_v28 = vadd.f32 %v7328_v58, %v6658_v23 }
 0xfb6   : > { %v6682_v0 = vsel %vm6674_vm13, %v6670_v21, %v6678_v25 }
 0xfb7   : > { %7769 = vpow2.f32 %v6689_v26  ;;  %v6687_v29 = vmul.f32 1.442695, %v6683_v27  ;;  %v6686_v30 = vsub.f32 0.0, %v6682_v0  ;;  %vm6673_vm14 = vcmp.ge.f32.partialorder %v6669_v28, 0.0 }
 0xfb8   : > { %v6677_v31 = vmul.f32 0.01, %v6669_v28 }
 0xfb9   : > { %7771 = vpow2.f32 %v6687_v29  ;;  %v6693_v32 = vmul.f32 1.442695, %v6686_v30 }
 0xfba   : > { %v6681_v33 = vsel %vm6673_vm14, %v6669_v28, %v6677_v31 }
 0xfbb   : > { %7773 = vpow2.f32 %v6693_v32  ;;  %v6685_v34 = vsub.f32 0.0, %v6681_v33 }
 0xfbd   : > { %v6691_v35 = vmul.f32 1.442695, %v6685_v34 }
 0xfbf   : > { %7775 = vpow2.f32 %v6691_v35 }
 0xfc4   : > { %v7770_v36 = vpop.eup %7769 }
 0xfc5   : > { %v6696_v37 = vadd.f32 1.0, %v7770_v36 }
 0xfc6   : > { %v7772_v38 = vpop.eup %7771 }
 0xfc7   : > { %7777 = vrcp.f32 %v6696_v37  ;;  %v6695_v39 = vadd.f32 1.0, %v7772_v38 }
 0xfc8   : > { %v7774_v40 = vpop.eup %7773 }
 0xfc9   : > { %7779 = vrcp.f32 %v6695_v39  ;;  %v6698_v41 = vadd.f32 1.0, %v7774_v40 }
 0xfcb   : > { %7781 = vrcp.f32 %v6698_v41 }
 0xfcc   : > { %v7776_v42 = vpop.eup %7775 }
 0xfcd   : > { %v6697_v43 = vadd.f32 1.0, %v7776_v42 }
 0xfcf   : > { %7783 = vrcp.f32 %v6697_v43 }
 0xfd4   : > { %v7778_v44 = vpop.eup %7777 }
 0xfd5   : > { %6708 = vst.msk [vmem:[%s1260_s15 + $0x8] sm:$0xff] %vm1313_vm1, %v7778_v44 }
 0xfd6   : > { %v7780_v45 = vpop.eup %7779 }
 0xfd7   : > { %6707 = vst.msk [vmem:[%s1260_s15] sm:$0xff] %vm1313_vm1, %v7780_v45 }
 0xfd8   : > { %v7782_v46 = vpop.eup %7781 }
 0xfd9   : > { %6711 = vst.msk [vmem:[%s1260_s15 + $0x18] sm:$0xf] %vm6710_vm15, %v7782_v46 }
 0xfdc   : > { %v7784_v47 = vpop.eup %7783 }
 0xfdd   : > { %6709 = vst.msk [vmem:[%s1260_s15 + $0x10] sm:$0xff] %vm1313_vm1, %v7784_v47 }
 0xfde PF: > { %s9510_s12 = sld [smem:[#allocation68_spill]]  ;;  %p7672_p4 = scmp.ge.s32.totalorder %s8379_s0, 2 }
 0xfdf   : > { %s9511_s11 = sld [smem:[#allocation72_spill]] }
 0xfe4   : > { %s6779_s10 = sand.u32 1, %s9510_s12  }
 0xfe5   : > { %p9512_p8 = scmp.ne.s32.totalorder %s9511_s11, 0  ;;  %s6780_s28 = scalar_lea.sflag [#allocation4], %s6779_s10 }
 0xfe7   : > { %p7629_p5 = pnand %p7672_p4, %p9512_p8 }
 0xfe9   : > { %p7630_p6 = pneg %p7629_p5 }
 0xfeb   : > { %8358 = dma.done.wait (%p7630_p6), %s6780_s28, 16  }
 0xfec   : > { %8360 = vsyncadd (%p7630_p6), %s6780_s28, 4294967280  ;;  %s9513_s7 = sadd.s32 4294967294, %s8379_s0  }
 0xfed   : > { %s6787_s2 = sand.u32 1, %s9513_s7  }
 0xfee   : > { %s6788_s3 = scalar_lea.sflag [#allocation31], %s6787_s2 }
 0xfef   : > { %8362 = dma.done.wait (%p7630_p6), %s6788_s3, 32  }
 0xff0   : > { %8364 = vsyncadd (%p7630_p6), %s6788_s3, 4294967264  ;;  %s9514_s0 = sld [smem:[#allocation70_spill]]  ;;  %s9517_s28 = smov %s8371_s1 }
 0xff1   : > { %s9515_s6 = sld [smem:[#allocation69_spill]] }
 0xff2   : > { %s9516_s2 = sld [smem:[#allocation71_spill]] }
 0xff6   : > { %p88_p10 = scmp.ge.s32.totalorder %s9514_s0, 4  }
 0xff7   : > { %s9518_s1 = smov %s9515_s6 }
 0xff8   :  { %90 = sbr.rel (!%p88_p10) target bundleno = 72 (0x48), region = 340 }
 0xffd   :  { %6808 = vsyncpa [#allocation3], 1 }
 0xffe   :  { %6810 = vsyncpa [#allocation3 + $0x1], 1 }
 0xfff   :  { %6811 = vsyncpa [#allocation6], 1 }
0x1000   :  { %6812 = vsyncpa [#allocation9], 1 }
0x1001   :  { %6813 = vsyncpa [#allocation12], 1 }
0x1002   :  { %6814 = vsyncpa [#allocation15], 1 }
0x1003   :  { %6815 = vsyncpa [#allocation18], 1 }
0x1004   :  { %6816 = vsyncpa [#allocation21], 1 }
0x1005   :  { %6817 = vsyncpa [#allocation24], 1 }
0x1006   :  { %6818 = vsyncpa [#allocation27], 1 }
0x1007   :  { %6819 = vsyncpa [#allocation4], 1 }
0x1008   :  { %6821 = vsyncpa [#allocation4 + $0x1], 1 }
0x1009   :  { %6822 = vsyncpa [#allocation31], 1 }
0x100a   :  { %6824 = vsyncpa [#allocation31 + $0x1], 1 }

</bundles_post_ra>
